<compile_context>
chip_gen: v5e
topology: v5e:2x2
jax: 0.10.0
libtpu: 0.0.40
codegen_flags: <defaults>
</compile_context>

<pallas_src>
import functools

import jax
import jax.numpy as jnp
from jax.experimental import pallas as pl
from jax.experimental.pallas import tpu as pltpu


def _round_up(x, m):
    return ((x + m - 1) // m) * m


# ----------------------------- tiled MXU matmul -----------------------------

def _matmul_kernel(a_ref, b_ref, bias_ref, *rest, activation, with_stats):
    if with_stats:
        o_ref, stats_ref, acc_ref = rest
    else:
        o_ref, acc_ref = rest

    @pl.when(pl.program_id(2) == 0)
    def _():
        acc_ref[...] = jnp.zeros_like(acc_ref)

    acc_ref[...] += jnp.dot(a_ref[...], b_ref[...],
                            preferred_element_type=jnp.float32)

    # NOTE: no pl.program_id() inside the pl.when bodies (nested-cond
    # program_id is what broke lowering previously).
    @pl.when(pl.program_id(2) == pl.num_programs(2) - 1)
    def _():
        acc = acc_ref[...]
        y = acc + bias_ref[...]
        if activation == "tanh":
            y = jnp.tanh(y)
        o_ref[...] = y.astype(o_ref.dtype)
        if with_stats:
            # Per-column [sum; sum_sq] of the PRE-BIAS accumulator.  Padded
            # rows/cols are exactly zero, so no masking needed.  Single
            # unmasked full-block (8, tn) store.
            s = jnp.sum(acc, axis=0, keepdims=True)
            ss = jnp.sum(acc * acc, axis=0, keepdims=True)
            r = jax.lax.broadcasted_iota(jnp.int32, stats_ref.shape, 0)
            stats_ref[...] = jnp.where(r == 0, s, jnp.where(r == 1, ss, 0.0))


def matmul_bias(a, b, bias, activation="none", with_stats=False,
                out_dtype=jnp.bfloat16, tm=512, tn=512, tk=1024):
    """y = a @ b + bias.  bf16 MXU inputs, fp32 accumulation, bf16 output.

    If with_stats, also returns (2, N) f32 per-column [sum; sum_of_squares]
    of the pre-bias accumulator over the true rows (fused into the epilogue).
    """
    M, K = a.shape
    K2, N = b.shape
    assert K == K2

    tm = min(tm, _round_up(M, 8))
    tn = min(tn, _round_up(N, 128))
    tk = min(tk, _round_up(K, 128))
    Mp, Kp, Np = _round_up(M, tm), _round_up(K, tk), _round_up(N, tn)
    nm, nn, nk = Mp // tm, Np // tn, Kp // tk

    a_p = a.astype(jnp.bfloat16)
    if (Mp, Kp) != (M, K):
        a_p = jnp.pad(a_p, ((0, Mp - M), (0, Kp - K)))
    b_p = b.astype(jnp.bfloat16)
    if (Kp, Np) != (K, N):
        b_p = jnp.pad(b_p, ((0, Kp - K), (0, Np - N)))
    bias_p = jnp.pad(bias.astype(jnp.float32), (0, Np - N)).reshape(1, Np)

    kern = functools.partial(_matmul_kernel, activation=activation,
                             with_stats=with_stats)

    if with_stats:
        out_shape = (jax.ShapeDtypeStruct((Mp, Np), out_dtype),
                     jax.ShapeDtypeStruct((nm * 8, Np), jnp.float32))
        out_specs = (pl.BlockSpec((tm, tn), lambda i, j, k: (i, j)),
                     pl.BlockSpec((8, tn), lambda i, j, k: (i, j)))
    else:
        out_shape = jax.ShapeDtypeStruct((Mp, Np), out_dtype)
        out_specs = pl.BlockSpec((tm, tn), lambda i, j, k: (i, j))

    res = pl.pallas_call(
        kern,
        out_shape=out_shape,
        grid=(nm, nn, nk),
        in_specs=[
            pl.BlockSpec((tm, tk), lambda i, j, k: (i, k)),
            pl.BlockSpec((tk, tn), lambda i, j, k: (k, j)),
            pl.BlockSpec((1, tn), lambda i, j, k: (0, j)),
        ],
        out_specs=out_specs,
        scratch_shapes=[pltpu.VMEM((tm, tn), jnp.float32)],
        compiler_params=pltpu.CompilerParams(
            dimension_semantics=("parallel", "parallel", "arbitrary"),
            vmem_limit_bytes=32 * 1024 * 1024),
    )(a_p, b_p, bias_p)

    if with_stats:
        y_p, st_p = res
        stats = st_p.reshape(nm, 8, Np)[:, :2, :N].sum(axis=0)   # (2, N) f32
        return y_p[:M, :N], stats
    return res[:M, :N]


# ------------------------- fused BN apply (+ReLU/+res) ----------------------

def _bn_kernel(x_ref, scale_ref, shift_ref, o_ref, *, relu):
    y = x_ref[...].astype(jnp.float32) * scale_ref[...] + shift_ref[...]
    if relu:
        y = jnp.maximum(y, 0.0)
    o_ref[...] = y.astype(o_ref.dtype)


def _bn_res_kernel(x_ref, scale_ref, shift_ref, res_ref, o_ref):
    y = x_ref[...].astype(jnp.float32) * scale_ref[...] + shift_ref[...]
    o_ref[...] = (y + res_ref[...].astype(jnp.float32)).astype(o_ref.dtype)


def _pick_row_tile(rows, lanes, target_elems=1 << 20, max_rows=512):
    """Row tile: ~1M elems per block, multiple of 8, never a full-M fallback."""
    tr = (target_elems // max(lanes, 1)) // 8 * 8
    tr = max(8, min(max_rows, tr))
    return min(tr, _round_up(rows, 8))


def bn_apply(y4d, stats, conv_bias, gamma, beta, eps=1e-5, relu=False,
             residual=None):
    """Training-mode BatchNorm2d from fused pre-bias stats; bf16 in/out.

    stats = [sum(acc); sum(acc^2)] per channel where y = acc + conv_bias,
    so mean(y) = mean(acc) + bias and var(y) = var(acc).
    """
    N, H, W, C = y4d.shape
    M = N * H * W

    mean_acc = stats[0] / M
    var = jnp.maximum(stats[1] / M - mean_acc * mean_acc, 0.0)
    mean = mean_acc + conv_bias.astype(jnp.float32)
    inv = gamma.astype(jnp.float32) / jnp.sqrt(var + eps)
    scale = inv
    shift = beta.astype(jnp.float32) - mean * inv

    # Lane-dense layout: fold W into the lane axis when C < 128.
    if C < 128:
        rows, lanes = N * H, W * C
        scale2 = jnp.tile(scale, W).reshape(1, lanes)
        shift2 = jnp.tile(shift, W).reshape(1, lanes)
    else:
        rows, lanes = M, C
        scale2 = scale.reshape(1, lanes)
        shift2 = shift.reshape(1, lanes)
    x2 = y4d.reshape(rows, lanes)
    res2 = None if residual is None else residual.reshape(rows, lanes)

    tr = _pick_row_tile(rows, lanes)
    rows_p = _round_up(rows, tr)
    if rows_p != rows:
        x2 = jnp.pad(x2, ((0, rows_p - rows), (0, 0)))
        if res2 is not None:
            res2 = jnp.pad(res2, ((0, rows_p - rows), (0, 0)))

    grid = (rows_p // tr,)
    row_spec = pl.BlockSpec((tr, lanes), lambda i: (i, 0))
    vec_spec = pl.BlockSpec((1, lanes), lambda i: (0, 0))
    params = pltpu.CompilerParams(dimension_semantics=("parallel",),
                                  vmem_limit_bytes=32 * 1024 * 1024)
    out_shape = jax.ShapeDtypeStruct((rows_p, lanes), jnp.bfloat16)

    if res2 is None:
        out = pl.pallas_call(
            functools.partial(_bn_kernel, relu=relu),
            out_shape=out_shape, grid=grid,
            in_specs=[row_spec, vec_spec, vec_spec],
            out_specs=row_spec, compiler_params=params,
        )(x2, scale2, shift2)
    else:
        out = pl.pallas_call(
            _bn_res_kernel,
            out_shape=out_shape, grid=grid,
            in_specs=[row_spec, vec_spec, vec_spec, row_spec],
            out_specs=row_spec, compiler_params=params,
        )(x2, scale2, shift2, res2)
    return out[:rows].reshape(N, H, W, C)


# ------------------------------ conv plumbing -------------------------------

def im2col(x_nhwc, k, stride, pad):
    # TODO(synk): replace with streaming taps via the matmul K grid axis.
    if pad > 0:
        x_nhwc = jnp.pad(x_nhwc, ((0, 0), (pad, pad), (pad, pad), (0, 0)))
    N, Hp, Wp, C = x_nhwc.shape
    Ho = (Hp - k) // stride + 1
    Wo = (Wp - k) // stride + 1
    cols = []
    for dy in range(k):
        for dx in range(k):
            cols.append(x_nhwc[:, dy:dy + stride * (Ho - 1) + 1:stride,
                               dx:dx + stride * (Wo - 1) + 1:stride, :])
    patches = jnp.concatenate(cols, axis=-1)   # (N, Ho, Wo, k*k*C), (dy,dx,c)
    return patches.reshape(N * Ho * Wo, k * k * C), (N, Ho, Wo)


def conv2d(x_nhwc, w_oihw, bias, stride, pad, activation="none",
           with_stats=False):
    cout, cin, k, _ = w_oihw.shape
    a, (N, Ho, Wo) = im2col(x_nhwc.astype(jnp.bfloat16), k, stride, pad)
    wm = jnp.transpose(w_oihw, (2, 3, 1, 0)).reshape(k * k * cin, cout)
    if with_stats:
        y, stats = matmul_bias(a, wm, bias, activation=activation,
                               with_stats=True)
        return y.reshape(N, Ho, Wo, cout), stats
    y = matmul_bias(a, wm, bias, activation=activation)
    return y.reshape(N, Ho, Wo, cout)


def conv_transpose2d(x_nhwc, w_iohw, bias, stride, pad, output_pad,
                     with_stats=False):
    """Phase-decomposed ConvTranspose2d (stride=2, k=3, pad=1, out_pad=1)."""
    cin, cout, k, _ = w_iohw.shape
    assert stride == 2 and pad == 1 and output_pad == 1 and k == 3
    N, H, W, _ = x_nhwc.shape
    M = N * H * W

    x = x_nhwc.astype(jnp.bfloat16)
    xp = jnp.pad(x, ((0, 0), (0, 1), (0, 1), (0, 0)))  # bottom/right halo

    def view(dy, dx):
        return xp[:, dy:dy + H, dx:dx + W, :].reshape(M, cin)

    def wmat(ky, kx):
        return w_iohw[:, :, ky, kx]  # (cin, cout)

    # phase (a, b) -> list of ((dy, dx) input tap, (ky, kx) kernel tap)
    phase_taps = {
        (0, 0): [((0, 0), (1, 1))],
        (0, 1): [((0, 0), (1, 2)), ((0, 1), (1, 0))],
        (1, 0): [((0, 0), (2, 1)), ((1, 0), (0, 1))],
        (1, 1): [((0, 0), (2, 2)), ((0, 1), (2, 0)),
                 ((1, 0), (0, 2)), ((1, 1), (0, 0))],
    }

    phase_out = {}
    stats_acc = jnp.zeros((2, cout), jnp.float32) if with_stats else None
    for (pa, pb), taps in phase_taps.items():
        A = jnp.concatenate([view(dy, dx) for (dy, dx), _ in taps], axis=-1)
        Wm = jnp.concatenate([wmat(ky, kx) for _, (ky, kx) in taps], axis=0)
        if with_stats:
            y, st = matmul_bias(A, Wm, bias, with_stats=True)
            stats_acc = stats_acc + st
        else:
            y = matmul_bias(A, Wm, bias)
        phase_out[(pa, pb)] = y.reshape(N, H, W, cout)

    # Pixel-shuffle assembly (stack -> transpose -> reshape), no strided RMW.
    ys = jnp.stack([phase_out[(0, 0)], phase_out[(0, 1)],
                    phase_out[(1, 0)], phase_out[(1, 1)]], axis=3)
    ys = ys.reshape(N, H, W, 2, 2, cout)
    out = ys.transpose(0, 1, 3, 2, 4, 5).reshape(N, 2 * H, 2 * W, cout)
    if with_stats:
        return out, stats_acc
    return out


# ------------------------- parameter init / forward -------------------------

def init_generator_params(key, input_nc, output_nc, ngf, n_blocks, n_down=2):
    def nxt():
        nonlocal key
        key, sub = jax.random.split(key)
        return sub

    def conv_p(cin, cout, k, bn=True):
        p = {"w": 0.02 * jax.random.normal(nxt(), (cout, cin, k, k), jnp.float32),
             "b": jnp.zeros((cout,), jnp.float32)}
        if bn:
            p["gamma"] = 1.0 + 0.02 * jax.random.normal(nxt(), (cout,), jnp.float32)
            p["beta"] = jnp.zeros((cout,), jnp.float32)
        return p

    def deconv_p(cin, cout, k):
        return {"w": 0.02 * jax.random.normal(nxt(), (cin, cout, k, k), jnp.float32),
                "b": jnp.zeros((cout,), jnp.float32),
                "gamma": 1.0 + 0.02 * jax.random.normal(nxt(), (cout,), jnp.float32),
                "beta": jnp.zeros((cout,), jnp.float32)}

    layers = []
    layers.append(("conv_bn_relu", conv_p(input_nc, ngf, 7), dict(stride=1, pad=3)))
    for i in range(n_down):
        mult = 2 ** i
        layers.append(("conv_bn_relu", conv_p(ngf * mult, ngf * mult * 2, 3),
                       dict(stride=2, pad=1)))
    mult = 2 ** n_down
    for _ in range(n_blocks):
        layers.append(("resblock",
                       {"c1": conv_p(ngf * mult, ngf * mult, 3),
                        "c2": conv_p(ngf * mult, ngf * mult, 3)}, {}))
    for i in range(n_down):
        mult = 2 ** (n_down - i)
        layers.append(("deconv_bn_relu", deconv_p(ngf * mult, ngf * mult // 2, 3),
                       dict(stride=2, pad=1, output_pad=1)))
    layers.append(("conv_tanh", conv_p(ngf, output_nc, 7, bn=False),
                   dict(stride=1, pad=3)))
    return layers


def resnet_generator_forward(layers, x_nchw):
    x = jnp.transpose(x_nchw, (0, 2, 3, 1)).astype(jnp.bfloat16)  # NCHW->NHWC
    for kind, p, cfg in layers:
        if kind == "conv_bn_relu":
            y, stats = conv2d(x, p["w"], p["b"], cfg["stride"], cfg["pad"],
                              with_stats=True)
            x = bn_apply(y, stats, p["b"], p["gamma"], p["beta"], relu=True)
        elif kind == "deconv_bn_relu":
            y, stats = conv_transpose2d(x, p["w"], p["b"], cfg["stride"],
                                        cfg["pad"], cfg["output_pad"],
                                        with_stats=True)
            x = bn_apply(y, stats, p["b"], p["gamma"], p["beta"], relu=True)
        elif kind == "resblock":
            c1, c2 = p["c1"], p["c2"]
            y, s1 = conv2d(x, c1["w"], c1["b"], 1, 1, with_stats=True)
            y = bn_apply(y, s1, c1["b"], c1["gamma"], c1["beta"], relu=True)
            y, s2 = conv2d(y, c2["w"], c2["b"], 1, 1, with_stats=True)
            x = bn_apply(y, s2, c2["b"], c2["gamma"], c2["beta"],
                         relu=False, residual=x)
        elif kind == "conv_tanh":
            x = conv2d(x, p["w"], p["b"], cfg["stride"], cfg["pad"],
                       activation="tanh")
    return jnp.transpose(x.astype(jnp.float32), (0, 3, 1, 2))  # NHWC -> NCHW


if __name__ == "__main__":
    key = jax.random.PRNGKey(0)
    k_param, k_input = jax.random.split(key)

    input_nc, output_nc, ngf, n_blocks = 3, 3, 8, 2
    layers = init_generator_params(k_param, input_nc, output_nc, ngf, n_blocks)

    x = jax.random.normal(k_input, (2, input_nc, 16, 16), jnp.float32)

    fwd = jax.jit(lambda inp: resnet_generator_forward(layers, inp))
    out = jax.block_until_ready(fwd(x))

    assert out.shape == (2, output_nc, 16, 16), out.shape
    assert bool(jnp.all(jnp.isfinite(out)))
    assert bool(jnp.all(jnp.abs(out) <= 1.0))  # tanh output range
    print("KERNEL_OK")
</pallas_src>

<mosaic_0001>
module attributes {stable_mosaic.version = 11 : i64} {
  func.func @_matmul_kernel(%arg0: i32, %arg1: i32, %arg2: i32, %arg3: memref<512x256xbf16, #tpu.memory_space<vmem>>, %arg4: memref<256x128xbf16, #tpu.memory_space<vmem>>, %arg5: memref<1x128xf32, #tpu.memory_space<vmem>>, %arg6: memref<512x128xbf16, #tpu.memory_space<vmem>>, %arg7: memref<8x128xf32, #tpu.memory_space<vmem>>, %arg8: memref<512x128xf32, #tpu.memory_space<vmem>>) attributes {dimension_semantics = [#tpu.dimension_semantics<parallel>, #tpu.dimension_semantics<parallel>, #tpu.dimension_semantics<arbitrary>], iteration_bounds = array<i64: 1, 1, 1>, scalar_prefetch = 0 : i64, scratch_operands = 1 : i64, tpu.core_type = #tpu.core_type<tc>, window_params = [{transform_indices = @transform_0, window_bounds = array<i64: 512, 256>}, {transform_indices = @transform_1, window_bounds = array<i64: 256, 128>}, {transform_indices = @transform_2, window_bounds = array<i64: 1, 128>}, {transform_indices = @transform_3, window_bounds = array<i64: 512, 128>}, {transform_indices = @transform_4, window_bounds = array<i64: 8, 128>}]} {
    %c0_i32 = arith.constant 0 : i32
    %0 = arith.cmpi eq, %arg2, %c0_i32 : i32
    %1 = arith.extui %0 : i1 to i32
    %c0_i32_0 = arith.constant 0 : i32
    %2 = arith.cmpi ne, %1, %c0_i32_0 : i32
    scf.if %2 {
      %cst_10 = arith.constant 0.000000e+00 : f32
      %12 = vector.broadcast %cst_10 : f32 to vector<512x128xf32>
      %c0_11 = arith.constant 0 : index
      %c0_12 = arith.constant 0 : index
      %13 = vector.load %arg8[%c0_11, %c0_12] : memref<512x128xf32, #tpu.memory_space<vmem>>, vector<512x128xf32>
      tpu.vector_store %arg8[%c0_11, %c0_12], %12 {strides = array<i32>} : memref<512x128xf32, #tpu.memory_space<vmem>>, vector<512x128xf32>,
    } else {
    }
    %c0 = arith.constant 0 : index
    %c0_1 = arith.constant 0 : index
    %3 = vector.load %arg8[%c0, %c0_1] : memref<512x128xf32, #tpu.memory_space<vmem>>, vector<512x128xf32>
    %c0_2 = arith.constant 0 : index
    %c0_3 = arith.constant 0 : index
    %4 = vector.load %arg3[%c0_2, %c0_3] : memref<512x256xbf16, #tpu.memory_space<vmem>>, vector<512x256xbf16>
    %c0_4 = arith.constant 0 : index
    %c0_5 = arith.constant 0 : index
    %5 = vector.load %arg4[%c0_4, %c0_5] : memref<256x128xbf16, #tpu.memory_space<vmem>>, vector<256x128xbf16>
    %cst = arith.constant dense<0.000000e+00> : vector<512x128xf32>
    %6 = tpu.matmul %4, %5, %cst {dimension_numbers = #tpu.dot_dimension_numbers<[1], [0], [0], [1], [0, 0, 1, 1], [], []>} : vector<512x256xbf16>, vector<256x128xbf16>, vector<512x128xf32> -> vector<512x128xf32>
    %7 = arith.addf %3, %6 : vector<512x128xf32>
    %c0_6 = arith.constant 0 : index
    %c0_7 = arith.constant 0 : index
    %8 = vector.load %arg8[%c0_6, %c0_7] : memref<512x128xf32, #tpu.memory_space<vmem>>, vector<512x128xf32>
    tpu.vector_store %arg8[%c0_6, %c0_7], %7 {strides = array<i32>} : memref<512x128xf32, #tpu.memory_space<vmem>>, vector<512x128xf32>,
    %c0_i32_8 = arith.constant 0 : i32
    %9 = arith.cmpi eq, %arg2, %c0_i32_8 : i32
    %10 = arith.extui %9 : i1 to i32
    %c0_i32_9 = arith.constant 0 : i32
    %11 = arith.cmpi ne, %10, %c0_i32_9 : i32
    scf.if %11 {
      %c0_10 = arith.constant 0 : index
      %c0_11 = arith.constant 0 : index
      %12 = vector.load %arg8[%c0_10, %c0_11] : memref<512x128xf32, #tpu.memory_space<vmem>>, vector<512x128xf32>
      %c0_12 = arith.constant 0 : index
      %c0_13 = arith.constant 0 : index
      %13 = vector.load %arg5[%c0_12, %c0_13] : memref<1x128xf32, #tpu.memory_space<vmem>>, vector<1x128xf32>
      %14 = vector.broadcast %13 : vector<1x128xf32> to vector<512x128xf32>
      %15 = arith.addf %12, %14 : vector<512x128xf32>
      %16 = arith.truncf %15 : vector<512x128xf32> to vector<512x128xbf16>
      %c0_14 = arith.constant 0 : index
      %c0_15 = arith.constant 0 : index
      %17 = vector.load %arg6[%c0_14, %c0_15] : memref<512x128xbf16, #tpu.memory_space<vmem>>, vector<512x128xbf16>
      tpu.vector_store %arg6[%c0_14, %c0_15], %16 {strides = array<i32>} : memref<512x128xbf16, #tpu.memory_space<vmem>>, vector<512x128xbf16>,
      %cst_16 = arith.constant dense<0.000000e+00> : vector<128xf32>
      %18 = vector.multi_reduction <add>, %12, %cst_16 [0] : vector<512x128xf32> to vector<128xf32>
      %19 = vector.shape_cast %18 : vector<128xf32> to vector<1x128xf32>
      %20 = arith.mulf %12, %12 : vector<512x128xf32>
      %cst_17 = arith.constant dense<0.000000e+00> : vector<128xf32>
      %21 = vector.multi_reduction <add>, %20, %cst_17 [0] : vector<512x128xf32> to vector<128xf32>
      %22 = vector.shape_cast %21 : vector<128xf32> to vector<1x128xf32>
      %23 = tpu.iota {dimensions = array<i32: 0>} : vector<8x128xi32>
      %c0_i32_18 = arith.constant 0 : i32
      %24 = vector.broadcast %c0_i32_18 : i32 to vector<8x128xi32>
      %25 = arith.cmpi eq, %23, %24 : vector<8x128xi32>
      %c1_i32 = arith.constant 1 : i32
      %26 = vector.broadcast %c1_i32 : i32 to vector<8x128xi32>
      %27 = arith.cmpi eq, %23, %26 : vector<8x128xi32>
      %cst_19 = arith.constant 0.000000e+00 : f32
      %28 = vector.shape_cast %22 : vector<1x128xf32> to vector<1x128xf32>
      %29 = vector.broadcast %28 : vector<1x128xf32> to vector<8x128xf32>
      %30 = vector.broadcast %cst_19 : f32 to vector<8x128xf32>
      %31 = arith.select %27, %29, %30 : vector<8x128xi1>, vector<8x128xf32>
      %32 = vector.shape_cast %19 : vector<1x128xf32> to vector<1x128xf32>
      %33 = vector.broadcast %32 : vector<1x128xf32> to vector<8x128xf32>
      %34 = arith.select %25, %33, %31 : vector<8x128xi1>, vector<8x128xf32>
      %c0_20 = arith.constant 0 : index
      %c0_21 = arith.constant 0 : index
      %35 = vector.load %arg7[%c0_20, %c0_21] : memref<8x128xf32, #tpu.memory_space<vmem>>, vector<8x128xf32>
      tpu.vector_store %arg7[%c0_20, %c0_21], %34 {strides = array<i32>} : memref<8x128xf32, #tpu.memory_space<vmem>>, vector<8x128xf32>,
    } else {
    }
    return
  }
  func.func @transform_0(%arg0: i32, %arg1: i32, %arg2: i32) -> (i32, i32) {
    %c0_i32 = arith.constant 0 : i32
    return %arg0, %arg2 : i32, i32
  }
  func.func @transform_1(%arg0: i32, %arg1: i32, %arg2: i32) -> (i32, i32) {
    %c0_i32 = arith.constant 0 : i32
    return %arg2, %arg1 : i32, i32
  }
  func.func @transform_2(%arg0: i32, %arg1: i32, %arg2: i32) -> (i32, i32) {
    %c0_i32 = arith.constant 0 : i32
    %c0_i32_0 = arith.constant 0 : i32
    return %c0_i32, %arg1 : i32, i32
  }
  func.func @transform_3(%arg0: i32, %arg1: i32, %arg2: i32) -> (i32, i32) {
    %c0_i32 = arith.constant 0 : i32
    return %arg0, %arg1 : i32, i32
  }
  func.func @transform_4(%arg0: i32, %arg1: i32, %arg2: i32) -> (i32, i32) {
    %c0_i32 = arith.constant 0 : i32
    return %arg0, %arg1 : i32, i32
  }
}

module attributes {stable_mosaic.version = 11 : i64} {
  func.func @_bn_kernel(%arg0: i32, %arg1: memref<32x128xbf16, #tpu.memory_space<vmem>>, %arg2: memref<1x128xf32, #tpu.memory_space<vmem>>, %arg3: memref<1x128xf32, #tpu.memory_space<vmem>>, %arg4: memref<32x128xbf16, #tpu.memory_space<vmem>>) attributes {dimension_semantics = [#tpu.dimension_semantics<parallel>], iteration_bounds = array<i64: 1>, scalar_prefetch = 0 : i64, scratch_operands = 0 : i64, tpu.core_type = #tpu.core_type<tc>, window_params = [{transform_indices = @transform_0, window_bounds = array<i64: 32, 128>}, {pipeline_mode = #tpu.pipeline_mode<synchronous>, transform_indices = @transform_1, window_bounds = array<i64: 1, 128>}, {pipeline_mode = #tpu.pipeline_mode<synchronous>, transform_indices = @transform_2, window_bounds = array<i64: 1, 128>}, {transform_indices = @transform_3, window_bounds = array<i64: 32, 128>}]} {
    %c0 = arith.constant 0 : index
    %c0_0 = arith.constant 0 : index
    %0 = vector.load %arg1[%c0, %c0_0] : memref<32x128xbf16, #tpu.memory_space<vmem>>, vector<32x128xbf16>
    %1 = arith.extf %0 : vector<32x128xbf16> to vector<32x128xf32>
    %c0_1 = arith.constant 0 : index
    %c0_2 = arith.constant 0 : index
    %2 = vector.load %arg2[%c0_1, %c0_2] : memref<1x128xf32, #tpu.memory_space<vmem>>, vector<1x128xf32>
    %3 = vector.broadcast %2 : vector<1x128xf32> to vector<32x128xf32>
    %4 = arith.mulf %1, %3 : vector<32x128xf32>
    %c0_3 = arith.constant 0 : index
    %c0_4 = arith.constant 0 : index
    %5 = vector.load %arg3[%c0_3, %c0_4] : memref<1x128xf32, #tpu.memory_space<vmem>>, vector<1x128xf32>
    %6 = vector.broadcast %5 : vector<1x128xf32> to vector<32x128xf32>
    %7 = arith.addf %4, %6 : vector<32x128xf32>
    %cst = arith.constant 0.000000e+00 : f32
    %8 = vector.broadcast %cst : f32 to vector<32x128xf32>
    %9 = arith.maximumf %7, %8 : vector<32x128xf32>
    %10 = arith.truncf %9 : vector<32x128xf32> to vector<32x128xbf16>
    %c0_5 = arith.constant 0 : index
    %c0_6 = arith.constant 0 : index
    %11 = vector.load %arg4[%c0_5, %c0_6] : memref<32x128xbf16, #tpu.memory_space<vmem>>, vector<32x128xbf16>
    tpu.vector_store %arg4[%c0_5, %c0_6], %10 {strides = array<i32>} : memref<32x128xbf16, #tpu.memory_space<vmem>>, vector<32x128xbf16>,
    return
  }
  func.func @transform_0(%arg0: i32) -> (i32, i32) {
    %c0_i32 = arith.constant 0 : i32
    %c0_i32_0 = arith.constant 0 : i32
    return %arg0, %c0_i32 : i32, i32
  }
  func.func @transform_1(%arg0: i32) -> (i32, i32) {
    %c0_i32 = arith.constant 0 : i32
    %c0_i32_0 = arith.constant 0 : i32
    %c0_i32_1 = arith.constant 0 : i32
    return %c0_i32, %c0_i32_0 : i32, i32
  }
  func.func @transform_2(%arg0: i32) -> (i32, i32) {
    %c0_i32 = arith.constant 0 : i32
    %c0_i32_0 = arith.constant 0 : i32
    %c0_i32_1 = arith.constant 0 : i32
    return %c0_i32, %c0_i32_0 : i32, i32
  }
  func.func @transform_3(%arg0: i32) -> (i32, i32) {
    %c0_i32 = arith.constant 0 : i32
    %c0_i32_0 = arith.constant 0 : i32
    return %arg0, %c0_i32 : i32, i32
  }
}

module attributes {stable_mosaic.version = 11 : i64} {
  func.func @_matmul_kernel(%arg0: i32, %arg1: i32, %arg2: i32, %arg3: memref<128x128xbf16, #tpu.memory_space<vmem>>, %arg4: memref<128x128xbf16, #tpu.memory_space<vmem>>, %arg5: memref<1x128xf32, #tpu.memory_space<vmem>>, %arg6: memref<128x128xbf16, #tpu.memory_space<vmem>>, %arg7: memref<8x128xf32, #tpu.memory_space<vmem>>, %arg8: memref<128x128xf32, #tpu.memory_space<vmem>>) attributes {dimension_semantics = [#tpu.dimension_semantics<parallel>, #tpu.dimension_semantics<parallel>, #tpu.dimension_semantics<arbitrary>], iteration_bounds = array<i64: 1, 1, 1>, scalar_prefetch = 0 : i64, scratch_operands = 1 : i64, tpu.core_type = #tpu.core_type<tc>, window_params = [{transform_indices = @transform_0, window_bounds = array<i64: 128, 128>}, {transform_indices = @transform_1, window_bounds = array<i64: 128, 128>}, {transform_indices = @transform_2, window_bounds = array<i64: 1, 128>}, {transform_indices = @transform_3, window_bounds = array<i64: 128, 128>}, {transform_indices = @transform_4, window_bounds = array<i64: 8, 128>}]} {
    %c0_i32 = arith.constant 0 : i32
    %0 = arith.cmpi eq, %arg2, %c0_i32 : i32
    %1 = arith.extui %0 : i1 to i32
    %c0_i32_0 = arith.constant 0 : i32
    %2 = arith.cmpi ne, %1, %c0_i32_0 : i32
    scf.if %2 {
      %cst_10 = arith.constant 0.000000e+00 : f32
      %12 = vector.broadcast %cst_10 : f32 to vector<128x128xf32>
      %c0_11 = arith.constant 0 : index
      %c0_12 = arith.constant 0 : index
      %13 = vector.load %arg8[%c0_11, %c0_12] : memref<128x128xf32, #tpu.memory_space<vmem>>, vector<128x128xf32>
      tpu.vector_store %arg8[%c0_11, %c0_12], %12 {strides = array<i32>} : memref<128x128xf32, #tpu.memory_space<vmem>>, vector<128x128xf32>,
    } else {
    }
    %c0 = arith.constant 0 : index
    %c0_1 = arith.constant 0 : index
    %3 = vector.load %arg8[%c0, %c0_1] : memref<128x128xf32, #tpu.memory_space<vmem>>, vector<128x128xf32>
    %c0_2 = arith.constant 0 : index
    %c0_3 = arith.constant 0 : index
    %4 = vector.load %arg3[%c0_2, %c0_3] : memref<128x128xbf16, #tpu.memory_space<vmem>>, vector<128x128xbf16>
    %c0_4 = arith.constant 0 : index
    %c0_5 = arith.constant 0 : index
    %5 = vector.load %arg4[%c0_4, %c0_5] : memref<128x128xbf16, #tpu.memory_space<vmem>>, vector<128x128xbf16>
    %cst = arith.constant dense<0.000000e+00> : vector<128x128xf32>
    %6 = tpu.matmul %4, %5, %cst {dimension_numbers = #tpu.dot_dimension_numbers<[1], [0], [0], [1], [0, 0, 1, 1], [], []>} : vector<128x128xbf16>, vector<128x128xbf16>, vector<128x128xf32> -> vector<128x128xf32>
    %7 = arith.addf %3, %6 : vector<128x128xf32>
    %c0_6 = arith.constant 0 : index
    %c0_7 = arith.constant 0 : index
    %8 = vector.load %arg8[%c0_6, %c0_7] : memref<128x128xf32, #tpu.memory_space<vmem>>, vector<128x128xf32>
    tpu.vector_store %arg8[%c0_6, %c0_7], %7 {strides = array<i32>} : memref<128x128xf32, #tpu.memory_space<vmem>>, vector<128x128xf32>,
    %c0_i32_8 = arith.constant 0 : i32
    %9 = arith.cmpi eq, %arg2, %c0_i32_8 : i32
    %10 = arith.extui %9 : i1 to i32
    %c0_i32_9 = arith.constant 0 : i32
    %11 = arith.cmpi ne, %10, %c0_i32_9 : i32
    scf.if %11 {
      %c0_10 = arith.constant 0 : index
      %c0_11 = arith.constant 0 : index
      %12 = vector.load %arg8[%c0_10, %c0_11] : memref<128x128xf32, #tpu.memory_space<vmem>>, vector<128x128xf32>
      %c0_12 = arith.constant 0 : index
      %c0_13 = arith.constant 0 : index
      %13 = vector.load %arg5[%c0_12, %c0_13] : memref<1x128xf32, #tpu.memory_space<vmem>>, vector<1x128xf32>
      %14 = vector.broadcast %13 : vector<1x128xf32> to vector<128x128xf32>
      %15 = arith.addf %12, %14 : vector<128x128xf32>
      %16 = arith.truncf %15 : vector<128x128xf32> to vector<128x128xbf16>
      %c0_14 = arith.constant 0 : index
      %c0_15 = arith.constant 0 : index
      %17 = vector.load %arg6[%c0_14, %c0_15] : memref<128x128xbf16, #tpu.memory_space<vmem>>, vector<128x128xbf16>
      tpu.vector_store %arg6[%c0_14, %c0_15], %16 {strides = array<i32>} : memref<128x128xbf16, #tpu.memory_space<vmem>>, vector<128x128xbf16>,
      %cst_16 = arith.constant dense<0.000000e+00> : vector<128xf32>
      %18 = vector.multi_reduction <add>, %12, %cst_16 [0] : vector<128x128xf32> to vector<128xf32>
      %19 = vector.shape_cast %18 : vector<128xf32> to vector<1x128xf32>
      %20 = arith.mulf %12, %12 : vector<128x128xf32>
      %cst_17 = arith.constant dense<0.000000e+00> : vector<128xf32>
      %21 = vector.multi_reduction <add>, %20, %cst_17 [0] : vector<128x128xf32> to vector<128xf32>
      %22 = vector.shape_cast %21 : vector<128xf32> to vector<1x128xf32>
      %23 = tpu.iota {dimensions = array<i32: 0>} : vector<8x128xi32>
      %c0_i32_18 = arith.constant 0 : i32
      %24 = vector.broadcast %c0_i32_18 : i32 to vector<8x128xi32>
      %25 = arith.cmpi eq, %23, %24 : vector<8x128xi32>
      %c1_i32 = arith.constant 1 : i32
      %26 = vector.broadcast %c1_i32 : i32 to vector<8x128xi32>
      %27 = arith.cmpi eq, %23, %26 : vector<8x128xi32>
      %cst_19 = arith.constant 0.000000e+00 : f32
      %28 = vector.shape_cast %22 : vector<1x128xf32> to vector<1x128xf32>
      %29 = vector.broadcast %28 : vector<1x128xf32> to vector<8x128xf32>
      %30 = vector.broadcast %cst_19 : f32 to vector<8x128xf32>
      %31 = arith.select %27, %29, %30 : vector<8x128xi1>, vector<8x128xf32>
      %32 = vector.shape_cast %19 : vector<1x128xf32> to vector<1x128xf32>
      %33 = vector.broadcast %32 : vector<1x128xf32> to vector<8x128xf32>
      %34 = arith.select %25, %33, %31 : vector<8x128xi1>, vector<8x128xf32>
      %c0_20 = arith.constant 0 : index
      %c0_21 = arith.constant 0 : index
      %35 = vector.load %arg7[%c0_20, %c0_21] : memref<8x128xf32, #tpu.memory_space<vmem>>, vector<8x128xf32>
      tpu.vector_store %arg7[%c0_20, %c0_21], %34 {strides = array<i32>} : memref<8x128xf32, #tpu.memory_space<vmem>>, vector<8x128xf32>,
    } else {
    }
    return
  }
  func.func @transform_0(%arg0: i32, %arg1: i32, %arg2: i32) -> (i32, i32) {
    %c0_i32 = arith.constant 0 : i32
    return %arg0, %arg2 : i32, i32
  }
  func.func @transform_1(%arg0: i32, %arg1: i32, %arg2: i32) -> (i32, i32) {
    %c0_i32 = arith.constant 0 : i32
    return %arg2, %arg1 : i32, i32
  }
  func.func @transform_2(%arg0: i32, %arg1: i32, %arg2: i32) -> (i32, i32) {
    %c0_i32 = arith.constant 0 : i32
    %c0_i32_0 = arith.constant 0 : i32
    return %c0_i32, %arg1 : i32, i32
  }
  func.func @transform_3(%arg0: i32, %arg1: i32, %arg2: i32) -> (i32, i32) {
    %c0_i32 = arith.constant 0 : i32
    return %arg0, %arg1 : i32, i32
  }
  func.func @transform_4(%arg0: i32, %arg1: i32, %arg2: i32) -> (i32, i32) {
    %c0_i32 = arith.constant 0 : i32
    return %arg0, %arg1 : i32, i32
  }
}

module attributes {stable_mosaic.version = 11 : i64} {
  func.func @_bn_kernel(%arg0: i32, %arg1: memref<16x128xbf16, #tpu.memory_space<vmem>>, %arg2: memref<1x128xf32, #tpu.memory_space<vmem>>, %arg3: memref<1x128xf32, #tpu.memory_space<vmem>>, %arg4: memref<16x128xbf16, #tpu.memory_space<vmem>>) attributes {dimension_semantics = [#tpu.dimension_semantics<parallel>], iteration_bounds = array<i64: 1>, scalar_prefetch = 0 : i64, scratch_operands = 0 : i64, tpu.core_type = #tpu.core_type<tc>, window_params = [{transform_indices = @transform_0, window_bounds = array<i64: 16, 128>}, {pipeline_mode = #tpu.pipeline_mode<synchronous>, transform_indices = @transform_1, window_bounds = array<i64: 1, 128>}, {pipeline_mode = #tpu.pipeline_mode<synchronous>, transform_indices = @transform_2, window_bounds = array<i64: 1, 128>}, {transform_indices = @transform_3, window_bounds = array<i64: 16, 128>}]} {
    %c0 = arith.constant 0 : index
    %c0_0 = arith.constant 0 : index
    %0 = vector.load %arg1[%c0, %c0_0] : memref<16x128xbf16, #tpu.memory_space<vmem>>, vector<16x128xbf16>
    %1 = arith.extf %0 : vector<16x128xbf16> to vector<16x128xf32>
    %c0_1 = arith.constant 0 : index
    %c0_2 = arith.constant 0 : index
    %2 = vector.load %arg2[%c0_1, %c0_2] : memref<1x128xf32, #tpu.memory_space<vmem>>, vector<1x128xf32>
    %3 = vector.broadcast %2 : vector<1x128xf32> to vector<16x128xf32>
    %4 = arith.mulf %1, %3 : vector<16x128xf32>
    %c0_3 = arith.constant 0 : index
    %c0_4 = arith.constant 0 : index
    %5 = vector.load %arg3[%c0_3, %c0_4] : memref<1x128xf32, #tpu.memory_space<vmem>>, vector<1x128xf32>
    %6 = vector.broadcast %5 : vector<1x128xf32> to vector<16x128xf32>
    %7 = arith.addf %4, %6 : vector<16x128xf32>
    %cst = arith.constant 0.000000e+00 : f32
    %8 = vector.broadcast %cst : f32 to vector<16x128xf32>
    %9 = arith.maximumf %7, %8 : vector<16x128xf32>
    %10 = arith.truncf %9 : vector<16x128xf32> to vector<16x128xbf16>
    %c0_5 = arith.constant 0 : index
    %c0_6 = arith.constant 0 : index
    %11 = vector.load %arg4[%c0_5, %c0_6] : memref<16x128xbf16, #tpu.memory_space<vmem>>, vector<16x128xbf16>
    tpu.vector_store %arg4[%c0_5, %c0_6], %10 {strides = array<i32>} : memref<16x128xbf16, #tpu.memory_space<vmem>>, vector<16x128xbf16>,
    return
  }
  func.func @transform_0(%arg0: i32) -> (i32, i32) {
    %c0_i32 = arith.constant 0 : i32
    %c0_i32_0 = arith.constant 0 : i32
    return %arg0, %c0_i32 : i32, i32
  }
  func.func @transform_1(%arg0: i32) -> (i32, i32) {
    %c0_i32 = arith.constant 0 : i32
    %c0_i32_0 = arith.constant 0 : i32
    %c0_i32_1 = arith.constant 0 : i32
    return %c0_i32, %c0_i32_0 : i32, i32
  }
  func.func @transform_2(%arg0: i32) -> (i32, i32) {
    %c0_i32 = arith.constant 0 : i32
    %c0_i32_0 = arith.constant 0 : i32
    %c0_i32_1 = arith.constant 0 : i32
    return %c0_i32, %c0_i32_0 : i32, i32
  }
  func.func @transform_3(%arg0: i32) -> (i32, i32) {
    %c0_i32 = arith.constant 0 : i32
    %c0_i32_0 = arith.constant 0 : i32
    return %arg0, %c0_i32 : i32, i32
  }
}

module attributes {stable_mosaic.version = 11 : i64} {
  func.func @_bn_kernel(%arg0: i32, %arg1: memref<8x128xbf16, #tpu.memory_space<vmem>>, %arg2: memref<1x128xf32, #tpu.memory_space<vmem>>, %arg3: memref<1x128xf32, #tpu.memory_space<vmem>>, %arg4: memref<8x128xbf16, #tpu.memory_space<vmem>>) attributes {dimension_semantics = [#tpu.dimension_semantics<parallel>], iteration_bounds = array<i64: 1>, scalar_prefetch = 0 : i64, scratch_operands = 0 : i64, tpu.core_type = #tpu.core_type<tc>, window_params = [{transform_indices = @transform_0, window_bounds = array<i64: 8, 128>}, {pipeline_mode = #tpu.pipeline_mode<synchronous>, transform_indices = @transform_1, window_bounds = array<i64: 1, 128>}, {pipeline_mode = #tpu.pipeline_mode<synchronous>, transform_indices = @transform_2, window_bounds = array<i64: 1, 128>}, {transform_indices = @transform_3, window_bounds = array<i64: 8, 128>}]} {
    %c0 = arith.constant 0 : index
    %c0_0 = arith.constant 0 : index
    %0 = vector.load %arg1[%c0, %c0_0] : memref<8x128xbf16, #tpu.memory_space<vmem>>, vector<8x128xbf16>
    %1 = arith.extf %0 : vector<8x128xbf16> to vector<8x128xf32>
    %c0_1 = arith.constant 0 : index
    %c0_2 = arith.constant 0 : index
    %2 = vector.load %arg2[%c0_1, %c0_2] : memref<1x128xf32, #tpu.memory_space<vmem>>, vector<1x128xf32>
    %3 = vector.broadcast %2 : vector<1x128xf32> to vector<8x128xf32>
    %4 = arith.mulf %1, %3 : vector<8x128xf32>
    %c0_3 = arith.constant 0 : index
    %c0_4 = arith.constant 0 : index
    %5 = vector.load %arg3[%c0_3, %c0_4] : memref<1x128xf32, #tpu.memory_space<vmem>>, vector<1x128xf32>
    %6 = vector.broadcast %5 : vector<1x128xf32> to vector<8x128xf32>
    %7 = arith.addf %4, %6 : vector<8x128xf32>
    %cst = arith.constant 0.000000e+00 : f32
    %8 = vector.broadcast %cst : f32 to vector<8x128xf32>
    %9 = arith.maximumf %7, %8 : vector<8x128xf32>
    %10 = arith.truncf %9 : vector<8x128xf32> to vector<8x128xbf16>
    %c0_5 = arith.constant 0 : index
    %c0_6 = arith.constant 0 : index
    %11 = vector.load %arg4[%c0_5, %c0_6] : memref<8x128xbf16, #tpu.memory_space<vmem>>, vector<8x128xbf16>
    tpu.vector_store %arg4[%c0_5, %c0_6], %10 {strides = array<i32>} : memref<8x128xbf16, #tpu.memory_space<vmem>>, vector<8x128xbf16>,
    return
  }
  func.func @transform_0(%arg0: i32) -> (i32, i32) {
    %c0_i32 = arith.constant 0 : i32
    %c0_i32_0 = arith.constant 0 : i32
    return %arg0, %c0_i32 : i32, i32
  }
  func.func @transform_1(%arg0: i32) -> (i32, i32) {
    %c0_i32 = arith.constant 0 : i32
    %c0_i32_0 = arith.constant 0 : i32
    %c0_i32_1 = arith.constant 0 : i32
    return %c0_i32, %c0_i32_0 : i32, i32
  }
  func.func @transform_2(%arg0: i32) -> (i32, i32) {
    %c0_i32 = arith.constant 0 : i32
    %c0_i32_0 = arith.constant 0 : i32
    %c0_i32_1 = arith.constant 0 : i32
    return %c0_i32, %c0_i32_0 : i32, i32
  }
  func.func @transform_3(%arg0: i32) -> (i32, i32) {
    %c0_i32 = arith.constant 0 : i32
    %c0_i32_0 = arith.constant 0 : i32
    return %arg0, %c0_i32 : i32, i32
  }
}

module attributes {stable_mosaic.version = 11 : i64} {
  func.func @_matmul_kernel(%arg0: i32, %arg1: i32, %arg2: i32, %arg3: memref<32x256xbf16, #tpu.memory_space<vmem>>, %arg4: memref<256x128xbf16, #tpu.memory_space<vmem>>, %arg5: memref<1x128xf32, #tpu.memory_space<vmem>>, %arg6: memref<32x128xbf16, #tpu.memory_space<vmem>>, %arg7: memref<8x128xf32, #tpu.memory_space<vmem>>, %arg8: memref<32x128xf32, #tpu.memory_space<vmem>>) attributes {dimension_semantics = [#tpu.dimension_semantics<parallel>, #tpu.dimension_semantics<parallel>, #tpu.dimension_semantics<arbitrary>], iteration_bounds = array<i64: 1, 1, 1>, scalar_prefetch = 0 : i64, scratch_operands = 1 : i64, tpu.core_type = #tpu.core_type<tc>, window_params = [{transform_indices = @transform_0, window_bounds = array<i64: 32, 256>}, {transform_indices = @transform_1, window_bounds = array<i64: 256, 128>}, {transform_indices = @transform_2, window_bounds = array<i64: 1, 128>}, {transform_indices = @transform_3, window_bounds = array<i64: 32, 128>}, {transform_indices = @transform_4, window_bounds = array<i64: 8, 128>}]} {
    %c0_i32 = arith.constant 0 : i32
    %0 = arith.cmpi eq, %arg2, %c0_i32 : i32
    %1 = arith.extui %0 : i1 to i32
    %c0_i32_0 = arith.constant 0 : i32
    %2 = arith.cmpi ne, %1, %c0_i32_0 : i32
    scf.if %2 {
      %cst_10 = arith.constant 0.000000e+00 : f32
      %12 = vector.broadcast %cst_10 : f32 to vector<32x128xf32>
      %c0_11 = arith.constant 0 : index
      %c0_12 = arith.constant 0 : index
      %13 = vector.load %arg8[%c0_11, %c0_12] : memref<32x128xf32, #tpu.memory_space<vmem>>, vector<32x128xf32>
      tpu.vector_store %arg8[%c0_11, %c0_12], %12 {strides = array<i32>} : memref<32x128xf32, #tpu.memory_space<vmem>>, vector<32x128xf32>,
    } else {
    }
    %c0 = arith.constant 0 : index
    %c0_1 = arith.constant 0 : index
    %3 = vector.load %arg8[%c0, %c0_1] : memref<32x128xf32, #tpu.memory_space<vmem>>, vector<32x128xf32>
    %c0_2 = arith.constant 0 : index
    %c0_3 = arith.constant 0 : index
    %4 = vector.load %arg3[%c0_2, %c0_3] : memref<32x256xbf16, #tpu.memory_space<vmem>>, vector<32x256xbf16>
    %c0_4 = arith.constant 0 : index
    %c0_5 = arith.constant 0 : index
    %5 = vector.load %arg4[%c0_4, %c0_5] : memref<256x128xbf16, #tpu.memory_space<vmem>>, vector<256x128xbf16>
    %cst = arith.constant dense<0.000000e+00> : vector<32x128xf32>
    %6 = tpu.matmul %4, %5, %cst {dimension_numbers = #tpu.dot_dimension_numbers<[1], [0], [0], [1], [0, 0, 1, 1], [], []>} : vector<32x256xbf16>, vector<256x128xbf16>, vector<32x128xf32> -> vector<32x128xf32>
    %7 = arith.addf %3, %6 : vector<32x128xf32>
    %c0_6 = arith.constant 0 : index
    %c0_7 = arith.constant 0 : index
    %8 = vector.load %arg8[%c0_6, %c0_7] : memref<32x128xf32, #tpu.memory_space<vmem>>, vector<32x128xf32>
    tpu.vector_store %arg8[%c0_6, %c0_7], %7 {strides = array<i32>} : memref<32x128xf32, #tpu.memory_space<vmem>>, vector<32x128xf32>,
    %c0_i32_8 = arith.constant 0 : i32
    %9 = arith.cmpi eq, %arg2, %c0_i32_8 : i32
    %10 = arith.extui %9 : i1 to i32
    %c0_i32_9 = arith.constant 0 : i32
    %11 = arith.cmpi ne, %10, %c0_i32_9 : i32
    scf.if %11 {
      %c0_10 = arith.constant 0 : index
      %c0_11 = arith.constant 0 : index
      %12 = vector.load %arg8[%c0_10, %c0_11] : memref<32x128xf32, #tpu.memory_space<vmem>>, vector<32x128xf32>
      %c0_12 = arith.constant 0 : index
      %c0_13 = arith.constant 0 : index
      %13 = vector.load %arg5[%c0_12, %c0_13] : memref<1x128xf32, #tpu.memory_space<vmem>>, vector<1x128xf32>
      %14 = vector.broadcast %13 : vector<1x128xf32> to vector<32x128xf32>
      %15 = arith.addf %12, %14 : vector<32x128xf32>
      %16 = arith.truncf %15 : vector<32x128xf32> to vector<32x128xbf16>
      %c0_14 = arith.constant 0 : index
      %c0_15 = arith.constant 0 : index
      %17 = vector.load %arg6[%c0_14, %c0_15] : memref<32x128xbf16, #tpu.memory_space<vmem>>, vector<32x128xbf16>
      tpu.vector_store %arg6[%c0_14, %c0_15], %16 {strides = array<i32>} : memref<32x128xbf16, #tpu.memory_space<vmem>>, vector<32x128xbf16>,
      %cst_16 = arith.constant dense<0.000000e+00> : vector<128xf32>
      %18 = vector.multi_reduction <add>, %12, %cst_16 [0] : vector<32x128xf32> to vector<128xf32>
      %19 = vector.shape_cast %18 : vector<128xf32> to vector<1x128xf32>
      %20 = arith.mulf %12, %12 : vector<32x128xf32>
      %cst_17 = arith.constant dense<0.000000e+00> : vector<128xf32>
      %21 = vector.multi_reduction <add>, %20, %cst_17 [0] : vector<32x128xf32> to vector<128xf32>
      %22 = vector.shape_cast %21 : vector<128xf32> to vector<1x128xf32>
      %23 = tpu.iota {dimensions = array<i32: 0>} : vector<8x128xi32>
      %c0_i32_18 = arith.constant 0 : i32
      %24 = vector.broadcast %c0_i32_18 : i32 to vector<8x128xi32>
      %25 = arith.cmpi eq, %23, %24 : vector<8x128xi32>
      %c1_i32 = arith.constant 1 : i32
      %26 = vector.broadcast %c1_i32 : i32 to vector<8x128xi32>
      %27 = arith.cmpi eq, %23, %26 : vector<8x128xi32>
      %cst_19 = arith.constant 0.000000e+00 : f32
      %28 = vector.shape_cast %22 : vector<1x128xf32> to vector<1x128xf32>
      %29 = vector.broadcast %28 : vector<1x128xf32> to vector<8x128xf32>
      %30 = vector.broadcast %cst_19 : f32 to vector<8x128xf32>
      %31 = arith.select %27, %29, %30 : vector<8x128xi1>, vector<8x128xf32>
      %32 = vector.shape_cast %19 : vector<1x128xf32> to vector<1x128xf32>
      %33 = vector.broadcast %32 : vector<1x128xf32> to vector<8x128xf32>
      %34 = arith.select %25, %33, %31 : vector<8x128xi1>, vector<8x128xf32>
      %c0_20 = arith.constant 0 : index
      %c0_21 = arith.constant 0 : index
      %35 = vector.load %arg7[%c0_20, %c0_21] : memref<8x128xf32, #tpu.memory_space<vmem>>, vector<8x128xf32>
      tpu.vector_store %arg7[%c0_20, %c0_21], %34 {strides = array<i32>} : memref<8x128xf32, #tpu.memory_space<vmem>>, vector<8x128xf32>,
    } else {
    }
    return
  }
  func.func @transform_0(%arg0: i32, %arg1: i32, %arg2: i32) -> (i32, i32) {
    %c0_i32 = arith.constant 0 : i32
    return %arg0, %arg2 : i32, i32
  }
  func.func @transform_1(%arg0: i32, %arg1: i32, %arg2: i32) -> (i32, i32) {
    %c0_i32 = arith.constant 0 : i32
    return %arg2, %arg1 : i32, i32
  }
  func.func @transform_2(%arg0: i32, %arg1: i32, %arg2: i32) -> (i32, i32) {
    %c0_i32 = arith.constant 0 : i32
    %c0_i32_0 = arith.constant 0 : i32
    return %c0_i32, %arg1 : i32, i32
  }
  func.func @transform_3(%arg0: i32, %arg1: i32, %arg2: i32) -> (i32, i32) {
    %c0_i32 = arith.constant 0 : i32
    return %arg0, %arg1 : i32, i32
  }
  func.func @transform_4(%arg0: i32, %arg1: i32, %arg2: i32) -> (i32, i32) {
    %c0_i32 = arith.constant 0 : i32
    return %arg0, %arg1 : i32, i32
  }
}

module attributes {stable_mosaic.version = 11 : i64} {
  func.func @_matmul_kernel(%arg0: i32, %arg1: i32, %arg2: i32, %arg3: memref<32x384xbf16, #tpu.memory_space<vmem>>, %arg4: memref<384x128xbf16, #tpu.memory_space<vmem>>, %arg5: memref<1x128xf32, #tpu.memory_space<vmem>>, %arg6: memref<32x128xbf16, #tpu.memory_space<vmem>>, %arg7: memref<8x128xf32, #tpu.memory_space<vmem>>, %arg8: memref<32x128xf32, #tpu.memory_space<vmem>>) attributes {dimension_semantics = [#tpu.dimension_semantics<parallel>, #tpu.dimension_semantics<parallel>, #tpu.dimension_semantics<arbitrary>], iteration_bounds = array<i64: 1, 1, 1>, scalar_prefetch = 0 : i64, scratch_operands = 1 : i64, tpu.core_type = #tpu.core_type<tc>, window_params = [{transform_indices = @transform_0, window_bounds = array<i64: 32, 384>}, {transform_indices = @transform_1, window_bounds = array<i64: 384, 128>}, {transform_indices = @transform_2, window_bounds = array<i64: 1, 128>}, {transform_indices = @transform_3, window_bounds = array<i64: 32, 128>}, {transform_indices = @transform_4, window_bounds = array<i64: 8, 128>}]} {
    %c0_i32 = arith.constant 0 : i32
    %0 = arith.cmpi eq, %arg2, %c0_i32 : i32
    %1 = arith.extui %0 : i1 to i32
    %c0_i32_0 = arith.constant 0 : i32
    %2 = arith.cmpi ne, %1, %c0_i32_0 : i32
    scf.if %2 {
      %cst_10 = arith.constant 0.000000e+00 : f32
      %12 = vector.broadcast %cst_10 : f32 to vector<32x128xf32>
      %c0_11 = arith.constant 0 : index
      %c0_12 = arith.constant 0 : index
      %13 = vector.load %arg8[%c0_11, %c0_12] : memref<32x128xf32, #tpu.memory_space<vmem>>, vector<32x128xf32>
      tpu.vector_store %arg8[%c0_11, %c0_12], %12 {strides = array<i32>} : memref<32x128xf32, #tpu.memory_space<vmem>>, vector<32x128xf32>,
    } else {
    }
    %c0 = arith.constant 0 : index
    %c0_1 = arith.constant 0 : index
    %3 = vector.load %arg8[%c0, %c0_1] : memref<32x128xf32, #tpu.memory_space<vmem>>, vector<32x128xf32>
    %c0_2 = arith.constant 0 : index
    %c0_3 = arith.constant 0 : index
    %4 = vector.load %arg3[%c0_2, %c0_3] : memref<32x384xbf16, #tpu.memory_space<vmem>>, vector<32x384xbf16>
    %c0_4 = arith.constant 0 : index
    %c0_5 = arith.constant 0 : index
    %5 = vector.load %arg4[%c0_4, %c0_5] : memref<384x128xbf16, #tpu.memory_space<vmem>>, vector<384x128xbf16>
    %cst = arith.constant dense<0.000000e+00> : vector<32x128xf32>
    %6 = tpu.matmul %4, %5, %cst {dimension_numbers = #tpu.dot_dimension_numbers<[1], [0], [0], [1], [0, 0, 1, 1], [], []>} : vector<32x384xbf16>, vector<384x128xbf16>, vector<32x128xf32> -> vector<32x128xf32>
    %7 = arith.addf %3, %6 : vector<32x128xf32>
    %c0_6 = arith.constant 0 : index
    %c0_7 = arith.constant 0 : index
    %8 = vector.load %arg8[%c0_6, %c0_7] : memref<32x128xf32, #tpu.memory_space<vmem>>, vector<32x128xf32>
    tpu.vector_store %arg8[%c0_6, %c0_7], %7 {strides = array<i32>} : memref<32x128xf32, #tpu.memory_space<vmem>>, vector<32x128xf32>,
    %c0_i32_8 = arith.constant 0 : i32
    %9 = arith.cmpi eq, %arg2, %c0_i32_8 : i32
    %10 = arith.extui %9 : i1 to i32
    %c0_i32_9 = arith.constant 0 : i32
    %11 = arith.cmpi ne, %10, %c0_i32_9 : i32
    scf.if %11 {
      %c0_10 = arith.constant 0 : index
      %c0_11 = arith.constant 0 : index
      %12 = vector.load %arg8[%c0_10, %c0_11] : memref<32x128xf32, #tpu.memory_space<vmem>>, vector<32x128xf32>
      %c0_12 = arith.constant 0 : index
      %c0_13 = arith.constant 0 : index
      %13 = vector.load %arg5[%c0_12, %c0_13] : memref<1x128xf32, #tpu.memory_space<vmem>>, vector<1x128xf32>
      %14 = vector.broadcast %13 : vector<1x128xf32> to vector<32x128xf32>
      %15 = arith.addf %12, %14 : vector<32x128xf32>
      %16 = arith.truncf %15 : vector<32x128xf32> to vector<32x128xbf16>
      %c0_14 = arith.constant 0 : index
      %c0_15 = arith.constant 0 : index
      %17 = vector.load %arg6[%c0_14, %c0_15] : memref<32x128xbf16, #tpu.memory_space<vmem>>, vector<32x128xbf16>
      tpu.vector_store %arg6[%c0_14, %c0_15], %16 {strides = array<i32>} : memref<32x128xbf16, #tpu.memory_space<vmem>>, vector<32x128xbf16>,
      %cst_16 = arith.constant dense<0.000000e+00> : vector<128xf32>
      %18 = vector.multi_reduction <add>, %12, %cst_16 [0] : vector<32x128xf32> to vector<128xf32>
      %19 = vector.shape_cast %18 : vector<128xf32> to vector<1x128xf32>
      %20 = arith.mulf %12, %12 : vector<32x128xf32>
      %cst_17 = arith.constant dense<0.000000e+00> : vector<128xf32>
      %21 = vector.multi_reduction <add>, %20, %cst_17 [0] : vector<32x128xf32> to vector<128xf32>
      %22 = vector.shape_cast %21 : vector<128xf32> to vector<1x128xf32>
      %23 = tpu.iota {dimensions = array<i32: 0>} : vector<8x128xi32>
      %c0_i32_18 = arith.constant 0 : i32
      %24 = vector.broadcast %c0_i32_18 : i32 to vector<8x128xi32>
      %25 = arith.cmpi eq, %23, %24 : vector<8x128xi32>
      %c1_i32 = arith.constant 1 : i32
      %26 = vector.broadcast %c1_i32 : i32 to vector<8x128xi32>
      %27 = arith.cmpi eq, %23, %26 : vector<8x128xi32>
      %cst_19 = arith.constant 0.000000e+00 : f32
      %28 = vector.shape_cast %22 : vector<1x128xf32> to vector<1x128xf32>
      %29 = vector.broadcast %28 : vector<1x128xf32> to vector<8x128xf32>
      %30 = vector.broadcast %cst_19 : f32 to vector<8x128xf32>
      %31 = arith.select %27, %29, %30 : vector<8x128xi1>, vector<8x128xf32>
      %32 = vector.shape_cast %19 : vector<1x128xf32> to vector<1x128xf32>
      %33 = vector.broadcast %32 : vector<1x128xf32> to vector<8x128xf32>
      %34 = arith.select %25, %33, %31 : vector<8x128xi1>, vector<8x128xf32>
      %c0_20 = arith.constant 0 : index
      %c0_21 = arith.constant 0 : index
      %35 = vector.load %arg7[%c0_20, %c0_21] : memref<8x128xf32, #tpu.memory_space<vmem>>, vector<8x128xf32>
      tpu.vector_store %arg7[%c0_20, %c0_21], %34 {strides = array<i32>} : memref<8x128xf32, #tpu.memory_space<vmem>>, vector<8x128xf32>,
    } else {
    }
    return
  }
  func.func @transform_0(%arg0: i32, %arg1: i32, %arg2: i32) -> (i32, i32) {
    %c0_i32 = arith.constant 0 : i32
    return %arg0, %arg2 : i32, i32
  }
  func.func @transform_1(%arg0: i32, %arg1: i32, %arg2: i32) -> (i32, i32) {
    %c0_i32 = arith.constant 0 : i32
    return %arg2, %arg1 : i32, i32
  }
  func.func @transform_2(%arg0: i32, %arg1: i32, %arg2: i32) -> (i32, i32) {
    %c0_i32 = arith.constant 0 : i32
    %c0_i32_0 = arith.constant 0 : i32
    return %c0_i32, %arg1 : i32, i32
  }
  func.func @transform_3(%arg0: i32, %arg1: i32, %arg2: i32) -> (i32, i32) {
    %c0_i32 = arith.constant 0 : i32
    return %arg0, %arg1 : i32, i32
  }
  func.func @transform_4(%arg0: i32, %arg1: i32, %arg2: i32) -> (i32, i32) {
    %c0_i32 = arith.constant 0 : i32
    return %arg0, %arg1 : i32, i32
  }
}

module attributes {stable_mosaic.version = 11 : i64} {
  func.func @_bn_res_kernel(%arg0: i32, %arg1: memref<8x128xbf16, #tpu.memory_space<vmem>>, %arg2: memref<1x128xf32, #tpu.memory_space<vmem>>, %arg3: memref<1x128xf32, #tpu.memory_space<vmem>>, %arg4: memref<8x128xbf16, #tpu.memory_space<vmem>>, %arg5: memref<8x128xbf16, #tpu.memory_space<vmem>>) attributes {dimension_semantics = [#tpu.dimension_semantics<parallel>], iteration_bounds = array<i64: 1>, scalar_prefetch = 0 : i64, scratch_operands = 0 : i64, tpu.core_type = #tpu.core_type<tc>, window_params = [{transform_indices = @transform_0, window_bounds = array<i64: 8, 128>}, {pipeline_mode = #tpu.pipeline_mode<synchronous>, transform_indices = @transform_1, window_bounds = array<i64: 1, 128>}, {pipeline_mode = #tpu.pipeline_mode<synchronous>, transform_indices = @transform_2, window_bounds = array<i64: 1, 128>}, {transform_indices = @transform_3, window_bounds = array<i64: 8, 128>}, {transform_indices = @transform_4, window_bounds = array<i64: 8, 128>}]} {
    %c0 = arith.constant 0 : index
    %c0_0 = arith.constant 0 : index
    %0 = vector.load %arg1[%c0, %c0_0] : memref<8x128xbf16, #tpu.memory_space<vmem>>, vector<8x128xbf16>
    %1 = arith.extf %0 : vector<8x128xbf16> to vector<8x128xf32>
    %c0_1 = arith.constant 0 : index
    %c0_2 = arith.constant 0 : index
    %2 = vector.load %arg2[%c0_1, %c0_2] : memref<1x128xf32, #tpu.memory_space<vmem>>, vector<1x128xf32>
    %3 = vector.broadcast %2 : vector<1x128xf32> to vector<8x128xf32>
    %4 = arith.mulf %1, %3 : vector<8x128xf32>
    %c0_3 = arith.constant 0 : index
    %c0_4 = arith.constant 0 : index
    %5 = vector.load %arg3[%c0_3, %c0_4] : memref<1x128xf32, #tpu.memory_space<vmem>>, vector<1x128xf32>
    %6 = vector.broadcast %5 : vector<1x128xf32> to vector<8x128xf32>
    %7 = arith.addf %4, %6 : vector<8x128xf32>
    %c0_5 = arith.constant 0 : index
    %c0_6 = arith.constant 0 : index
    %8 = vector.load %arg4[%c0_5, %c0_6] : memref<8x128xbf16, #tpu.memory_space<vmem>>, vector<8x128xbf16>
    %9 = arith.extf %8 : vector<8x128xbf16> to vector<8x128xf32>
    %10 = arith.addf %7, %9 : vector<8x128xf32>
    %11 = arith.truncf %10 : vector<8x128xf32> to vector<8x128xbf16>
    %c0_7 = arith.constant 0 : index
    %c0_8 = arith.constant 0 : index
    %12 = vector.load %arg5[%c0_7, %c0_8] : memref<8x128xbf16, #tpu.memory_space<vmem>>, vector<8x128xbf16>
    tpu.vector_store %arg5[%c0_7, %c0_8], %11 {strides = array<i32>} : memref<8x128xbf16, #tpu.memory_space<vmem>>, vector<8x128xbf16>,
    return
  }
  func.func @transform_0(%arg0: i32) -> (i32, i32) {
    %c0_i32 = arith.constant 0 : i32
    %c0_i32_0 = arith.constant 0 : i32
    return %arg0, %c0_i32 : i32, i32
  }
  func.func @transform_1(%arg0: i32) -> (i32, i32) {
    %c0_i32 = arith.constant 0 : i32
    %c0_i32_0 = arith.constant 0 : i32
    %c0_i32_1 = arith.constant 0 : i32
    return %c0_i32, %c0_i32_0 : i32, i32
  }
  func.func @transform_2(%arg0: i32) -> (i32, i32) {
    %c0_i32 = arith.constant 0 : i32
    %c0_i32_0 = arith.constant 0 : i32
    %c0_i32_1 = arith.constant 0 : i32
    return %c0_i32, %c0_i32_0 : i32, i32
  }
  func.func @transform_3(%arg0: i32) -> (i32, i32) {
    %c0_i32 = arith.constant 0 : i32
    %c0_i32_0 = arith.constant 0 : i32
    return %arg0, %c0_i32 : i32, i32
  }
  func.func @transform_4(%arg0: i32) -> (i32, i32) {
    %c0_i32 = arith.constant 0 : i32
    %c0_i32_0 = arith.constant 0 : i32
    return %arg0, %c0_i32 : i32, i32
  }
}

module attributes {stable_mosaic.version = 11 : i64} {
  func.func @_matmul_kernel(%arg0: i32, %arg1: i32, %arg2: i32, %arg3: memref<32x128xbf16, #tpu.memory_space<vmem>>, %arg4: memref<128x128xbf16, #tpu.memory_space<vmem>>, %arg5: memref<1x128xf32, #tpu.memory_space<vmem>>, %arg6: memref<32x128xbf16, #tpu.memory_space<vmem>>, %arg7: memref<8x128xf32, #tpu.memory_space<vmem>>, %arg8: memref<32x128xf32, #tpu.memory_space<vmem>>) attributes {dimension_semantics = [#tpu.dimension_semantics<parallel>, #tpu.dimension_semantics<parallel>, #tpu.dimension_semantics<arbitrary>], iteration_bounds = array<i64: 1, 1, 1>, scalar_prefetch = 0 : i64, scratch_operands = 1 : i64, tpu.core_type = #tpu.core_type<tc>, window_params = [{transform_indices = @transform_0, window_bounds = array<i64: 32, 128>}, {transform_indices = @transform_1, window_bounds = array<i64: 128, 128>}, {transform_indices = @transform_2, window_bounds = array<i64: 1, 128>}, {transform_indices = @transform_3, window_bounds = array<i64: 32, 128>}, {transform_indices = @transform_4, window_bounds = array<i64: 8, 128>}]} {
    %c0_i32 = arith.constant 0 : i32
    %0 = arith.cmpi eq, %arg2, %c0_i32 : i32
    %1 = arith.extui %0 : i1 to i32
    %c0_i32_0 = arith.constant 0 : i32
    %2 = arith.cmpi ne, %1, %c0_i32_0 : i32
    scf.if %2 {
      %cst_10 = arith.constant 0.000000e+00 : f32
      %12 = vector.broadcast %cst_10 : f32 to vector<32x128xf32>
      %c0_11 = arith.constant 0 : index
      %c0_12 = arith.constant 0 : index
      %13 = vector.load %arg8[%c0_11, %c0_12] : memref<32x128xf32, #tpu.memory_space<vmem>>, vector<32x128xf32>
      tpu.vector_store %arg8[%c0_11, %c0_12], %12 {strides = array<i32>} : memref<32x128xf32, #tpu.memory_space<vmem>>, vector<32x128xf32>,
    } else {
    }
    %c0 = arith.constant 0 : index
    %c0_1 = arith.constant 0 : index
    %3 = vector.load %arg8[%c0, %c0_1] : memref<32x128xf32, #tpu.memory_space<vmem>>, vector<32x128xf32>
    %c0_2 = arith.constant 0 : index
    %c0_3 = arith.constant 0 : index
    %4 = vector.load %arg3[%c0_2, %c0_3] : memref<32x128xbf16, #tpu.memory_space<vmem>>, vector<32x128xbf16>
    %c0_4 = arith.constant 0 : index
    %c0_5 = arith.constant 0 : index
    %5 = vector.load %arg4[%c0_4, %c0_5] : memref<128x128xbf16, #tpu.memory_space<vmem>>, vector<128x128xbf16>
    %cst = arith.constant dense<0.000000e+00> : vector<32x128xf32>
    %6 = tpu.matmul %4, %5, %cst {dimension_numbers = #tpu.dot_dimension_numbers<[1], [0], [0], [1], [0, 0, 1, 1], [], []>} : vector<32x128xbf16>, vector<128x128xbf16>, vector<32x128xf32> -> vector<32x128xf32>
    %7 = arith.addf %3, %6 : vector<32x128xf32>
    %c0_6 = arith.constant 0 : index
    %c0_7 = arith.constant 0 : index
    %8 = vector.load %arg8[%c0_6, %c0_7] : memref<32x128xf32, #tpu.memory_space<vmem>>, vector<32x128xf32>
    tpu.vector_store %arg8[%c0_6, %c0_7], %7 {strides = array<i32>} : memref<32x128xf32, #tpu.memory_space<vmem>>, vector<32x128xf32>,
    %c0_i32_8 = arith.constant 0 : i32
    %9 = arith.cmpi eq, %arg2, %c0_i32_8 : i32
    %10 = arith.extui %9 : i1 to i32
    %c0_i32_9 = arith.constant 0 : i32
    %11 = arith.cmpi ne, %10, %c0_i32_9 : i32
    scf.if %11 {
      %c0_10 = arith.constant 0 : index
      %c0_11 = arith.constant 0 : index
      %12 = vector.load %arg8[%c0_10, %c0_11] : memref<32x128xf32, #tpu.memory_space<vmem>>, vector<32x128xf32>
      %c0_12 = arith.constant 0 : index
      %c0_13 = arith.constant 0 : index
      %13 = vector.load %arg5[%c0_12, %c0_13] : memref<1x128xf32, #tpu.memory_space<vmem>>, vector<1x128xf32>
      %14 = vector.broadcast %13 : vector<1x128xf32> to vector<32x128xf32>
      %15 = arith.addf %12, %14 : vector<32x128xf32>
      %16 = arith.truncf %15 : vector<32x128xf32> to vector<32x128xbf16>
      %c0_14 = arith.constant 0 : index
      %c0_15 = arith.constant 0 : index
      %17 = vector.load %arg6[%c0_14, %c0_15] : memref<32x128xbf16, #tpu.memory_space<vmem>>, vector<32x128xbf16>
      tpu.vector_store %arg6[%c0_14, %c0_15], %16 {strides = array<i32>} : memref<32x128xbf16, #tpu.memory_space<vmem>>, vector<32x128xbf16>,
      %cst_16 = arith.constant dense<0.000000e+00> : vector<128xf32>
      %18 = vector.multi_reduction <add>, %12, %cst_16 [0] : vector<32x128xf32> to vector<128xf32>
      %19 = vector.shape_cast %18 : vector<128xf32> to vector<1x128xf32>
      %20 = arith.mulf %12, %12 : vector<32x128xf32>
      %cst_17 = arith.constant dense<0.000000e+00> : vector<128xf32>
      %21 = vector.multi_reduction <add>, %20, %cst_17 [0] : vector<32x128xf32> to vector<128xf32>
      %22 = vector.shape_cast %21 : vector<128xf32> to vector<1x128xf32>
      %23 = tpu.iota {dimensions = array<i32: 0>} : vector<8x128xi32>
      %c0_i32_18 = arith.constant 0 : i32
      %24 = vector.broadcast %c0_i32_18 : i32 to vector<8x128xi32>
      %25 = arith.cmpi eq, %23, %24 : vector<8x128xi32>
      %c1_i32 = arith.constant 1 : i32
      %26 = vector.broadcast %c1_i32 : i32 to vector<8x128xi32>
      %27 = arith.cmpi eq, %23, %26 : vector<8x128xi32>
      %cst_19 = arith.constant 0.000000e+00 : f32
      %28 = vector.shape_cast %22 : vector<1x128xf32> to vector<1x128xf32>
      %29 = vector.broadcast %28 : vector<1x128xf32> to vector<8x128xf32>
      %30 = vector.broadcast %cst_19 : f32 to vector<8x128xf32>
      %31 = arith.select %27, %29, %30 : vector<8x128xi1>, vector<8x128xf32>
      %32 = vector.shape_cast %19 : vector<1x128xf32> to vector<1x128xf32>
      %33 = vector.broadcast %32 : vector<1x128xf32> to vector<8x128xf32>
      %34 = arith.select %25, %33, %31 : vector<8x128xi1>, vector<8x128xf32>
      %c0_20 = arith.constant 0 : index
      %c0_21 = arith.constant 0 : index
      %35 = vector.load %arg7[%c0_20, %c0_21] : memref<8x128xf32, #tpu.memory_space<vmem>>, vector<8x128xf32>
      tpu.vector_store %arg7[%c0_20, %c0_21], %34 {strides = array<i32>} : memref<8x128xf32, #tpu.memory_space<vmem>>, vector<8x128xf32>,
    } else {
    }
    return
  }
  func.func @transform_0(%arg0: i32, %arg1: i32, %arg2: i32) -> (i32, i32) {
    %c0_i32 = arith.constant 0 : i32
    return %arg0, %arg2 : i32, i32
  }
  func.func @transform_1(%arg0: i32, %arg1: i32, %arg2: i32) -> (i32, i32) {
    %c0_i32 = arith.constant 0 : i32
    return %arg2, %arg1 : i32, i32
  }
  func.func @transform_2(%arg0: i32, %arg1: i32, %arg2: i32) -> (i32, i32) {
    %c0_i32 = arith.constant 0 : i32
    %c0_i32_0 = arith.constant 0 : i32
    return %c0_i32, %arg1 : i32, i32
  }
  func.func @transform_3(%arg0: i32, %arg1: i32, %arg2: i32) -> (i32, i32) {
    %c0_i32 = arith.constant 0 : i32
    return %arg0, %arg1 : i32, i32
  }
  func.func @transform_4(%arg0: i32, %arg1: i32, %arg2: i32) -> (i32, i32) {
    %c0_i32 = arith.constant 0 : i32
    return %arg0, %arg1 : i32, i32
  }
}

module attributes {stable_mosaic.version = 11 : i64} {
  func.func @_matmul_kernel(%arg0: i32, %arg1: i32, %arg2: i32, %arg3: memref<512x512xbf16, #tpu.memory_space<vmem>>, %arg4: memref<512x128xbf16, #tpu.memory_space<vmem>>, %arg5: memref<1x128xf32, #tpu.memory_space<vmem>>, %arg6: memref<512x128xbf16, #tpu.memory_space<vmem>>, %arg7: memref<512x128xf32, #tpu.memory_space<vmem>>) attributes {dimension_semantics = [#tpu.dimension_semantics<parallel>, #tpu.dimension_semantics<parallel>, #tpu.dimension_semantics<arbitrary>], iteration_bounds = array<i64: 1, 1, 1>, scalar_prefetch = 0 : i64, scratch_operands = 1 : i64, tpu.core_type = #tpu.core_type<tc>, window_params = [{transform_indices = @transform_0, window_bounds = array<i64: 512, 512>}, {transform_indices = @transform_1, window_bounds = array<i64: 512, 128>}, {transform_indices = @transform_2, window_bounds = array<i64: 1, 128>}, {transform_indices = @transform_3, window_bounds = array<i64: 512, 128>}]} {
    %c0_i32 = arith.constant 0 : i32
    %0 = arith.cmpi eq, %arg2, %c0_i32 : i32
    %1 = arith.extui %0 : i1 to i32
    %c0_i32_0 = arith.constant 0 : i32
    %2 = arith.cmpi ne, %1, %c0_i32_0 : i32
    scf.if %2 {
      %cst_10 = arith.constant 0.000000e+00 : f32
      %12 = vector.broadcast %cst_10 : f32 to vector<512x128xf32>
      %c0_11 = arith.constant 0 : index
      %c0_12 = arith.constant 0 : index
      %13 = vector.load %arg7[%c0_11, %c0_12] : memref<512x128xf32, #tpu.memory_space<vmem>>, vector<512x128xf32>
      tpu.vector_store %arg7[%c0_11, %c0_12], %12 {strides = array<i32>} : memref<512x128xf32, #tpu.memory_space<vmem>>, vector<512x128xf32>,
    } else {
    }
    %c0 = arith.constant 0 : index
    %c0_1 = arith.constant 0 : index
    %3 = vector.load %arg7[%c0, %c0_1] : memref<512x128xf32, #tpu.memory_space<vmem>>, vector<512x128xf32>
    %c0_2 = arith.constant 0 : index
    %c0_3 = arith.constant 0 : index
    %4 = vector.load %arg3[%c0_2, %c0_3] : memref<512x512xbf16, #tpu.memory_space<vmem>>, vector<512x512xbf16>
    %c0_4 = arith.constant 0 : index
    %c0_5 = arith.constant 0 : index
    %5 = vector.load %arg4[%c0_4, %c0_5] : memref<512x128xbf16, #tpu.memory_space<vmem>>, vector<512x128xbf16>
    %cst = arith.constant dense<0.000000e+00> : vector<512x128xf32>
    %6 = tpu.matmul %4, %5, %cst {dimension_numbers = #tpu.dot_dimension_numbers<[1], [0], [0], [1], [0, 0, 1, 1], [], []>} : vector<512x512xbf16>, vector<512x128xbf16>, vector<512x128xf32> -> vector<512x128xf32>
    %7 = arith.addf %3, %6 : vector<512x128xf32>
    %c0_6 = arith.constant 0 : index
    %c0_7 = arith.constant 0 : index
    %8 = vector.load %arg7[%c0_6, %c0_7] : memref<512x128xf32, #tpu.memory_space<vmem>>, vector<512x128xf32>
    tpu.vector_store %arg7[%c0_6, %c0_7], %7 {strides = array<i32>} : memref<512x128xf32, #tpu.memory_space<vmem>>, vector<512x128xf32>,
    %c0_i32_8 = arith.constant 0 : i32
    %9 = arith.cmpi eq, %arg2, %c0_i32_8 : i32
    %10 = arith.extui %9 : i1 to i32
    %c0_i32_9 = arith.constant 0 : i32
    %11 = arith.cmpi ne, %10, %c0_i32_9 : i32
    scf.if %11 {
      %c0_10 = arith.constant 0 : index
      %c0_11 = arith.constant 0 : index
      %12 = vector.load %arg7[%c0_10, %c0_11] : memref<512x128xf32, #tpu.memory_space<vmem>>, vector<512x128xf32>
      %c0_12 = arith.constant 0 : index
      %c0_13 = arith.constant 0 : index
      %13 = vector.load %arg5[%c0_12, %c0_13] : memref<1x128xf32, #tpu.memory_space<vmem>>, vector<1x128xf32>
      %14 = vector.broadcast %13 : vector<1x128xf32> to vector<512x128xf32>
      %15 = arith.addf %12, %14 : vector<512x128xf32>
      %16 = math.tanh %15 : vector<512x128xf32>
      %17 = arith.truncf %16 : vector<512x128xf32> to vector<512x128xbf16>
      %c0_14 = arith.constant 0 : index
      %c0_15 = arith.constant 0 : index
      %18 = vector.load %arg6[%c0_14, %c0_15] : memref<512x128xbf16, #tpu.memory_space<vmem>>, vector<512x128xbf16>
      tpu.vector_store %arg6[%c0_14, %c0_15], %17 {strides = array<i32>} : memref<512x128xbf16, #tpu.memory_space<vmem>>, vector<512x128xbf16>,
    } else {
    }
    return
  }
  func.func @transform_0(%arg0: i32, %arg1: i32, %arg2: i32) -> (i32, i32) {
    %c0_i32 = arith.constant 0 : i32
    return %arg0, %arg2 : i32, i32
  }
  func.func @transform_1(%arg0: i32, %arg1: i32, %arg2: i32) -> (i32, i32) {
    %c0_i32 = arith.constant 0 : i32
    return %arg2, %arg1 : i32, i32
  }
  func.func @transform_2(%arg0: i32, %arg1: i32, %arg2: i32) -> (i32, i32) {
    %c0_i32 = arith.constant 0 : i32
    %c0_i32_0 = arith.constant 0 : i32
    return %c0_i32, %arg1 : i32, i32
  }
  func.func @transform_3(%arg0: i32, %arg1: i32, %arg2: i32) -> (i32, i32) {
    %c0_i32 = arith.constant 0 : i32
    return %arg0, %arg1 : i32, i32
  }
}

</mosaic_0001>

<bundles_post_ra>
// kernel: tile.93
= control target key start
LH: loop header
LB: loop body
LE: loop exit
PB: predicated region body
PF: predicated region fallthrough
CT: control target
= control target key end

     0   :  { %s28_s0 = inlined_call_operand.vmem [shape: f32[8], index: 0, kind: input, shape index: {}]   ;;  %s29_s1 = inlined_call_operand.vmem [shape: f32[16,8], index: 1, kind: output, shape index: {}]  }
   0x1   :  { %v4_v0 = vld [vmem:[%s28_s0] ss:$0 sm:$0xff] }
   0x2   :  { %5 = vst [vmem:[%s29_s1] sm:$0xff] %v4_v0 }
   0x3   :  { %8 = vst [vmem:[%s29_s1 + $0x8] sm:$0xff] %v4_v0 }

// kernel: tile.94
= control target key start
LH: loop header
LB: loop body
LE: loop exit
PB: predicated region body
PF: predicated region fallthrough
CT: control target
= control target key end

     0   :  { %s131_s10 = smov 120   ;;  %s132_s11 = smov 104   ;;  %vm3_vm0 = vcmask 64512   ;;  %vm9_vm1 = vcmask 1048512   ;;  %vm15_vm2 = vcmask 982912   ;;  %vm21_vm3 = vcmask 917312   ;;  %s207_s0 = inlined_call_operand.vmem [shape: f32[16,8], index: 0, kind: input, shape index: {}]   ;;  %s208_s1 = inlined_call_operand.vmem [shape: f32[1,128], index: 1, kind: output, shape index: {}]  }
   0x1   :  { %v101_v0 = vld [vmem:[%s207_s0 + $0xf] sm:$0x1]   ;;  %v103_v1 = vld [vmem:[%s207_s0 + $0xd] sm:$0x1]   ;;  %v105_v2 = vld [vmem:[%s207_s0 + $0xb] sm:$0x1]  }
   0x2   :  { %7 = vrot.lane.b32.xlu0 %v101_v0, %s131_s10  ;;  %19 = vrot.lane.b32.xlu1 %v103_v1, %s132_s11  ;;  %s133_s14 = smov 88   ;;  %v102_v3 = vld [vmem:[%s207_s0 + $0xe] sm:$0x1]   ;;  %v104_v4 = vld [vmem:[%s207_s0 + $0xc] sm:$0x1]   ;;  %s134_s19 = smov 112  }
   0x3   :  { %31 = vrot.lane.b32.xlu2 %v105_v2, %s133_s14  ;;  %s135_s20 = smov 96   ;;  %v106_v5 = vld [vmem:[%s207_s0 + $0xa] sm:$0x1]   ;;  %s136_s23 = smov 80   ;;  %v107_v6 = vld [vmem:[%s207_s0 + $0x9] sm:$0x1]  }
   0x4   :  { %v108_v7 = vld [vmem:[%s207_s0 + $0x8] sm:$0x1]   ;;  %s137_s28 = smov 72   ;;  %s138_s29 = smov 64   ;;  %v109_v8 = vld [vmem:[%s207_s0 + $0x7] sm:$0x1]  }
   0x5   :  { %s139_s3 = smov 56   ;;  %v110_v9 = vld [vmem:[%s207_s0 + $0x6] sm:$0x1]   ;;  %v111_v10 = vld [vmem:[%s207_s0 + $0x5] sm:$0x1]   ;;  %s140_s8 = smov 48  }
   0x6   :  { %s141_s9 = smov 40   ;;  %v112_v11 = vld [vmem:[%s207_s0 + $0x4] sm:$0x1]   ;;  %s142_s12 = smov 32   ;;  %v113_v12 = vld [vmem:[%s207_s0 + $0x3] sm:$0x1]  }
   0x7   :  { %v114_v13 = vld [vmem:[%s207_s0 + $0x2] sm:$0x1]   ;;  %s143_s17 = smov 24   ;;  %s144_s18 = smov 16   ;;  %v115_v14 = vld [vmem:[%s207_s0 + $0x1] sm:$0x1]  }
   0x8   :  { %s145_s21 = smov 8   ;;  %v2_v15 = vld [vmem:[%s207_s0] sm:$0x1]   ;;  %vm27_vm4 = vcmask 851712   ;;  %vm33_vm5 = vcmask 786112   ;;  %vm39_vm6 = vcmask 720512  }
   0x9   :  { %4 = vst.msk [vmem:[#allocation0] sm:$0x1] %vm3_vm0, %v2_v15   ;;  %vm45_vm7 = vcmask 654912   ;;  %vm51_vm8 = vcmask 589312   ;;  %vm57_vm9 = vcmask 523712   ;;  %vm63_vm10 = vcmask 458112  }
   0xa   :  { %13 = vrot.lane.b32.xlu0 %v102_v3, %s134_s19  ;;  %25 = vrot.lane.b32.xlu1 %v104_v4, %s135_s20  ;;  %vm69_vm11 = vcmask 392512   ;;  %vm75_vm12 = vcmask 326912   ;;  %vm81_vm13 = vcmask 261312   ;;  %vm87_vm14 = vcmask 195712  }
   0xb   :  { %37 = vrot.lane.b32.xlu2 %v106_v5, %s136_s23  ;;  %vm93_vm15 = vcmask 130112  }
  0x12   :  { %43 = vrot.lane.b32.xlu0 %v107_v6, %s137_s28  ;;  %49 = vrot.lane.b32.xlu1 %v108_v7, %s138_s29 }
  0x13   :  { %55 = vrot.lane.b32.xlu2 %v109_v8, %s139_s3 }
  0x1a   :  { %61 = vrot.lane.b32.xlu0 %v110_v9, %s140_s8  ;;  %67 = vrot.lane.b32.xlu1 %v111_v10, %s141_s9 }
  0x1b   :  { %73 = vrot.lane.b32.xlu2 %v112_v11, %s142_s12 }
  0x22   :  { %79 = vrot.lane.b32.xlu0 %v113_v12, %s143_s17  ;;  %85 = vrot.lane.b32.xlu1 %v114_v13, %s144_s18 }
  0x23   :  { %91 = vrot.lane.b32.xlu2 %v115_v14, %s145_s21 }
  0x5d   :  { %v32_v16 = vpop.permute.xlu2 %31  }
  0x65   :  { %v38_v17 = vpop.permute.xlu2 %37  }
  0x6d   :  { %v56_v18 = vpop.permute.xlu2 %55  }
  0x74   :  { %v8_v19 = vpop.permute.xlu0 %7   ;;  %v20_v20 = vpop.permute.xlu1 %19  }
  0x75   :  { %10 = vst.msk [vmem:[#allocation0] sm:$0x1] %vm9_vm1, %v8_v19   ;;  %v74_v21 = vpop.permute.xlu2 %73  }
  0x7c   :  { %v14_v22 = vpop.permute.xlu0 %13   ;;  %v26_v23 = vpop.permute.xlu1 %25  }
  0x7d   :  { %16 = vst.msk [vmem:[#allocation0] sm:$0x1] %vm15_vm2, %v14_v22   ;;  %v92_v24 = vpop.permute.xlu2 %91  }
  0x7e   :  { %22 = vst.msk [vmem:[#allocation0] sm:$0x1] %vm21_vm3, %v20_v20  }
  0x7f   :  { %28 = vst.msk [vmem:[#allocation0] sm:$0x1] %vm27_vm4, %v26_v23  }
  0x80   :  { %34 = vst.msk [vmem:[#allocation0] sm:$0x1] %vm33_vm5, %v32_v16  }
  0x81   :  { %40 = vst.msk [vmem:[#allocation0] sm:$0x1] %vm39_vm6, %v38_v17  }
  0x84   :  { %v44_v25 = vpop.permute.xlu0 %43   ;;  %v50_v26 = vpop.permute.xlu1 %49  }
  0x85   :  { %46 = vst.msk [vmem:[#allocation0] sm:$0x1] %vm45_vm7, %v44_v25  }
  0x86   :  { %52 = vst.msk [vmem:[#allocation0] sm:$0x1] %vm51_vm8, %v50_v26  }
  0x87   :  { %58 = vst.msk [vmem:[#allocation0] sm:$0x1] %vm57_vm9, %v56_v18  }
  0x8c   :  { %v62_v27 = vpop.permute.xlu0 %61   ;;  %v68_v28 = vpop.permute.xlu1 %67  }
  0x8d   :  { %64 = vst.msk [vmem:[#allocation0] sm:$0x1] %vm63_vm10, %v62_v27  }
  0x8e   :  { %70 = vst.msk [vmem:[#allocation0] sm:$0x1] %vm69_vm11, %v68_v28  }
  0x8f   :  { %76 = vst.msk [vmem:[#allocation0] sm:$0x1] %vm75_vm12, %v74_v21  }
  0x94   :  { %v80_v29 = vpop.permute.xlu0 %79   ;;  %v86_v30 = vpop.permute.xlu1 %85  }
  0x95   :  { %82 = vst.msk [vmem:[#allocation0] sm:$0x1] %vm81_vm13, %v80_v29  }
  0x96   :  { %88 = vst.msk [vmem:[#allocation0] sm:$0x1] %vm87_vm14, %v86_v30  }
  0x97   :  { %94 = vst.msk [vmem:[#allocation0] sm:$0x1] %vm93_vm15, %v92_v24  }
  0x9e   :  { %v97_v31 = vld [vmem:[#allocation0] sm:$0x1] }
  0x9f   :  { %100 = vst [vmem:[%s208_s1] sm:$0x1] %v97_v31 }

// kernel: _lambda_.26
= control target key start
LH: loop header
LB: loop body
LE: loop exit
PB: predicated region body
PF: predicated region fallthrough
CT: control target
= control target key end

     0   :  { %s114_s0 = inlined_call_operand.vmem [shape: bf16[32,128], index: 0, kind: input, shape index: {}]   ;;  %s115_s1 = inlined_call_operand.vmem [shape: f32[1,128], index: 1, kind: input, shape index: {}]   ;;  %s116_s2 = inlined_call_operand.vmem [shape: f32[1,128], index: 2, kind: input, shape index: {}]   ;;  %s117_s3 = inlined_call_operand.vmem [shape: bf16[32,128], index: 3, kind: output, shape index: {}]  }
   0x1   :  { %v55_v0 = vld [vmem:[%s114_s0] sm:$0xff]   ;;  %v72_v5 = vld [vmem:[%s114_s0 + $0x8] sm:$0xff]  }
   0x2   :  { %v74_v1 = vld [vmem:[%s115_s1] ss:$0 sm:$0xff]  ;;  %v56_v2 = vunpack.c.l.bf16 %v55_v0  ;;  %v57_v3 = vunpack.c.h.bf16 %v55_v0  ;;  %v60_v6 = vunpack.c.l.bf16 %v72_v5  ;;  %v61_v7 = vunpack.c.h.bf16 %v72_v5 }
   0x3   :  { %v75_v4 = vld [vmem:[%s116_s2] ss:$0 sm:$0xff] }
   0x4   :  { %v26_v8 = vmul.f32 %v74_v1, %v56_v2  ;;  %v27_v9 = vmul.f32 %v74_v1, %v57_v3  ;;  %v28_v10 = vmul.f32 %v74_v1, %v60_v6  ;;  %v29_v11 = vmul.f32 %v74_v1, %v61_v7 }
   0x6   :  { %v34_v12 = vadd.f32 %v75_v4, %v26_v8  ;;  %v35_v13 = vadd.f32 %v75_v4, %v27_v9  ;;  %v36_v14 = vadd.f32 %v75_v4, %v28_v10  ;;  %v37_v15 = vadd.f32 %v75_v4, %v29_v11 }
   0x8   :  { %v38_v16 = vmax.f32 %v34_v12, 0.0  ;;  %v39_v17 = vmax.f32 %v35_v13, 0.0  ;;  %v40_v18 = vmax.f32 %v36_v14, 0.0  ;;  %v41_v19 = vmax.f32 %v37_v15, 0.0 }
   0xa   :  { %v65_v20 = vpack.c.bf16 %v39_v17, %v38_v16  ;;  %v70_v21 = vpack.c.bf16 %v41_v19, %v40_v18 }
   0xc   :  { %66 = vst [vmem:[%s117_s3] sm:$0xff] %v65_v20  }
   0xd   :  { %73 = vst [vmem:[%s117_s3 + $0x8] sm:$0xff] %v70_v21  }

// kernel: tile.103
= control target key start
LH: loop header
LB: loop body
LE: loop exit
PB: predicated region body
PF: predicated region fallthrough
CT: control target
= control target key end

     0   :  { %s22_s0 = inlined_call_operand.vmem [shape: f32[16], index: 0, kind: input, shape index: {}]   ;;  %s23_s1 = inlined_call_operand.vmem [shape: f32[8,16], index: 1, kind: output, shape index: {}]  }
   0x1   :  { %v4_v0 = vld [vmem:[%s22_s0] ss:$0 sm:$0xff] }
   0x2   :  { %5 = vst [vmem:[%s23_s1] sm:$0xff] %v4_v0 }

// kernel: tile.104
= control target key start
LH: loop header
LB: loop body
LE: loop exit
PB: predicated region body
PF: predicated region fallthrough
CT: control target
= control target key end

     0   :  { %s67_s10 = smov 112   ;;  %s68_s11 = smov 80   ;;  %vm3_vm0 = vcmask 130048   ;;  %vm9_vm1 = vcmask 1048448   ;;  %vm15_vm2 = vcmask 917248   ;;  %vm21_vm3 = vcmask 786048   ;;  %s111_s0 = inlined_call_operand.vmem [shape: f32[8,16], index: 0, kind: input, shape index: {}]   ;;  %s112_s1 = inlined_call_operand.vmem [shape: f32[1,128], index: 1, kind: output, shape index: {}]  }
   0x1   :  { %v53_v0 = vld [vmem:[%s111_s0 + $0x7] sm:$0x1]   ;;  %v55_v1 = vld [vmem:[%s111_s0 + $0x5] sm:$0x1]   ;;  %v57_v2 = vld [vmem:[%s111_s0 + $0x3] sm:$0x1]  }
   0x2   :  { %7 = vrot.lane.b32.xlu0 %v53_v0, %s67_s10  ;;  %19 = vrot.lane.b32.xlu1 %v55_v1, %s68_s11  ;;  %s69_s14 = smov 48   ;;  %v54_v3 = vld [vmem:[%s111_s0 + $0x6] sm:$0x1]   ;;  %v56_v4 = vld [vmem:[%s111_s0 + $0x4] sm:$0x1]   ;;  %s70_s21 = smov 96  }
   0x3   :  { %31 = vrot.lane.b32.xlu2 %v57_v2, %s69_s14  ;;  %v58_v5 = vld [vmem:[%s111_s0 + $0x2] sm:$0x1]   ;;  %s71_s22 = smov 64   ;;  %s72_s23 = smov 32   ;;  %v59_v6 = vld [vmem:[%s111_s0 + $0x1] sm:$0x1]  }
   0x4   :  { %s73_s26 = smov 16   ;;  %v2_v7 = vld [vmem:[%s111_s0] sm:$0x1]   ;;  %vm27_vm4 = vcmask 654848   ;;  %vm33_vm5 = vcmask 523648   ;;  %vm39_vm6 = vcmask 392448  }
   0x5   :  { %4 = vst.msk [vmem:[#allocation0] sm:$0x1] %vm3_vm0, %v2_v7   ;;  %vm45_vm7 = vcmask 261248  }
   0xa   :  { %13 = vrot.lane.b32.xlu0 %v54_v3, %s70_s21  ;;  %25 = vrot.lane.b32.xlu1 %v56_v4, %s71_s22 }
   0xb   :  { %37 = vrot.lane.b32.xlu2 %v58_v5, %s72_s23 }
  0x12   :  { %43 = vrot.lane.b32.xlu0 %v59_v6, %s73_s26 }
  0x5d   :  { %v32_v8 = vpop.permute.xlu2 %31  }
  0x65   :  { %v38_v9 = vpop.permute.xlu2 %37  }
  0x74   :  { %v8_v10 = vpop.permute.xlu0 %7   ;;  %v20_v11 = vpop.permute.xlu1 %19  }
  0x75   :  { %10 = vst.msk [vmem:[#allocation0] sm:$0x1] %vm9_vm1, %v8_v10  }
  0x7c   :  { %v14_v12 = vpop.permute.xlu0 %13   ;;  %v26_v13 = vpop.permute.xlu1 %25  }
  0x7d   :  { %16 = vst.msk [vmem:[#allocation0] sm:$0x1] %vm15_vm2, %v14_v12  }
  0x7e   :  { %22 = vst.msk [vmem:[#allocation0] sm:$0x1] %vm21_vm3, %v20_v11  }
  0x7f   :  { %28 = vst.msk [vmem:[#allocation0] sm:$0x1] %vm27_vm4, %v26_v13  }
  0x80   :  { %34 = vst.msk [vmem:[#allocation0] sm:$0x1] %vm33_vm5, %v32_v8  }
  0x81   :  { %40 = vst.msk [vmem:[#allocation0] sm:$0x1] %vm39_vm6, %v38_v9  }
  0x84   :  { %v44_v14 = vpop.permute.xlu0 %43  }
  0x85   :  { %46 = vst.msk [vmem:[#allocation0] sm:$0x1] %vm45_vm7, %v44_v14  }
  0x8c   :  { %v49_v15 = vld [vmem:[#allocation0] sm:$0x1] }
  0x8d   :  { %52 = vst [vmem:[%s112_s1] sm:$0x1] %v49_v15 }

// kernel: _lambda_.25
= control target key start
LH: loop header
LB: loop body
LE: loop exit
PB: predicated region body
PF: predicated region fallthrough
CT: control target
= control target key end

     0   :  { %s3061_s1 = inlined_call_operand.vmem [shape: bf16[256,128], index: 1, kind: input, shape index: {}]   ;;  %s3062_s0 = inlined_call_operand.vmem [shape: bf16[512,256], index: 0, kind: input, shape index: {}]   ;;  %s3063_s2 = inlined_call_operand.vmem [shape: f32[1,128], index: 2, kind: input, shape index: {}]   ;;  %s3064_s3 = inlined_call_operand.vmem [shape: bf16[512,128], index: 3, kind: output, shape index: {0}]   ;;  %s3065_s4 = inlined_call_operand.vmem [shape: f32[8,128], index: 4, kind: output, shape index: {1}]  }
   0x1   :  { %v1997_v0 = vld [vmem:[%s3061_s1 + $0x38] sm:$0xff]  ;;  %v1996_v2 = vld [vmem:[%s3061_s1 + $0x30] sm:$0xff]  ;;  %v1995_v4 = vld [vmem:[%s3061_s1 + $0x28] sm:$0xff] }
   0x2   :  { %v2005_v1 = vld [vmem:[%s3061_s1 + $0x78] sm:$0xff]  ;;  %660 = vmatpush.bf16.msra.mxu0 %v1997_v0  ;;  %v2004_v3 = vld [vmem:[%s3061_s1 + $0x70] sm:$0xff]  ;;  %2197 = vmatpush.bf16.msra.mxu2 %v1997_v0  ;;  %v2003_v5 = vld [vmem:[%s3061_s1 + $0x68] sm:$0xff] }
   0x3   :  { %829 = vmatpush.bf16.msra.mxu1 %v2005_v1  ;;  %2205 = vmatpush.bf16.msra.mxu3 %v2005_v1  ;;  %v1994_v6 = vld [vmem:[%s3061_s1 + $0x20] sm:$0xff]  ;;  %v1993_v8 = vld [vmem:[%s3061_s1 + $0x18] sm:$0xff]  ;;  %v1992_v10 = vld [vmem:[%s3061_s1 + $0x10] sm:$0xff] }
   0x4   :  { %v2002_v7 = vld [vmem:[%s3061_s1 + $0x60] sm:$0xff]  ;;  %v2001_v9 = vld [vmem:[%s3061_s1 + $0x58] sm:$0xff]  ;;  %v2000_v11 = vld [vmem:[%s3061_s1 + $0x50] sm:$0xff] }
   0x5   :  { %v1991_v12 = vld [vmem:[%s3061_s1 + $0x8] sm:$0xff]  ;;  %v1990_v14 = vld [vmem:[%s3061_s1] sm:$0xff]  ;;  %v1616_v22 = vld [vmem:[%s3062_s0 + $0x10] sm:$0xf] }
   0x6   :  { %661 = vmatpush.bf16.msra.mxu0 %v1996_v2  ;;  %2198 = vmatpush.bf16.msra.mxu2 %v1996_v2  ;;  %v1999_v13 = vld [vmem:[%s3061_s1 + $0x48] sm:$0xff]  ;;  %v1998_v15 = vld [vmem:[%s3061_s1 + $0x40] sm:$0xff]  ;;  %v1929_v23 = vld [vmem:[%s3062_s0 + $0x14] sm:$0xf0] }
   0x7   :  { %830 = vmatpush.bf16.msra.mxu1 %v2004_v3  ;;  %2206 = vmatpush.bf16.msra.mxu3 %v2004_v3  ;;  %v1608_v16 = vld [vmem:[%s3062_s0] sm:$0xf]  ;;  %v1927_v17 = vld [vmem:[%s3062_s0 + $0x4] sm:$0xf0]  ;;  %v1926_v18 = vld [vmem:[%s3062_s0 + $0x4] sm:$0xf]  ;;  %v1617_v26 = vor.u32 %v1929_v23, %v1616_v22 }
   0x8   :  { %v1610_v19 = vld [vmem:[%s3062_s0 + $0x8] sm:$0xf0]  ;;  %v1609_v20 = vor.u32 %v1927_v17, %v1608_v16  ;;  %v1928_v24 = vld [vmem:[%s3062_s0 + $0x14] sm:$0xf]  ;;  %v1618_v25 = vld [vmem:[%s3062_s0 + $0x18] sm:$0xf0] }
   0x9   :  { %v1613_v21 = vor.u32 %v1926_v18, %v1610_v19  ;;  %v1621_v27 = vor.u32 %v1928_v24, %v1618_v25  ;;  %v1736_v28 = vld [vmem:[%s3062_s0 + $0x100] sm:$0xf]  ;;  %v1959_v29 = vld [vmem:[%s3062_s0 + $0x104] sm:$0xf0]  ;;  %v1958_v30 = vld [vmem:[%s3062_s0 + $0x104] sm:$0xf] }
   0xa   :  { %662 = vmatpush.bf16.msra.mxu0 %v1995_v4  ;;  %2199 = vmatpush.bf16.msra.mxu2 %v1995_v4  ;;  %v1737_v31 = vor.u32 %v1959_v29, %v1736_v28  ;;  %v1738_v32 = vld [vmem:[%s3062_s0 + $0x108] sm:$0xf0]  ;;  %v1624_v34 = vld [vmem:[%s3062_s0 + $0x20] sm:$0xf]  ;;  %v1931_v35 = vld [vmem:[%s3062_s0 + $0x24] sm:$0xf0] }
   0xb   :  { %831 = vmatpush.bf16.msra.mxu1 %v2003_v5  ;;  %2207 = vmatpush.bf16.msra.mxu3 %v2003_v5  ;;  %v1741_v33 = vor.u32 %v1958_v30, %v1738_v32  ;;  %v1930_v36 = vld [vmem:[%s3062_s0 + $0x24] sm:$0xf]  ;;  %v1626_v37 = vld [vmem:[%s3062_s0 + $0x28] sm:$0xf0]  ;;  %v1625_v38 = vor.u32 %v1931_v35, %v1624_v34  ;;  %v1744_v40 = vld [vmem:[%s3062_s0 + $0x110] sm:$0xf] }
   0xc   :  { %v1629_v39 = vor.u32 %v1930_v36, %v1626_v37  ;;  %v1961_v41 = vld [vmem:[%s3062_s0 + $0x114] sm:$0xf0]  ;;  %v1960_v42 = vld [vmem:[%s3062_s0 + $0x114] sm:$0xf]  ;;  %v1746_v44 = vld [vmem:[%s3062_s0 + $0x118] sm:$0xf0] }
   0xd   :  { %v1745_v43 = vor.u32 %v1961_v41, %v1744_v40  ;;  %v1749_v45 = vor.u32 %v1960_v42, %v1746_v44  ;;  %v1632_v46 = vld [vmem:[%s3062_s0 + $0x30] sm:$0xf]  ;;  %v1933_v47 = vld [vmem:[%s3062_s0 + $0x34] sm:$0xf0]  ;;  %v1932_v48 = vld [vmem:[%s3062_s0 + $0x34] sm:$0xf] }
   0xe   :  { %663 = vmatpush.bf16.msra.mxu0 %v1994_v6  ;;  %2200 = vmatpush.bf16.msra.mxu2 %v1994_v6  ;;  %v1634_v49 = vld [vmem:[%s3062_s0 + $0x38] sm:$0xf0]  ;;  %v1633_v50 = vor.u32 %v1933_v47, %v1632_v46  ;;  %v1752_v52 = vld [vmem:[%s3062_s0 + $0x120] sm:$0xf]  ;;  %v1963_v53 = vld [vmem:[%s3062_s0 + $0x124] sm:$0xf0] }
   0xf   :  { %832 = vmatpush.bf16.msra.mxu1 %v2002_v7  ;;  %2208 = vmatpush.bf16.msra.mxu3 %v2002_v7  ;;  %v1637_v51 = vor.u32 %v1932_v48, %v1634_v49  ;;  %v1962_v54 = vld [vmem:[%s3062_s0 + $0x124] sm:$0xf]  ;;  %v1753_v55 = vor.u32 %v1963_v53, %v1752_v52  ;;  %v1754_v56 = vld [vmem:[%s3062_s0 + $0x128] sm:$0xf0]  ;;  %v1640_v58 = vld [vmem:[%s3062_s0 + $0x40] sm:$0xf] }
  0x10   :  { %v1757_v57 = vor.u32 %v1962_v54, %v1754_v56  ;;  %v1935_v59 = vld [vmem:[%s3062_s0 + $0x44] sm:$0xf0]  ;;  %v1934_v60 = vld [vmem:[%s3062_s0 + $0x44] sm:$0xf]  ;;  %v1642_v61 = vld [vmem:[%s3062_s0 + $0x48] sm:$0xf0] }
  0x11   :  { %v1641_v62 = vor.u32 %v1935_v59, %v1640_v58  ;;  %v1645_v63 = vor.u32 %v1934_v60, %v1642_v61  ;;  %v1760_v0 = vld [vmem:[%s3062_s0 + $0x130] sm:$0xf]  ;;  %v1965_v1 = vld [vmem:[%s3062_s0 + $0x134] sm:$0xf0]  ;;  %v1964_v2 = vld [vmem:[%s3062_s0 + $0x134] sm:$0xf] }
  0x12   :  { %664 = vmatpush.bf16.msra.mxu0 %v1993_v8  ;;  %2201 = vmatpush.bf16.msra.mxu2 %v1993_v8  ;;  %v1761_v3 = vor.u32 %v1965_v1, %v1760_v0  ;;  %v1762_v4 = vld [vmem:[%s3062_s0 + $0x138] sm:$0xf0]  ;;  %v1648_v6 = vld [vmem:[%s3062_s0 + $0x50] sm:$0xf]  ;;  %v1937_v7 = vld [vmem:[%s3062_s0 + $0x54] sm:$0xf0] }
  0x13   :  { %833 = vmatpush.bf16.msra.mxu1 %v2001_v9  ;;  %2209 = vmatpush.bf16.msra.mxu3 %v2001_v9  ;;  %v1765_v5 = vor.u32 %v1964_v2, %v1762_v4  ;;  %v1936_v8 = vld [vmem:[%s3062_s0 + $0x54] sm:$0xf]  ;;  %v1650_v9 = vld [vmem:[%s3062_s0 + $0x58] sm:$0xf0]  ;;  %v1770_v16 = vld [vmem:[%s3062_s0 + $0x148] sm:$0xf0] }
  0x14   :  { %v1656_v18 = vld [vmem:[%s3062_s0 + $0x60] sm:$0xf]  ;;  %v1939_v19 = vld [vmem:[%s3062_s0 + $0x64] sm:$0xf0]  ;;  %v1776_v24 = vld [vmem:[%s3062_s0 + $0x150] sm:$0xf] }
  0x15   :  { %v1657_v22 = vor.u32 %v1939_v19, %v1656_v18  ;;  %v1969_v25 = vld [vmem:[%s3062_s0 + $0x154] sm:$0xf0]  ;;  %v1778_v28 = vld [vmem:[%s3062_s0 + $0x158] sm:$0xf0]  ;;  %v1664_v30 = vld [vmem:[%s3062_s0 + $0x70] sm:$0xf] }
  0x16   :  { %665 = vmatpush.bf16.msra.mxu0 %v1992_v10  ;;  %2202 = vmatpush.bf16.msra.mxu2 %v1992_v10  ;;  %v1649_v10 = vor.u32 %v1937_v7, %v1648_v6  ;;  %v1940_v32 = vld [vmem:[%s3062_s0 + $0x74] sm:$0xf]  ;;  %v1784_v36 = vld [vmem:[%s3062_s0 + $0x160] sm:$0xf]  ;;  %v1971_v37 = vld [vmem:[%s3062_s0 + $0x164] sm:$0xf0] }
  0x17   :  { %834 = vmatpush.bf16.msra.mxu1 %v2000_v11  ;;  %2210 = vmatpush.bf16.msra.mxu3 %v2000_v11  ;;  %v1653_v11 = vor.u32 %v1936_v8, %v1650_v9  ;;  %v1786_v40 = vld [vmem:[%s3062_s0 + $0x168] sm:$0xf0]  ;;  %v1672_v42 = vld [vmem:[%s3062_s0 + $0x80] sm:$0xf]  ;;  %v1942_v44 = vld [vmem:[%s3062_s0 + $0x84] sm:$0xf] }
  0x18   :  { %v1972_v52 = vld [vmem:[%s3062_s0 + $0x174] sm:$0xf]  ;;  %v1794_v54 = vld [vmem:[%s3062_s0 + $0x178] sm:$0xf0]  ;;  %v1680_v2 = vld [vmem:[%s3062_s0 + $0x90] sm:$0xf] }
  0x19   :  { %v1944_v4 = vld [vmem:[%s3062_s0 + $0x94] sm:$0xf]  ;;  %v1802_v18 = vld [vmem:[%s3062_s0 + $0x188] sm:$0xf0] }
  0x1a   :  { %666 = vmatpush.bf16.msra.mxu0 %v1991_v12  ;;  %2203 = vmatpush.bf16.msra.mxu2 %v1991_v12  ;;  %v1768_v12 = vld [vmem:[%s3062_s0 + $0x140] sm:$0xf] }
  0x1b   :  { %835 = vmatpush.bf16.msra.mxu1 %v1999_v13  ;;  %2211 = vmatpush.bf16.msra.mxu3 %v1999_v13  ;;  %v1967_v13 = vld [vmem:[%s3062_s0 + $0x144] sm:$0xf0] }
  0x1e   :  { %667 = vmatpush.bf16.msra.mxu0 %v1990_v14  ;;  %2204 = vmatpush.bf16.msra.mxu2 %v1990_v14  ;;  %v1966_v14 = vld [vmem:[%s3062_s0 + $0x144] sm:$0xf] }
  0x1f   :  { %836 = vmatpush.bf16.msra.mxu1 %v1998_v15  ;;  %2212 = vmatpush.bf16.msra.mxu3 %v1998_v15  ;;  %v1769_v15 = vor.u32 %v1967_v13, %v1768_v12  ;;  %v1773_v17 = vor.u32 %v1966_v14, %v1770_v16  ;;  %v1800_v13 = vld [vmem:[%s3062_s0 + $0x180] sm:$0xf]  ;;  %v1975_v14 = vld [vmem:[%s3062_s0 + $0x184] sm:$0xf0] }
  0x20   :  { %v1801_v19 = vor.u32 %v1975_v14, %v1800_v13 }
  0x21   :  { %668 = vmatmul.bf16.vlgmr.msra.gmra.mxu0 %v1609_v20  ;;  %748 = vmatmul.bf16.vlgmr.msra.gmra.mxu2 %v1737_v31  ;;  %v1938_v20 = vld [vmem:[%s3062_s0 + $0x64] sm:$0xf]  ;;  %v1941_v31 = vld [vmem:[%s3062_s0 + $0x74] sm:$0xf0] }
  0x22   :  { %837 = vmatmul.bf16.vlgmr.msra.gmra.mxu1 %v1613_v21  ;;  %917 = vmatmul.bf16.vlgmr.msra.gmra.mxu3 %v1741_v33  ;;  %v1658_v21 = vld [vmem:[%s3062_s0 + $0x68] sm:$0xf0]  ;;  %v1666_v33 = vld [vmem:[%s3062_s0 + $0x78] sm:$0xf0]  ;;  %v1665_v34 = vor.u32 %v1941_v31, %v1664_v30  ;;  %v1688_v31 = vld [vmem:[%s3062_s0 + $0xa0] sm:$0xf] }
  0x23   :  { %v1661_v23 = vor.u32 %v1938_v20, %v1658_v21  ;;  %v1669_v35 = vor.u32 %v1940_v32, %v1666_v33  ;;  %v1947_v32 = vld [vmem:[%s3062_s0 + $0xa4] sm:$0xf0]  ;;  %v1946_v33 = vld [vmem:[%s3062_s0 + $0xa4] sm:$0xf] }
  0x31   :  { %673 = vmatmul.bf16.gmra.mxu0 %v1617_v26  ;;  %753 = vmatmul.bf16.gmra.mxu2 %v1745_v43  ;;  %v1968_v26 = vld [vmem:[%s3062_s0 + $0x154] sm:$0xf]  ;;  %v1943_v43 = vld [vmem:[%s3062_s0 + $0x84] sm:$0xf0] }
  0x32   :  { %842 = vmatmul.bf16.gmra.mxu1 %v1621_v27  ;;  %922 = vmatmul.bf16.gmra.mxu3 %v1749_v45  ;;  %v1777_v27 = vor.u32 %v1969_v25, %v1776_v24  ;;  %v1781_v29 = vor.u32 %v1968_v26, %v1778_v28  ;;  %v1674_v45 = vld [vmem:[%s3062_s0 + $0x88] sm:$0xf0]  ;;  %v1673_v46 = vor.u32 %v1943_v43, %v1672_v42 }
  0x33   :  { %v1677_v47 = vor.u32 %v1942_v44, %v1674_v45 }
  0x41   :  { %678 = vmatmul.bf16.gmra.mxu0 %v1625_v38  ;;  %758 = vmatmul.bf16.gmra.mxu2 %v1753_v55  ;;  %v1970_v38 = vld [vmem:[%s3062_s0 + $0x164] sm:$0xf]  ;;  %v1797_v55 = vor.u32 %v1972_v52, %v1794_v54  ;;  %v1810_v52 = vld [vmem:[%s3062_s0 + $0x198] sm:$0xf0] }
  0x42   :  { %847 = vmatmul.bf16.gmra.mxu1 %v1629_v39  ;;  %927 = vmatmul.bf16.gmra.mxu3 %v1757_v57  ;;  %v1785_v39 = vor.u32 %v1971_v37, %v1784_v36  ;;  %v1789_v41 = vor.u32 %v1970_v38, %v1786_v40  ;;  %v2495_v57 = vld [vmem:[%s3063_s2] ss:$0 sm:$0xff]  ;;  %v1689_v37 = vor.u32 %v1947_v32, %v1688_v31 }
  0x51   :  { %683 = vmatmul.bf16.gmra.mxu0 %v1633_v50  ;;  %763 = vmatmul.bf16.gmra.mxu2 %v1761_v3  ;;  %v1792_v50 = vld [vmem:[%s3062_s0 + $0x170] sm:$0xf]  ;;  %v1945_v3 = vld [vmem:[%s3062_s0 + $0x94] sm:$0xf0] }
  0x52   :  { %852 = vmatmul.bf16.gmra.mxu1 %v1637_v51  ;;  %932 = vmatmul.bf16.gmra.mxu3 %v1765_v5  ;;  %v1973_v51 = vld [vmem:[%s3062_s0 + $0x174] sm:$0xf0]  ;;  %v1682_v5 = vld [vmem:[%s3062_s0 + $0x98] sm:$0xf0]  ;;  %v1681_v8 = vor.u32 %v1945_v3, %v1680_v2 }
  0x53   :  { %v1793_v53 = vor.u32 %v1973_v51, %v1792_v50  ;;  %v1685_v9 = vor.u32 %v1944_v4, %v1682_v5  ;;  %v1696_v4 = vld [vmem:[%s3062_s0 + $0xb0] sm:$0xf]  ;;  %v1949_v5 = vld [vmem:[%s3062_s0 + $0xb4] sm:$0xf0] }
  0x61   :  { %688 = vmatmul.bf16.gmra.mxu0 %v1641_v62  ;;  %768 = vmatmul.bf16.gmra.mxu2 %v1769_v15  ;;  %v1974_v15 = vld [vmem:[%s3062_s0 + $0x184] sm:$0xf] }
  0x62   :  { %857 = vmatmul.bf16.gmra.mxu1 %v1645_v63  ;;  %937 = vmatmul.bf16.gmra.mxu3 %v1773_v17  ;;  %v1805_v20 = vor.u32 %v1974_v15, %v1802_v18 }
  0x71   :  { %693 = vmatmul.bf16.gmra.mxu0 %v1649_v10  ;;  %773 = vmatmul.bf16.gmra.mxu2 %v1777_v27 }
  0x72   :  { %862 = vmatmul.bf16.gmra.mxu1 %v1653_v11  ;;  %942 = vmatmul.bf16.gmra.mxu3 %v1781_v29 }
  0x81   :  { %698 = vmatmul.bf16.gmra.mxu0 %v1657_v22  ;;  %778 = vmatmul.bf16.gmra.mxu2 %v1785_v39 }
  0x82   :  { %867 = vmatmul.bf16.gmra.mxu1 %v1661_v23  ;;  %947 = vmatmul.bf16.gmra.mxu3 %v1789_v41 }
  0x91   :  { %703 = vmatmul.bf16.gmra.mxu0 %v1665_v34  ;;  %783 = vmatmul.bf16.gmra.mxu2 %v1793_v53  ;;  %v1690_v34 = vld [vmem:[%s3062_s0 + $0xa8] sm:$0xf0] }
  0x92   :  { %872 = vmatmul.bf16.gmra.mxu1 %v1669_v35  ;;  %952 = vmatmul.bf16.gmra.mxu3 %v1797_v55  ;;  %v1693_v38 = vor.u32 %v1946_v33, %v1690_v34 }
  0x9e   :  { %v669_v48 = vpop.f32.mrf.mxu0 }
  0x9f   :  { %v838_v49 = vpop.f32.mrf.mxu1 }
  0xa0   :  { %v839_v56 = vadd.f32 %v838_v49, %v669_v48  ;;  %v1977_v48 = vld [vmem:[%s3062_s0 + $0x194] sm:$0xf0]  ;;  %v1976_v49 = vld [vmem:[%s3062_s0 + $0x194] sm:$0xf] }
  0xa1   :  { %708 = vmatmul.bf16.gmra.mxu0 %v1673_v46  ;;  %788 = vmatmul.bf16.gmra.mxu2 %v1801_v19  ;;  %v1813_v55 = vor.u32 %v1976_v49, %v1810_v52 }
  0xa2   :  { %877 = vmatmul.bf16.gmra.mxu1 %v1677_v47  ;;  %v1197_v61 = vadd.f32 %v2495_v57, %v839_v56  ;;  %v1458_v62 = vmul.f32 %v839_v56, %v839_v56  ;;  %957 = vmatmul.bf16.gmra.mxu3 %v1805_v20  ;;  %v1808_v47 = vld [vmem:[%s3062_s0 + $0x190] sm:$0xf]  ;;  %v1816_v20 = vld [vmem:[%s3062_s0 + $0x1a0] sm:$0xf] }
  0xa3   :  { %v1809_v54 = vor.u32 %v1977_v48, %v1808_v47 }
  0xa4   :  { %v749_v25 = vpop.f32.mrf.mxu2 }
  0xa5   :  { %v918_v26 = vpop.f32.mrf.mxu3 }
  0xa6   :  { %v671_v58 = vpop.f32.mrf.mxu0  ;;  %v2543_v39 = vadd.f32 %v918_v26, %v749_v25  ;;  %v1818_v25 = vld [vmem:[%s3062_s0 + $0x1a8] sm:$0xf0] }
  0xa7   :  { %v840_v59 = vpop.f32.mrf.mxu1 }
  0xa8   :  { %v841_v60 = vadd.f32 %v840_v59, %v671_v58  ;;  %v1229_v45 = vadd.f32 %v2495_v57, %v2543_v39 }
  0xaa   :  { %v1198_v63 = vadd.f32 %v2495_v57, %v841_v60  ;;  %v1389_v0 = vadd.f32 %v841_v60, %v839_v56  ;;  %v1459_v1 = vmul.f32 %v841_v60, %v841_v60 }
  0xac   :  { %v2009_v6 = vpack.c.bf16 %v1198_v63, %v1197_v61  ;;  %v1522_v7 = vadd.f32 %v1459_v1, %v1458_v62  ;;  %v751_v43 = vpop.f32.mrf.mxu2 }
  0xad   :  { %v920_v44 = vpop.f32.mrf.mxu3 }
  0xae   :  { %2010 = vst [vmem:[%s3064_s3] sm:$0xff] %v2009_v6   ;;  %v674_v10 = vpop.f32.mrf.mxu0  ;;  %v2547_v46 = vadd.f32 %v920_v44, %v751_v43  ;;  %v1948_v6 = vld [vmem:[%s3062_s0 + $0xb4] sm:$0xf]  ;;  %v1950_v43 = vld [vmem:[%s3062_s0 + $0xc4] sm:$0xf]  ;;  %v1706_v44 = vld [vmem:[%s3062_s0 + $0xc8] sm:$0xf0] }
  0xaf   :  { %v843_v11 = vpop.f32.mrf.mxu1  ;;  %v1709_v49 = vor.u32 %v1950_v43, %v1706_v44 }
  0xb0   :  { %v844_v12 = vadd.f32 %v843_v11, %v674_v10  ;;  %v1230_v53 = vadd.f32 %v2495_v57, %v2547_v46  ;;  %v1697_v10 = vor.u32 %v1949_v5, %v1696_v4 }
  0xb1   :  { %713 = vmatmul.bf16.gmra.mxu0 %v1681_v8  ;;  %793 = vmatmul.bf16.gmra.mxu2 %v1809_v54 }
  0xb2   :  { %v1390_v16 = vadd.f32 %v1389_v0, %v844_v12  ;;  %v1460_v17 = vmul.f32 %v844_v12, %v844_v12  ;;  %882 = vmatmul.bf16.gmra.mxu1 %v1685_v9  ;;  %v1199_v27 = vadd.f32 %v2495_v57, %v844_v12  ;;  %v2089_v58 = vpack.c.bf16 %v1230_v53, %v1229_v45 }
  0xb3   :  { %962 = vmatmul.bf16.gmra.mxu3 %v1813_v55 }
  0xb4   :  { %v1523_v21 = vadd.f32 %v1522_v7, %v1460_v17  ;;  %2181 = vst [vmem:[%s3064_s3 + $0x80] sm:$0xff] %v2089_v58   ;;  %v754_v62 = vpop.f32.mrf.mxu2  ;;  %v1698_v7 = vld [vmem:[%s3062_s0 + $0xb8] sm:$0xf0] }
  0xb5   :  { %v923_v63 = vpop.f32.mrf.mxu3  ;;  %v1701_v11 = vor.u32 %v1948_v6, %v1698_v7 }
  0xb6   :  { %v676_v22 = vpop.f32.mrf.mxu0  ;;  %v2583_v12 = vadd.f32 %v923_v63, %v754_v62 }
  0xb7   :  { %v845_v23 = vpop.f32.mrf.mxu1 }
  0xb8   :  { %v846_v24 = vadd.f32 %v845_v23, %v676_v22  ;;  %v1231_v18 = vadd.f32 %v2495_v57, %v2583_v12  ;;  %v1978_v22 = vld [vmem:[%s3062_s0 + $0x1a4] sm:$0xf] }
  0xba   :  { %v1200_v28 = vadd.f32 %v2495_v57, %v846_v24  ;;  %v1391_v29 = vadd.f32 %v1390_v16, %v846_v24  ;;  %v1461_v30 = vmul.f32 %v846_v24, %v846_v24 }
  0xbc   :  { %v2014_v35 = vpack.c.bf16 %v1200_v28, %v1199_v27  ;;  %v1524_v36 = vadd.f32 %v1523_v21, %v1461_v30  ;;  %v756_v16 = vpop.f32.mrf.mxu2  ;;  %v1979_v21 = vld [vmem:[%s3062_s0 + $0x1a4] sm:$0xf0]  ;;  %v1821_v28 = vor.u32 %v1978_v22, %v1818_v25 }
  0xbd   :  { %v925_v17 = vpop.f32.mrf.mxu3  ;;  %v1817_v27 = vor.u32 %v1979_v21, %v1816_v20  ;;  %v1714_v20 = vld [vmem:[%s3062_s0 + $0xd8] sm:$0xf0] }
  0xbe   :  { %2166 = vst [vmem:[%s3064_s3 + $0x8] sm:$0xff] %v2014_v35   ;;  %v679_v40 = vpop.f32.mrf.mxu0  ;;  %v2587_v19 = vadd.f32 %v925_v17, %v756_v16  ;;  %v1712_v16 = vld [vmem:[%s3062_s0 + $0xd0] sm:$0xf]  ;;  %v1953_v17 = vld [vmem:[%s3062_s0 + $0xd4] sm:$0xf0] }
  0xbf   :  { %v848_v41 = vpop.f32.mrf.mxu1 }
  0xc0   :  { %v849_v42 = vadd.f32 %v848_v41, %v679_v40  ;;  %v1232_v26 = vadd.f32 %v2495_v57, %v2587_v19  ;;  %v1704_v41 = vld [vmem:[%s3062_s0 + $0xc0] sm:$0xf] }
  0xc1   :  { %718 = vmatmul.bf16.gmra.mxu0 %v1689_v37  ;;  %798 = vmatmul.bf16.gmra.mxu2 %v1817_v27 }
  0xc2   :  { %v1392_v50 = vadd.f32 %v1391_v29, %v849_v42  ;;  %v1462_v51 = vmul.f32 %v849_v42, %v849_v42  ;;  %887 = vmatmul.bf16.gmra.mxu1 %v1693_v38  ;;  %v1201_v0 = vadd.f32 %v2495_v57, %v849_v42  ;;  %v2094_v30 = vpack.c.bf16 %v1232_v26, %v1231_v18  ;;  %v1951_v42 = vld [vmem:[%s3062_s0 + $0xc4] sm:$0xf0]  ;;  %v1952_v18 = vld [vmem:[%s3062_s0 + $0xd4] sm:$0xf] }
  0xc3   :  { %967 = vmatmul.bf16.gmra.mxu3 %v1821_v28  ;;  %v1705_v48 = vor.u32 %v1951_v42, %v1704_v41 }
  0xc4   :  { %v1525_v56 = vadd.f32 %v1524_v36, %v1462_v51  ;;  %2182 = vst [vmem:[%s3064_s3 + $0x88] sm:$0xff] %v2094_v30   ;;  %v759_v34 = vpop.f32.mrf.mxu2 }
  0xc5   :  { %v928_v35 = vpop.f32.mrf.mxu3 }
  0xc6   :  { %v681_v59 = vpop.f32.mrf.mxu0 }
  0xc7   :  { %v850_v60 = vpop.f32.mrf.mxu1 }
  0xc8   :  { %v851_v61 = vadd.f32 %v850_v60, %v681_v59  ;;  %v1824_v59 = vld [vmem:[%s3062_s0 + $0x1b0] sm:$0xf]  ;;  %v1981_v60 = vld [vmem:[%s3062_s0 + $0x1b4] sm:$0xf0] }
  0xca   :  { %v1202_v1 = vadd.f32 %v2495_v57, %v851_v61  ;;  %v1393_v2 = vadd.f32 %v1392_v50, %v851_v61  ;;  %v1463_v3 = vmul.f32 %v851_v61, %v851_v61  ;;  %v2623_v50 = vadd.f32 %v928_v35, %v759_v34  ;;  %v1980_v61 = vld [vmem:[%s3062_s0 + $0x1b4] sm:$0xf]  ;;  %v1983_v34 = vld [vmem:[%s3062_s0 + $0x1c4] sm:$0xf0]  ;;  %v1982_v35 = vld [vmem:[%s3062_s0 + $0x1c4] sm:$0xf] }
  0xcc   :  { %v2019_v8 = vpack.c.bf16 %v1202_v1, %v1201_v0  ;;  %v1526_v9 = vadd.f32 %v1525_v56, %v1463_v3  ;;  %v761_v54 = vpop.f32.mrf.mxu2  ;;  %v1233_v56 = vadd.f32 %v2495_v57, %v2623_v50  ;;  %v1826_v0 = vld [vmem:[%s3062_s0 + $0x1b8] sm:$0xf0] }
  0xcd   :  { %v930_v55 = vpop.f32.mrf.mxu3  ;;  %v1829_v3 = vor.u32 %v1980_v61, %v1826_v0  ;;  %v1722_v61 = vld [vmem:[%s3062_s0 + $0xe8] sm:$0xf0] }
  0xce   :  { %2167 = vst [vmem:[%s3064_s3 + $0x10] sm:$0xff] %v2019_v8   ;;  %v684_v13 = vpop.f32.mrf.mxu0  ;;  %v2627_v58 = vadd.f32 %v930_v55, %v761_v54 }
  0xcf   :  { %v853_v14 = vpop.f32.mrf.mxu1 }
  0xd0   :  { %v854_v15 = vadd.f32 %v853_v14, %v684_v13  ;;  %v1234_v1 = vadd.f32 %v2495_v57, %v2627_v58 }
  0xd1   :  { %723 = vmatmul.bf16.gmra.mxu0 %v1697_v10 }
  0xd2   :  { %v1394_v23 = vadd.f32 %v1393_v2, %v854_v15  ;;  %v1464_v24 = vmul.f32 %v854_v15, %v854_v15  ;;  %892 = vmatmul.bf16.gmra.mxu1 %v1701_v11  ;;  %v1203_v36 = vadd.f32 %v2495_v57, %v854_v15  ;;  %v1825_v2 = vor.u32 %v1981_v60, %v1824_v59  ;;  %v1955_v59 = vld [vmem:[%s3062_s0 + $0xe4] sm:$0xf0]  ;;  %v1954_v60 = vld [vmem:[%s3062_s0 + $0xe4] sm:$0xf] }
  0xd3   :  { %v2099_v5 = vpack.c.bf16 %v1234_v1, %v1233_v56  ;;  %972 = vmatmul.bf16.gmra.mxu3 %v1829_v3  ;;  %v1720_v56 = vld [vmem:[%s3062_s0 + $0xe0] sm:$0xf]  ;;  %v1725_v1 = vor.u32 %v1954_v60, %v1722_v61  ;;  %v1850_v60 = vld [vmem:[%s3062_s0 + $0x1e8] sm:$0xf0] }
  0xd4   :  { %v1527_v29 = vadd.f32 %v1526_v9, %v1464_v24  ;;  %803 = vmatmul.bf16.gmra.mxu2 %v1825_v2  ;;  %v764_v9 = vpop.f32.mrf.mxu2  ;;  %v1717_v24 = vor.u32 %v1952_v18, %v1714_v20  ;;  %v1721_v0 = vor.u32 %v1955_v59, %v1720_v56 }
  0xd5   :  { %2183 = vst [vmem:[%s3064_s3 + $0x90] sm:$0xff] %v2099_v5   ;;  %v933_v10 = vpop.f32.mrf.mxu3 }
  0xd6   :  { %v686_v31 = vpop.f32.mrf.mxu0  ;;  %v2663_v25 = vadd.f32 %v933_v10, %v764_v9  ;;  %v1840_v10 = vld [vmem:[%s3062_s0 + $0x1d0] sm:$0xf] }
  0xd7   :  { %v855_v32 = vpop.f32.mrf.mxu1 }
  0xd8   :  { %v856_v33 = vadd.f32 %v855_v32, %v686_v31  ;;  %v1235_v31 = vadd.f32 %v2495_v57, %v2663_v25 }
  0xda   :  { %v1204_v37 = vadd.f32 %v2495_v57, %v856_v33  ;;  %v1395_v38 = vadd.f32 %v1394_v23, %v856_v33  ;;  %v1465_v40 = vmul.f32 %v856_v33, %v856_v33  ;;  %v1713_v23 = vor.u32 %v1953_v17, %v1712_v16  ;;  %v1832_v33 = vld [vmem:[%s3062_s0 + $0x1c0] sm:$0xf]  ;;  %v1842_v16 = vld [vmem:[%s3062_s0 + $0x1d8] sm:$0xf0] }
  0xdb   :  { %v1833_v41 = vor.u32 %v1983_v34, %v1832_v33  ;;  %v1728_v34 = vld [vmem:[%s3062_s0 + $0xf0] sm:$0xf] }
  0xdc   :  { %v2024_v45 = vpack.c.bf16 %v1204_v37, %v1203_v36  ;;  %v1528_v47 = vadd.f32 %v1527_v29, %v1465_v40  ;;  %v766_v29 = vpop.f32.mrf.mxu2 }
  0xdd   :  { %v935_v30 = vpop.f32.mrf.mxu3 }
  0xde   :  { %2168 = vst [vmem:[%s3064_s3 + $0x18] sm:$0xff] %v2024_v45   ;;  %v689_v51 = vpop.f32.mrf.mxu0  ;;  %v2667_v32 = vadd.f32 %v935_v30, %v766_v29 }
  0xdf   :  { %v858_v52 = vpop.f32.mrf.mxu1 }
  0xe0   :  { %v859_v53 = vadd.f32 %v858_v52, %v689_v51  ;;  %v1236_v40 = vadd.f32 %v2495_v57, %v2667_v32 }
  0xe1   :  { %728 = vmatmul.bf16.gmra.mxu0 %v1705_v48 }
  0xe2   :  { %v1396_v62 = vadd.f32 %v1395_v38, %v859_v53  ;;  %v1466_v63 = vmul.f32 %v859_v53, %v859_v53  ;;  %897 = vmatmul.bf16.gmra.mxu1 %v1709_v49  ;;  %v1205_v11 = vadd.f32 %v2495_v57, %v859_v53  ;;  %v1834_v38 = vld [vmem:[%s3062_s0 + $0x1c8] sm:$0xf0]  ;;  %v2104_v44 = vpack.c.bf16 %v1236_v40, %v1235_v31 }
  0xe3   :  { %v1837_v42 = vor.u32 %v1982_v35, %v1834_v38  ;;  %v1957_v35 = vld [vmem:[%s3062_s0 + $0xf4] sm:$0xf0] }
  0xe4   :  { %v1529_v4 = vadd.f32 %v1528_v47, %v1466_v63  ;;  %808 = vmatmul.bf16.gmra.mxu2 %v1833_v41  ;;  %2184 = vst [vmem:[%s3064_s3 + $0x98] sm:$0xff] %v2104_v44   ;;  %v769_v49 = vpop.f32.mrf.mxu2  ;;  %v1729_v41 = vor.u32 %v1957_v35, %v1728_v34 }
  0xe5   :  { %977 = vmatmul.bf16.gmra.mxu3 %v1837_v42  ;;  %v938_v51 = vpop.f32.mrf.mxu3 }
  0xe6   :  { %v691_v6 = vpop.f32.mrf.mxu0  ;;  %v2703_v2 = vadd.f32 %v938_v51, %v769_v49 }
  0xe7   :  { %v860_v7 = vpop.f32.mrf.mxu1 }
  0xe8   :  { %v861_v8 = vadd.f32 %v860_v7, %v691_v6 }
  0xea   :  { %v1206_v13 = vadd.f32 %v2495_v57, %v861_v8  ;;  %v1397_v14 = vadd.f32 %v1396_v62, %v861_v8  ;;  %v1467_v15 = vmul.f32 %v861_v8, %v861_v8  ;;  %v1237_v8 = vadd.f32 %v2495_v57, %v2703_v2 }
  0xec   :  { %v2029_v21 = vpack.c.bf16 %v1206_v13, %v1205_v11  ;;  %v1530_v22 = vadd.f32 %v1529_v4, %v1467_v15  ;;  %v771_v6 = vpop.f32.mrf.mxu2  ;;  %v1985_v11 = vld [vmem:[%s3062_s0 + $0x1d4] sm:$0xf0]  ;;  %v1984_v13 = vld [vmem:[%s3062_s0 + $0x1d4] sm:$0xf] }
  0xed   :  { %v940_v7 = vpop.f32.mrf.mxu3  ;;  %v1841_v18 = vor.u32 %v1985_v11, %v1840_v10  ;;  %v1845_v20 = vor.u32 %v1984_v13, %v1842_v16 }
  0xee   :  { %2169 = vst [vmem:[%s3064_s3 + $0x20] sm:$0xff] %v2029_v21   ;;  %v694_v26 = vpop.f32.mrf.mxu0  ;;  %v2707_v9 = vadd.f32 %v940_v7, %v771_v6 }
  0xef   :  { %v863_v27 = vpop.f32.mrf.mxu1 }
  0xf0   :  { %v864_v28 = vadd.f32 %v863_v27, %v694_v26  ;;  %v1238_v17 = vadd.f32 %v2495_v57, %v2707_v9 }
  0xf1   :  { %733 = vmatmul.bf16.gmra.mxu0 %v1713_v23 }
  0xf2   :  { %v1398_v36 = vadd.f32 %v1397_v14, %v864_v28  ;;  %v1468_v37 = vmul.f32 %v864_v28, %v864_v28  ;;  %902 = vmatmul.bf16.gmra.mxu1 %v1717_v24  ;;  %v1207_v52 = vadd.f32 %v2495_v57, %v864_v28 }
  0xf4   :  { %v1531_v43 = vadd.f32 %v1530_v22, %v1468_v37  ;;  %v2109_v22 = vpack.c.bf16 %v1238_v17, %v1237_v8  ;;  %813 = vmatmul.bf16.gmra.mxu2 %v1841_v18  ;;  %v774_v27 = vpop.f32.mrf.mxu2  ;;  %v1730_v37 = vld [vmem:[%s3062_s0 + $0xf8] sm:$0xf0] }
  0xf5   :  { %982 = vmatmul.bf16.gmra.mxu3 %v1845_v20  ;;  %v943_v28 = vpop.f32.mrf.mxu3 }
  0xf6   :  { %v696_v45 = vpop.f32.mrf.mxu0  ;;  %2185 = vst [vmem:[%s3064_s3 + $0xa0] sm:$0xff] %v2109_v22  }
  0xf7   :  { %v865_v47 = vpop.f32.mrf.mxu1 }
  0xf8   :  { %v866_v48 = vadd.f32 %v865_v47, %v696_v45 }
  0xfa   :  { %v1208_v53 = vadd.f32 %v2495_v57, %v866_v48  ;;  %v1399_v54 = vadd.f32 %v1398_v36, %v866_v48  ;;  %v1469_v55 = vmul.f32 %v866_v48, %v866_v48  ;;  %v1956_v36 = vld [vmem:[%s3062_s0 + $0xf4] sm:$0xf] }
  0xfb   :  { %v1733_v42 = vor.u32 %v1956_v36, %v1730_v37 }
  0xfc   :  { %v2034_v62 = vpack.c.bf16 %v1208_v53, %v1207_v52  ;;  %v1532_v63 = vadd.f32 %v1531_v43, %v1469_v55  ;;  %v2743_v43 = vadd.f32 %v943_v28, %v774_v27  ;;  %v776_v48 = vpop.f32.mrf.mxu2  ;;  %v1848_v53 = vld [vmem:[%s3062_s0 + $0x1e0] sm:$0xf]  ;;  %v1986_v55 = vld [vmem:[%s3062_s0 + $0x1e4] sm:$0xf]  ;;  %v1989_v27 = vld [vmem:[%s3062_s0 + $0x1f4] sm:$0xf0] }
  0xfd   :  { %v945_v49 = vpop.f32.mrf.mxu3  ;;  %v1988_v28 = vld [vmem:[%s3062_s0 + $0x1f4] sm:$0xf] }
  0xfe   :  { %2170 = vst [vmem:[%s3064_s3 + $0x28] sm:$0xff] %v2034_v62   ;;  %v699_v3 = vpop.f32.mrf.mxu0  ;;  %v1239_v51 = vadd.f32 %v2495_v57, %v2743_v43  ;;  %v2747_v52 = vadd.f32 %v945_v49, %v776_v48 }
  0xff   :  { %v868_v4 = vpop.f32.mrf.mxu1 }
 0x100   :  { %v869_v5 = vadd.f32 %v868_v4, %v699_v3  ;;  %v1240_v61 = vadd.f32 %v2495_v57, %v2747_v52 }
 0x101   :  { %738 = vmatmul.bf16.gmra.mxu0 %v1721_v0 }
 0x102   :  { %v1400_v14 = vadd.f32 %v1399_v54, %v869_v5  ;;  %v1470_v15 = vmul.f32 %v869_v5, %v869_v5  ;;  %907 = vmatmul.bf16.gmra.mxu1 %v1725_v1  ;;  %v1209_v29 = vadd.f32 %v2495_v57, %v869_v5  ;;  %v1987_v54 = vld [vmem:[%s3062_s0 + $0x1e4] sm:$0xf0]  ;;  %v2114_v1 = vpack.c.bf16 %v1240_v61, %v1239_v51 }
 0x103   :  { %v1849_v62 = vor.u32 %v1987_v54, %v1848_v53 }
 0x104   :  { %v1533_v21 = vadd.f32 %v1532_v63, %v1470_v15  ;;  %v1853_v63 = vor.u32 %v1986_v55, %v1850_v60  ;;  %2186 = vst [vmem:[%s3064_s3 + $0xa8] sm:$0xff] %v2114_v1   ;;  %v779_v6 = vpop.f32.mrf.mxu2 }
 0x105   :  { %818 = vmatmul.bf16.gmra.mxu2 %v1849_v62  ;;  %v948_v7 = vpop.f32.mrf.mxu3 }
 0x106   :  { %v701_v23 = vpop.f32.mrf.mxu0  ;;  %987 = vmatmul.bf16.gmra.mxu3 %v1853_v63  ;;  %v2771_v16 = vadd.f32 %v948_v7, %v779_v6 }
 0x107   :  { %v870_v24 = vpop.f32.mrf.mxu1 }
 0x108   :  { %v871_v26 = vadd.f32 %v870_v24, %v701_v23  ;;  %v1241_v23 = vadd.f32 %v2495_v57, %v2771_v16 }
 0x10a   :  { %v1210_v30 = vadd.f32 %v2495_v57, %v871_v26  ;;  %v1401_v31 = vadd.f32 %v1400_v14, %v871_v26  ;;  %v1471_v33 = vmul.f32 %v871_v26, %v871_v26  ;;  %v1856_v26 = vld [vmem:[%s3062_s0 + $0x1f0] sm:$0xf] }
 0x10c   :  { %v2039_v38 = vpack.c.bf16 %v1210_v30, %v1209_v29  ;;  %v1534_v40 = vadd.f32 %v1533_v21, %v1471_v33  ;;  %v781_v21 = vpop.f32.mrf.mxu2  ;;  %v1858_v33 = vld [vmem:[%s3062_s0 + $0x1f8] sm:$0xf0] }
 0x10d   :  { %v950_v22 = vpop.f32.mrf.mxu3  ;;  %v1861_v35 = vor.u32 %v1988_v28, %v1858_v33 }
 0x10e   :  { %2171 = vst [vmem:[%s3064_s3 + $0x30] sm:$0xff] %v2039_v38   ;;  %v704_v44 = vpop.f32.mrf.mxu0  ;;  %v2775_v24 = vadd.f32 %v950_v22, %v781_v21 }
 0x10f   :  { %v873_v45 = vpop.f32.mrf.mxu1 }
 0x110   :  { %v874_v47 = vadd.f32 %v873_v45, %v704_v44  ;;  %v1242_v34 = vadd.f32 %v2495_v57, %v2775_v24 }
 0x111   :  { %743 = vmatmul.bf16.gmra.mxu0 %v1729_v41 }
 0x112   :  { %v1402_v56 = vadd.f32 %v1401_v31, %v874_v47  ;;  %v1472_v59 = vmul.f32 %v874_v47, %v874_v47  ;;  %912 = vmatmul.bf16.gmra.mxu1 %v1733_v42  ;;  %v1211_v8 = vadd.f32 %v2495_v57, %v874_v47  ;;  %v1857_v31 = vor.u32 %v1989_v27, %v1856_v26 }
 0x113   :  { %v2119_v37 = vpack.c.bf16 %v1242_v34, %v1241_v23 }
 0x114   :  { %v1535_v0 = vadd.f32 %v1534_v40, %v1472_v59  ;;  %v784_v42 = vpop.f32.mrf.mxu2 }
 0x115   :  { %823 = vmatmul.bf16.gmra.mxu2 %v1857_v31  ;;  %2187 = vst [vmem:[%s3064_s3 + $0xb0] sm:$0xff] %v2119_v37   ;;  %v953_v44 = vpop.f32.mrf.mxu3 }
 0x116   :  { %v706_v3 = vpop.f32.mrf.mxu0  ;;  %992 = vmatmul.bf16.gmra.mxu3 %v1861_v35  ;;  %v2799_v54 = vadd.f32 %v953_v44, %v784_v42 }
 0x117   :  { %v875_v4 = vpop.f32.mrf.mxu1 }
 0x118   :  { %v876_v5 = vadd.f32 %v875_v4, %v706_v3  ;;  %v1243_v62 = vadd.f32 %v2495_v57, %v2799_v54 }
 0x11a   :  { %v1212_v10 = vadd.f32 %v2495_v57, %v876_v5  ;;  %v1403_v11 = vadd.f32 %v1402_v56, %v876_v5  ;;  %v1473_v13 = vmul.f32 %v876_v5, %v876_v5 }
 0x11c   :  { %v2044_v14 = vpack.c.bf16 %v1212_v10, %v1211_v8  ;;  %v1536_v15 = vadd.f32 %v1535_v0, %v1473_v13  ;;  %v786_v60 = vpop.f32.mrf.mxu2 }
 0x11d   :  { %v955_v61 = vpop.f32.mrf.mxu3 }
 0x11e   :  { %2172 = vst [vmem:[%s3064_s3 + $0x38] sm:$0xff] %v2044_v14   ;;  %v709_v17 = vpop.f32.mrf.mxu0  ;;  %v2803_v63 = vadd.f32 %v955_v61, %v786_v60 }
 0x11f   :  { %v878_v18 = vpop.f32.mrf.mxu1 }
 0x120   :  { %v879_v20 = vadd.f32 %v878_v18, %v709_v17  ;;  %v1244_v3 = vadd.f32 %v2495_v57, %v2803_v63 }
 0x122   :  { %v1404_v29 = vadd.f32 %v1403_v11, %v879_v20  ;;  %v1474_v30 = vmul.f32 %v879_v20, %v879_v20  ;;  %v1213_v45 = vadd.f32 %v2495_v57, %v879_v20  ;;  %v2124_v5 = vpack.c.bf16 %v1244_v3, %v1243_v62 }
 0x124   :  { %v1537_v36 = vadd.f32 %v1536_v15, %v1474_v30  ;;  %2188 = vst [vmem:[%s3064_s3 + $0xb8] sm:$0xff] %v2124_v5   ;;  %v789_v10 = vpop.f32.mrf.mxu2 }
 0x125   :  { %v958_v11 = vpop.f32.mrf.mxu3 }
 0x126   :  { %v711_v38 = vpop.f32.mrf.mxu0  ;;  %v2817_v21 = vadd.f32 %v958_v11, %v789_v10 }
 0x127   :  { %v880_v40 = vpop.f32.mrf.mxu1 }
 0x128   :  { %v881_v41 = vadd.f32 %v880_v40, %v711_v38  ;;  %v1245_v28 = vadd.f32 %v2495_v57, %v2817_v21 }
 0x12a   :  { %v1214_v47 = vadd.f32 %v2495_v57, %v881_v41  ;;  %v1405_v48 = vadd.f32 %v1404_v29, %v881_v41  ;;  %v1475_v49 = vmul.f32 %v881_v41, %v881_v41 }
 0x12c   :  { %v2049_v51 = vpack.c.bf16 %v1214_v47, %v1213_v45  ;;  %v1538_v53 = vadd.f32 %v1537_v36, %v1475_v49  ;;  %v791_v26 = vpop.f32.mrf.mxu2 }
 0x12d   :  { %v960_v27 = vpop.f32.mrf.mxu3 }
 0x12e   :  { %2173 = vst [vmem:[%s3064_s3 + $0x40] sm:$0xff] %v2049_v51   ;;  %v714_v55 = vpop.f32.mrf.mxu0  ;;  %v2821_v29 = vadd.f32 %v960_v27, %v791_v26 }
 0x12f   :  { %v883_v56 = vpop.f32.mrf.mxu1 }
 0x130   :  { %v884_v59 = vadd.f32 %v883_v56, %v714_v55  ;;  %v1246_v30 = vadd.f32 %v2495_v57, %v2821_v29 }
 0x132   :  { %v1406_v0 = vadd.f32 %v1405_v48, %v884_v59  ;;  %v1476_v1 = vmul.f32 %v884_v59, %v884_v59  ;;  %v1215_v13 = vadd.f32 %v2495_v57, %v884_v59  ;;  %v2129_v33 = vpack.c.bf16 %v1246_v30, %v1245_v28 }
 0x134   :  { %v1539_v4 = vadd.f32 %v1538_v53, %v1476_v1  ;;  %2189 = vst [vmem:[%s3064_s3 + $0xc0] sm:$0xff] %v2129_v33   ;;  %v794_v38 = vpop.f32.mrf.mxu2 }
 0x136   :  { %v716_v6 = vpop.f32.mrf.mxu0  ;;  %v963_v40 = vpop.f32.mrf.mxu3 }
 0x137   :  { %v885_v7 = vpop.f32.mrf.mxu1  ;;  %v2843_v47 = vadd.f32 %v963_v40, %v794_v38 }
 0x138   :  { %v886_v8 = vadd.f32 %v885_v7, %v716_v6 }
 0x139   :  { %v1247_v55 = vadd.f32 %v2495_v57, %v2843_v47 }
 0x13a   :  { %v1216_v14 = vadd.f32 %v2495_v57, %v886_v8  ;;  %v1407_v15 = vadd.f32 %v1406_v0, %v886_v8  ;;  %v1477_v17 = vmul.f32 %v886_v8, %v886_v8 }
 0x13c   :  { %v2054_v18 = vpack.c.bf16 %v1216_v14, %v1215_v13  ;;  %v2812_v20 = vadd.f32 %v1539_v4, %v1477_v17  ;;  %v796_v51 = vpop.f32.mrf.mxu2 }
 0x13e   :  { %2174 = vst [vmem:[%s3064_s3 + $0x48] sm:$0xff] %v2054_v18   ;;  %v719_v22 = vpop.f32.mrf.mxu0  ;;  %v965_v53 = vpop.f32.mrf.mxu3 }
 0x13f   :  { %v888_v23 = vpop.f32.mrf.mxu1  ;;  %v2847_v56 = vadd.f32 %v965_v53, %v796_v51 }
 0x140   :  { %v2825_v31 = vadd.f32 %v888_v23, %v719_v22 }
 0x141   :  { %v1248_v59 = vadd.f32 %v2495_v57, %v2847_v56 }
 0x142   :  { %v1408_v36 = vadd.f32 %v1407_v15, %v2825_v31  ;;  %v1217_v41 = vadd.f32 %v2495_v57, %v2825_v31 }
 0x143   :  { %v2134_v60 = vpack.c.bf16 %v1248_v59, %v1247_v55 }
 0x144   :  { %v799_v3 = vpop.f32.mrf.mxu2 }
 0x145   :  { %2190 = vst [vmem:[%s3064_s3 + $0xc8] sm:$0xff] %v2134_v60  }
 0x146   :  { %v721_v34 = vpop.f32.mrf.mxu0  ;;  %v968_v4 = vpop.f32.mrf.mxu3 }
 0x147   :  { %v890_v35 = vpop.f32.mrf.mxu1  ;;  %v2865_v8 = vadd.f32 %v968_v4, %v799_v3 }
 0x148   :  { %v2831_v37 = vadd.f32 %v890_v35, %v721_v34 }
 0x149   :  { %v1249_v15 = vadd.f32 %v2495_v57, %v2865_v8 }
 0x14a   :  { %v1218_v42 = vadd.f32 %v2495_v57, %v2831_v37  ;;  %v2838_v44 = vadd.f32 %v1408_v36, %v2831_v37 }
 0x14c   :  { %v2059_v45 = vpack.c.bf16 %v1218_v42, %v1217_v41  ;;  %v801_v13 = vpop.f32.mrf.mxu2 }
 0x14e   :  { %2175 = vst [vmem:[%s3064_s3 + $0x50] sm:$0xff] %v2059_v45   ;;  %v724_v48 = vpop.f32.mrf.mxu0  ;;  %v970_v14 = vpop.f32.mrf.mxu3 }
 0x14f   :  { %v893_v49 = vpop.f32.mrf.mxu1  ;;  %v2869_v17 = vadd.f32 %v970_v14, %v801_v13 }
 0x150   :  { %v2851_v61 = vadd.f32 %v893_v49, %v724_v48 }
 0x151   :  { %v1250_v18 = vadd.f32 %v2495_v57, %v2869_v17 }
 0x152   :  { %v1219_v5 = vadd.f32 %v2495_v57, %v2851_v61 }
 0x153   :  { %v2139_v22 = vpack.c.bf16 %v1250_v18, %v1249_v15  ;;  %v1478_v15 = vmul.f32 %v2825_v31, %v2825_v31 }
 0x155   :  { %2191 = vst [vmem:[%s3064_s3 + $0xd0] sm:$0xff] %v2139_v22  }
 0x156   :  { %v726_v62 = vpop.f32.mrf.mxu0  ;;  %v973_v33 = vpop.f32.mrf.mxu3 }
 0x157   :  { %v895_v0 = vpop.f32.mrf.mxu1  ;;  %v804_v30 = vpop.f32.mrf.mxu2 }
 0x158   :  { %v2856_v1 = vadd.f32 %v895_v0, %v726_v62  ;;  %v2881_v38 = vadd.f32 %v973_v33, %v804_v30  ;;  %v1541_v30 = vadd.f32 %v2812_v20, %v1478_v15  ;;  %v1480_v33 = vmul.f32 %v2851_v61, %v2851_v61 }
 0x15a   :  { %v1220_v6 = vadd.f32 %v2495_v57, %v2856_v1  ;;  %v1251_v48 = vadd.f32 %v2495_v57, %v2881_v38  ;;  %v1481_v31 = vmul.f32 %v2856_v1, %v2856_v1 }
 0x15c   :  { %v2064_v7 = vpack.c.bf16 %v1220_v6, %v1219_v5 }
 0x15e   :  { %2176 = vst [vmem:[%s3064_s3 + $0x58] sm:$0xff] %v2064_v7   ;;  %v729_v10 = vpop.f32.mrf.mxu0  ;;  %v975_v45 = vpop.f32.mrf.mxu3 }
 0x15f   :  { %v898_v11 = vpop.f32.mrf.mxu1  ;;  %v806_v42 = vpop.f32.mrf.mxu2 }
 0x160   :  { %v899_v23 = vadd.f32 %v898_v11, %v729_v10  ;;  %v2885_v49 = vadd.f32 %v975_v45, %v806_v42 }
 0x162   :  { %v1221_v34 = vadd.f32 %v2495_v57, %v899_v23  ;;  %v1252_v51 = vadd.f32 %v2495_v57, %v2885_v49 }
 0x164   :  { %v2144_v53 = vpack.c.bf16 %v1252_v51, %v1251_v48  ;;  %v1482_v51 = vmul.f32 %v899_v23, %v899_v23 }
 0x166   :  { %v731_v26 = vpop.f32.mrf.mxu0  ;;  %2192 = vst [vmem:[%s3064_s3 + $0xd8] sm:$0xff] %v2144_v53  }
 0x167   :  { %v900_v27 = vpop.f32.mrf.mxu1  ;;  %v809_v0 = vpop.f32.mrf.mxu2 }
 0x168   :  { %v901_v28 = vadd.f32 %v900_v27, %v731_v26  ;;  %v978_v3 = vpop.f32.mrf.mxu3  ;;  %v1479_v26 = vmul.f32 %v2831_v37, %v2831_v37  ;;  %v1410_v37 = vadd.f32 %v2838_v44, %v2851_v61 }
 0x169   :  { %v2897_v11 = vadd.f32 %v978_v3, %v809_v0 }
 0x16a   :  { %v1222_v35 = vadd.f32 %v2495_v57, %v901_v28  ;;  %v1411_v53 = vadd.f32 %v1410_v37, %v2856_v1  ;;  %v1483_v3 = vmul.f32 %v901_v28, %v901_v28 }
 0x16b   :  { %v1253_v22 = vadd.f32 %v2495_v57, %v2897_v11 }
 0x16c   :  { %v2069_v36 = vpack.c.bf16 %v1222_v35, %v1221_v34 }
 0x16e   :  { %2177 = vst [vmem:[%s3064_s3 + $0x60] sm:$0xff] %v2069_v36   ;;  %v734_v40 = vpop.f32.mrf.mxu0  ;;  %v1542_v36 = vadd.f32 %v1541_v30, %v1479_v26 }
 0x16f   :  { %v903_v41 = vpop.f32.mrf.mxu1  ;;  %v811_v13 = vpop.f32.mrf.mxu2 }
 0x170   :  { %v904_v55 = vadd.f32 %v903_v41, %v734_v40  ;;  %v980_v14 = vpop.f32.mrf.mxu3  ;;  %v1543_v48 = vadd.f32 %v1542_v36, %v1480_v33 }
 0x171   :  { %v2901_v18 = vadd.f32 %v980_v14, %v811_v13 }
 0x172   :  { %v1223_v4 = vadd.f32 %v2495_v57, %v904_v55  ;;  %v1544_v0 = vadd.f32 %v1543_v48, %v1481_v31 }
 0x173   :  { %v1254_v27 = vadd.f32 %v2495_v57, %v2901_v18 }
 0x175   :  { %v2149_v34 = vpack.c.bf16 %v1254_v27, %v1253_v22 }
 0x176   :  { %v736_v59 = vpop.f32.mrf.mxu0 }
 0x177   :  { %v905_v60 = vpop.f32.mrf.mxu1  ;;  %2193 = vst [vmem:[%s3064_s3 + $0xe0] sm:$0xff] %v2149_v34   ;;  %v814_v20 = vpop.f32.mrf.mxu2 }
 0x178   :  { %v906_v62 = vadd.f32 %v905_v60, %v736_v59  ;;  %v983_v45 = vpop.f32.mrf.mxu3 }
 0x179   :  { %v2925_v15 = vadd.f32 %v983_v45, %v814_v20 }
 0x17a   :  { %v1224_v5 = vadd.f32 %v2495_v57, %v906_v62  ;;  %v1485_v1 = vmul.f32 %v906_v62, %v906_v62 }
 0x17c   :  { %v2074_v6 = vpack.c.bf16 %v1224_v5, %v1223_v4  ;;  %v1412_v4 = vadd.f32 %v1411_v53, %v899_v23 }
 0x17e   :  { %2178 = vst [vmem:[%s3064_s3 + $0x68] sm:$0xff] %v2074_v6   ;;  %v739_v7 = vpop.f32.mrf.mxu0  ;;  %v1545_v6 = vadd.f32 %v1544_v0, %v1482_v51 }
 0x17f   :  { %v908_v10 = vpop.f32.mrf.mxu1  ;;  %v816_v22 = vpop.f32.mrf.mxu2 }
 0x180   :  { %v909_v35 = vadd.f32 %v908_v10, %v739_v7  ;;  %v1484_v7 = vmul.f32 %v904_v55, %v904_v55  ;;  %v1413_v10 = vadd.f32 %v1412_v4, %v901_v28  ;;  %v1546_v44 = vadd.f32 %v1545_v6, %v1483_v3  ;;  %v985_v26 = vpop.f32.mrf.mxu3 }
 0x181   :  { %v2927_v30 = vadd.f32 %v985_v26, %v816_v22  ;;  %v1255_v28 = vadd.f32 %v2495_v57, %v2925_v15 }
 0x182   :  { %v1225_v59 = vadd.f32 %v2495_v57, %v909_v35  ;;  %v1414_v14 = vadd.f32 %v1413_v10, %v904_v55  ;;  %v1547_v27 = vadd.f32 %v1546_v44, %v1484_v7  ;;  %v1486_v33 = vmul.f32 %v909_v35, %v909_v35 }
 0x183   :  { %v1256_v36 = vadd.f32 %v2495_v57, %v2927_v30 }
 0x184   :  { %v1415_v23 = vadd.f32 %v1414_v14, %v906_v62  ;;  %v1548_v31 = vadd.f32 %v1547_v27, %v1485_v1 }
 0x186   :  { %v741_v40 = vpop.f32.mrf.mxu0  ;;  %v1549_v37 = vadd.f32 %v1548_v31, %v1486_v33  ;;  %v1493_v33 = vmul.f32 %v2587_v19, %v2587_v19  ;;  %v1494_v31 = vmul.f32 %v2623_v50, %v2623_v50 }
 0x187   :  { %v910_v41 = vpop.f32.mrf.mxu1 }
 0x188   :  { %v911_v42 = vadd.f32 %v910_v41, %v741_v40  ;;  %v1416_v40 = vadd.f32 %v1415_v23, %v909_v35  ;;  %v2154_v41 = vpack.c.bf16 %v1256_v36, %v1255_v28 }
 0x189   :  { %v988_v0 = vpop.f32.mrf.mxu3 }
 0x18a   :  { %v1226_v60 = vadd.f32 %v2495_v57, %v911_v42  ;;  %v1487_v55 = vmul.f32 %v911_v42, %v911_v42  ;;  %v1417_v20 = vadd.f32 %v1416_v40, %v911_v42  ;;  %2194 = vst [vmem:[%s3064_s3 + $0xe8] sm:$0xff] %v2154_v41   ;;  %v1490_v42 = vmul.f32 %v2543_v39, %v2543_v39 }
 0x18c   :  { %v2079_v5 = vpack.c.bf16 %v1226_v60, %v1225_v59  ;;  %v1550_v62 = vadd.f32 %v1549_v37, %v1487_v55  ;;  %v819_v60 = vpop.f32.mrf.mxu2  ;;  %v1495_v37 = vmul.f32 %v2627_v58, %v2627_v58 }
 0x18d   :  { %v2950_v26 = vadd.f32 %v988_v0, %v819_v60 }
 0x18e   :  { %2179 = vst [vmem:[%s3064_s3 + $0x70] sm:$0xff] %v2079_v5   ;;  %v744_v61 = vpop.f32.mrf.mxu0 }
 0x18f   :  { %v913_v13 = vpop.f32.mrf.mxu1 }
 0x190   :  { %v914_v34 = vadd.f32 %v913_v13, %v744_v61  ;;  %v1491_v61 = vmul.f32 %v2547_v46, %v2547_v46 }
 0x191   :  { %v990_v27 = vpop.f32.mrf.mxu3 }
 0x192   :  { %v1488_v45 = vmul.f32 %v914_v34, %v914_v34  ;;  %v1418_v53 = vadd.f32 %v1417_v20, %v914_v34  ;;  %v1227_v3 = vadd.f32 %v2495_v57, %v914_v34 }
 0x194   :  { %v1551_v4 = vadd.f32 %v1550_v62, %v1488_v45  ;;  %v1496_v45 = vmul.f32 %v2663_v25, %v2663_v25 }
 0x196   :  { %v746_v48 = vpop.f32.mrf.mxu0 }
 0x197   :  { %v915_v51 = vpop.f32.mrf.mxu1 }
 0x198   :  { %v916_v59 = vadd.f32 %v915_v51, %v746_v48 }
 0x19a   :  { %v1228_v35 = vadd.f32 %v2495_v57, %v916_v59  ;;  %v1419_v5 = vadd.f32 %v1418_v53, %v916_v59  ;;  %v1489_v6 = vmul.f32 %v916_v59, %v916_v59  ;;  %v1492_v57 = vmul.f32 %v2583_v12, %v2583_v12 }
 0x19b   :  { %v1497_v53 = vmul.f32 %v2667_v32, %v2667_v32 }
 0x19c   :  { %v2084_v7 = vpack.c.bf16 %v1228_v35, %v1227_v3  ;;  %v1420_v10 = vadd.f32 %v1419_v5, %v2543_v39  ;;  %v1552_v44 = vadd.f32 %v1551_v4, %v1489_v6  ;;  %v821_v39 = vpop.f32.mrf.mxu2  ;;  %v1499_v4 = vmul.f32 %v2707_v9, %v2707_v9 }
 0x19d   :  { %v2952_v23 = vadd.f32 %v990_v27, %v821_v39  ;;  %v1500_v5 = vmul.f32 %v2743_v43, %v2743_v43  ;;  %v1503_v39 = vmul.f32 %v2775_v24, %v2775_v24 }
 0x19e   :  { %2180 = vst [vmem:[%s3064_s3 + $0x78] sm:$0xff] %v2084_v7   ;;  %v1421_v13 = vadd.f32 %v1420_v10, %v2547_v46  ;;  %v1553_v14 = vadd.f32 %v1552_v44, %v1490_v42  ;;  %v2214_v46 = vld [vmem:[%s3063_s2] ss:$0 sm:$0xff] }
 0x19f   :  { %v1257_v36 = vadd.f32 %v2214_v46, %v2950_v26 }
 0x1a0   :  { %v1422_v1 = vadd.f32 %v1421_v13, %v2583_v12  ;;  %v1554_v22 = vadd.f32 %v1553_v14, %v1491_v61  ;;  %v1258_v12 = vadd.f32 %v2214_v46, %v2952_v23 }
 0x1a2   :  { %v1423_v34 = vadd.f32 %v1422_v1, %v2587_v19  ;;  %v1555_v28 = vadd.f32 %v1554_v22, %v1492_v57  ;;  %v2159_v41 = vpack.c.bf16 %v1258_v12, %v1257_v36 }
 0x1a4   :  { %v1424_v40 = vadd.f32 %v1423_v34, %v2623_v50  ;;  %v1556_v55 = vadd.f32 %v1555_v28, %v1493_v33  ;;  %2195 = vst [vmem:[%s3064_s3 + $0xf0] sm:$0xff] %v2159_v41   ;;  %v824_v62 = vpop.f32.mrf.mxu2  ;;  %v993_v50 = vpop.f32.mrf.mxu3 }
 0x1a6   :  { %v1425_v19 = vadd.f32 %v1424_v40, %v2627_v58  ;;  %v1557_v20 = vadd.f32 %v1556_v55, %v1494_v31  ;;  %v1498_v58 = vmul.f32 %v2703_v2, %v2703_v2  ;;  %v1507_v40 = vmul.f32 %v2821_v29, %v2821_v29 }
 0x1a8   :  { %v1426_v48 = vadd.f32 %v1425_v19, %v2663_v25  ;;  %v1558_v51 = vadd.f32 %v1557_v20, %v1495_v37 }
 0x1aa   :  { %v1427_v59 = vadd.f32 %v1426_v48, %v2667_v32  ;;  %v1559_v60 = vadd.f32 %v1558_v51, %v1496_v45  ;;  %v2986_v32 = vadd.f32 %v993_v50, %v824_v62 }
 0x1ac   :  { %v1428_v0 = vadd.f32 %v1427_v59, %v2703_v2  ;;  %v1560_v3 = vadd.f32 %v1559_v60, %v1497_v53  ;;  %v826_v7 = vpop.f32.mrf.mxu2  ;;  %v995_v10 = vpop.f32.mrf.mxu3  ;;  %v1501_v2 = vmul.f32 %v2747_v52, %v2747_v52 }
 0x1ad   :  { %v2988_v44 = vadd.f32 %v995_v10, %v826_v7  ;;  %v1518_v10 = vmul.f32 %v2950_v26, %v2950_v26 }
 0x1ae   :  { %v1429_v25 = vadd.f32 %v1428_v0, %v2707_v9  ;;  %v1561_v35 = vadd.f32 %v1560_v3, %v1498_v58  ;;  %v1259_v9 = vadd.f32 %v2214_v46, %v2986_v32  ;;  %v1514_v0 = vmul.f32 %v2897_v11, %v2897_v11 }
 0x1af   :  { %v1260_v14 = vadd.f32 %v2214_v46, %v2988_v44 }
 0x1b0   :  { %v1430_v6 = vadd.f32 %v1429_v25, %v2743_v43  ;;  %v1562_v42 = vadd.f32 %v1561_v35, %v1499_v4  ;;  %v1502_v43 = vmul.f32 %v2771_v16, %v2771_v16  ;;  %v1515_v25 = vmul.f32 %v2901_v18, %v2901_v18 }
 0x1b1   :  { %v2164_v22 = vpack.c.bf16 %v1260_v14, %v1259_v9  ;;  %v1520_v9 = vmul.f32 %v2986_v32, %v2986_v32 }
 0x1b2   :  { %v1431_v61 = vadd.f32 %v1430_v6, %v2747_v52  ;;  %v1563_v13 = vadd.f32 %v1562_v42, %v1500_v5  ;;  %v1504_v52 = vmul.f32 %v2799_v54, %v2799_v54  ;;  %v1516_v5 = vmul.f32 %v2925_v15, %v2925_v15 }
 0x1b3   :  { %2196 = vst [vmem:[%s3064_s3 + $0xf8] sm:$0xff] %v2164_v22   ;;  %v1517_v42 = vmul.f32 %v2927_v30, %v2927_v30 }
 0x1b4   :  { %v1564_v57 = vadd.f32 %v1563_v13, %v1501_v2  ;;  %v1432_v1 = vadd.f32 %v1431_v61, %v2771_v16  ;;  %v1505_v16 = vmul.f32 %v2803_v63, %v2803_v63  ;;  %v1519_v61 = vmul.f32 %v2952_v23, %v2952_v23 }
 0x1b6   :  { %v1433_v27 = vadd.f32 %v1432_v1, %v2775_v24  ;;  %v1565_v33 = vadd.f32 %v1564_v57, %v1502_v43  ;;  %v1506_v24 = vmul.f32 %v2817_v21, %v2817_v21  ;;  %v1521_v43 = vmul.f32 %v2988_v44, %v2988_v44 }
 0x1b8   :  { %v1434_v34 = vadd.f32 %v1433_v27, %v2799_v54  ;;  %v1566_v28 = vadd.f32 %v1565_v33, %v1503_v39  ;;  %v1508_v54 = vmul.f32 %v2843_v47, %v2843_v47  ;;  %v1591_v39 = vlaneseq }
 0x1ba   :  { %v1435_v46 = vadd.f32 %v1434_v34, %v2803_v63  ;;  %v1567_v36 = vadd.f32 %v1566_v28, %v1504_v52  ;;  %v1509_v63 = vmul.f32 %v2847_v56, %v2847_v56  ;;  %v1592_v34 = vshrl.u32 %v1591_v39, 7 }
 0x1bc   :  { %v1436_v12 = vadd.f32 %v1435_v46, %v2817_v21  ;;  %v1568_v31 = vadd.f32 %v1567_v36, %v1505_v16  ;;  %v1510_v21 = vmul.f32 %v2865_v8, %v2865_v8  ;;  %vm1594_vm0 = vcmp.eq.s32.totalorder %v1592_v34, 1 }
 0x1bd   :  { %vm1593_vm1 = vcmp.eq.s32.totalorder %v1592_v34, 0 }
 0x1be   :  { %v1437_v55 = vadd.f32 %v1436_v12, %v2821_v29  ;;  %v1569_v41 = vadd.f32 %v1568_v31, %v1506_v24  ;;  %v1511_v29 = vmul.f32 %v2869_v17, %v2869_v17 }
 0x1c0   :  { %v1438_v37 = vadd.f32 %v1437_v55, %v2843_v47  ;;  %v1570_v19 = vadd.f32 %v1569_v41, %v1507_v40  ;;  %v1512_v47 = vmul.f32 %v2881_v38, %v2881_v38 }
 0x1c2   :  { %v1439_v20 = vadd.f32 %v1438_v37, %v2847_v56  ;;  %v1571_v45 = vadd.f32 %v1570_v19, %v1508_v54  ;;  %v1513_v56 = vmul.f32 %v2885_v49, %v2885_v49 }
 0x1c4   :  { %v1440_v48 = vadd.f32 %v1439_v20, %v2865_v8  ;;  %v1572_v51 = vadd.f32 %v1571_v45, %v1509_v63 }
 0x1c6   :  { %v1441_v62 = vadd.f32 %v1440_v48, %v2869_v17  ;;  %v1573_v50 = vadd.f32 %v1572_v51, %v1510_v21 }
 0x1c8   :  { %v1442_v53 = vadd.f32 %v1441_v62, %v2881_v38  ;;  %v1574_v59 = vadd.f32 %v1573_v50, %v1511_v29 }
 0x1ca   :  { %v1443_v60 = vadd.f32 %v1442_v53, %v2885_v49  ;;  %v1575_v58 = vadd.f32 %v1574_v59, %v1512_v47 }
 0x1cc   :  { %v1444_v8 = vadd.f32 %v1443_v60, %v2897_v11  ;;  %v1576_v3 = vadd.f32 %v1575_v58, %v1513_v56 }
 0x1ce   :  { %v1577_v17 = vadd.f32 %v1576_v3, %v1514_v0  ;;  %v1445_v4 = vadd.f32 %v1444_v8, %v2901_v18 }
 0x1d0   :  { %v1578_v38 = vadd.f32 %v1577_v17, %v1515_v25  ;;  %v1446_v35 = vadd.f32 %v1445_v4, %v2925_v15 }
 0x1d2   :  { %v1579_v49 = vadd.f32 %v1578_v38, %v1516_v5  ;;  %v1447_v6 = vadd.f32 %v1446_v35, %v2927_v30 }
 0x1d4   :  { %v1580_v11 = vadd.f32 %v1579_v49, %v1517_v42  ;;  %v1448_v7 = vadd.f32 %v1447_v6, %v2950_v26 }
 0x1d6   :  { %v1581_v2 = vadd.f32 %v1580_v11, %v1518_v10  ;;  %v1449_v18 = vadd.f32 %v1448_v7, %v2952_v23 }
 0x1d8   :  { %v1582_v13 = vadd.f32 %v1581_v2, %v1519_v61  ;;  %v1450_v15 = vadd.f32 %v1449_v18, %v2986_v32 }
 0x1da   :  { %v1583_v14 = vadd.f32 %v1582_v13, %v1520_v9  ;;  %v1451_v30 = vadd.f32 %v1450_v15, %v2988_v44 }
 0x1dc   :  { %v1452_v57 = vrot.slane %v1451_v30, 4  ;;  %v1584_v26 = vadd.f32 %v1583_v14, %v1521_v43 }
 0x1de   :  { %v1453_v1 = vadd.f32 %v1452_v57, %v1451_v30  ;;  %v1585_v22 = vrot.slane %v1584_v26, 4 }
 0x1e0   :  { %v1454_v27 = vrot.slane %v1453_v1, 2  ;;  %v1586_v33 = vadd.f32 %v1585_v22, %v1584_v26 }
 0x1e2   :  { %v1455_v23 = vadd.f32 %v1454_v27, %v1453_v1  ;;  %v1587_v52 = vrot.slane %v1586_v33, 2 }
 0x1e4   :  { %v1588_v28 = vadd.f32 %v1587_v52, %v1586_v33  ;;  %v1456_v16 = vrot.slane %v1455_v23, 1 }
 0x1e6   :  { %v1589_v46 = vrot.slane %v1588_v28, 1  ;;  %v1457_v36 = vadd.f32 %v1456_v16, %v1455_v23 }
 0x1e8   :  { %v1590_v32 = vadd.f32 %v1589_v46, %v1588_v28 }
 0x1ea   :  { %v1595_v24 = vsel %vm1594_vm0, %v1590_v32, 0.0 }
 0x1eb   :  { %v1596_v12 = vsel %vm1593_vm1, %v1457_v36, %v1595_v24 }
 0x1ec   :  { %1597 = vst [vmem:[%s3065_s4] sm:$0xff] %v1596_v12 }

// kernel: _lambda_.27
= control target key start
LH: loop header
LB: loop body
LE: loop exit
PB: predicated region body
PF: predicated region fallthrough
CT: control target
= control target key end

     0   :  { %s678_s1 = inlined_call_operand.vmem [shape: bf16[128,128], index: 1, kind: input, shape index: {}]   ;;  %s679_s2 = inlined_call_operand.vmem [shape: f32[1,128], index: 2, kind: input, shape index: {}]   ;;  %s680_s0 = inlined_call_operand.vmem [shape: bf16[128,128], index: 0, kind: input, shape index: {}]   ;;  %s681_s3 = inlined_call_operand.vmem [shape: bf16[128,128], index: 3, kind: output, shape index: {0}]   ;;  %s682_s4 = inlined_call_operand.vmem [shape: f32[8,128], index: 4, kind: output, shape index: {1}]  }
   0x1   :  { %v484_v0 = vld [vmem:[%s678_s1 + $0x38] sm:$0xff]  ;;  %v483_v1 = vld [vmem:[%s678_s1 + $0x30] sm:$0xff]  ;;  %v482_v2 = vld [vmem:[%s678_s1 + $0x28] sm:$0xff] }
   0x2   :  { %180 = vmatpush.bf16.msra.mxu0 %v484_v0  ;;  %532 = vmatpush.bf16.msra.mxu1 %v484_v0  ;;  %v481_v3 = vld [vmem:[%s678_s1 + $0x20] sm:$0xff]  ;;  %v480_v4 = vld [vmem:[%s678_s1 + $0x18] sm:$0xff]  ;;  %v479_v5 = vld [vmem:[%s678_s1 + $0x10] sm:$0xff] }
   0x3   :  { %533 = vmatpush.bf16.msra.mxu2 %v484_v0  ;;  %534 = vmatpush.bf16.msra.mxu3 %v484_v0  ;;  %v478_v6 = vld [vmem:[%s678_s1 + $0x8] sm:$0xff]  ;;  %v477_v7 = vld [vmem:[%s678_s1] sm:$0xff]  ;;  %v471_v9 = vld [vmem:[%s680_s0 + $0x10] sm:$0xff] }
   0x4   :  { %v469_v8 = vld [vmem:[%s680_s0] sm:$0xff]  ;;  %v475_v11 = vld [vmem:[%s680_s0 + $0x30] sm:$0xff]  ;;  %v470_v12 = vld [vmem:[%s680_s0 + $0x8] sm:$0xff] }
   0x5   :  { %v473_v10 = vld [vmem:[%s680_s0 + $0x20] sm:$0xff]  ;;  %v472_v13 = vld [vmem:[%s680_s0 + $0x18] sm:$0xff]  ;;  %v474_v14 = vld [vmem:[%s680_s0 + $0x28] sm:$0xff] }
   0x6   :  { %181 = vmatpush.bf16.msra.mxu0 %v483_v1  ;;  %535 = vmatpush.bf16.msra.mxu1 %v483_v1  ;;  %v476_v15 = vld [vmem:[%s680_s0 + $0x38] sm:$0xff]  ;;  %v556_v18 = vld [vmem:[%s679_s2] ss:$0 sm:$0xff] }
   0x7   :  { %536 = vmatpush.bf16.msra.mxu2 %v483_v1  ;;  %537 = vmatpush.bf16.msra.mxu3 %v483_v1 }
   0xa   :  { %182 = vmatpush.bf16.msra.mxu0 %v482_v2  ;;  %538 = vmatpush.bf16.msra.mxu1 %v482_v2 }
   0xb   :  { %539 = vmatpush.bf16.msra.mxu2 %v482_v2  ;;  %540 = vmatpush.bf16.msra.mxu3 %v482_v2 }
   0xe   :  { %183 = vmatpush.bf16.msra.mxu0 %v481_v3  ;;  %541 = vmatpush.bf16.msra.mxu1 %v481_v3 }
   0xf   :  { %542 = vmatpush.bf16.msra.mxu2 %v481_v3  ;;  %543 = vmatpush.bf16.msra.mxu3 %v481_v3 }
  0x12   :  { %184 = vmatpush.bf16.msra.mxu0 %v480_v4  ;;  %544 = vmatpush.bf16.msra.mxu1 %v480_v4 }
  0x13   :  { %545 = vmatpush.bf16.msra.mxu2 %v480_v4  ;;  %546 = vmatpush.bf16.msra.mxu3 %v480_v4 }
  0x16   :  { %185 = vmatpush.bf16.msra.mxu0 %v479_v5  ;;  %547 = vmatpush.bf16.msra.mxu1 %v479_v5 }
  0x17   :  { %548 = vmatpush.bf16.msra.mxu2 %v479_v5  ;;  %549 = vmatpush.bf16.msra.mxu3 %v479_v5 }
  0x1a   :  { %186 = vmatpush.bf16.msra.mxu0 %v478_v6  ;;  %550 = vmatpush.bf16.msra.mxu1 %v478_v6 }
  0x1b   :  { %551 = vmatpush.bf16.msra.mxu2 %v478_v6  ;;  %552 = vmatpush.bf16.msra.mxu3 %v478_v6 }
  0x1e   :  { %187 = vmatpush.bf16.msra.mxu0 %v477_v7  ;;  %553 = vmatpush.bf16.msra.mxu1 %v477_v7 }
  0x1f   :  { %554 = vmatpush.bf16.msra.mxu2 %v477_v7  ;;  %555 = vmatpush.bf16.msra.mxu3 %v477_v7 }
  0x21   :  { %188 = vmatmul.bf16.vlgmr.msra.gmra.mxu0 %v469_v8  ;;  %198 = vmatmul.bf16.vlgmr.msra.gmra.mxu1 %v471_v9 }
  0x22   :  { %208 = vmatmul.bf16.vlgmr.msra.gmra.mxu2 %v473_v10  ;;  %218 = vmatmul.bf16.vlgmr.msra.gmra.mxu3 %v475_v11 }
  0x31   :  { %193 = vmatmul.bf16.gmra.mxu0 %v470_v12  ;;  %203 = vmatmul.bf16.gmra.mxu1 %v472_v13 }
  0x32   :  { %213 = vmatmul.bf16.gmra.mxu2 %v474_v14  ;;  %223 = vmatmul.bf16.gmra.mxu3 %v476_v15 }
  0x9e   :  { %v189_v16 = vpop.f32.mrf.mxu0  ;;  %v199_v17 = vpop.f32.mrf.mxu1 }
  0x9f   :  { %v288_v19 = vadd.f32 %v556_v18, %v199_v17  ;;  %v284_v24 = vadd.f32 %v556_v18, %v189_v16  ;;  %v353_v40 = vmul.f32 %v189_v16, %v189_v16  ;;  %v357_v56 = vmul.f32 %v199_v17, %v199_v17 }
  0xa5   :  { %v633_v20 = vpop.f32.mrf.mxu2  ;;  %v635_v21 = vpop.f32.mrf.mxu3 }
  0xa6   :  { %v191_v22 = vpop.f32.mrf.mxu0  ;;  %v201_v23 = vpop.f32.mrf.mxu1  ;;  %v292_v29 = vadd.f32 %v556_v18, %v633_v20  ;;  %v296_v30 = vadd.f32 %v556_v18, %v635_v21  ;;  %v361_v14 = vmul.f32 %v633_v20, %v633_v20 }
  0xa7   :  { %v285_v25 = vadd.f32 %v556_v18, %v191_v22  ;;  %v289_v26 = vadd.f32 %v556_v18, %v201_v23  ;;  %v354_v37 = vmul.f32 %v191_v22, %v191_v22  ;;  %v332_v42 = vadd.f32 %v191_v22, %v189_v16 }
  0xa8   :  { %v358_v61 = vmul.f32 %v201_v23, %v201_v23 }
  0xa9   :  { %v488_v27 = vpack.c.bf16 %v285_v25, %v284_v24  ;;  %v498_v28 = vpack.c.bf16 %v289_v26, %v288_v19  ;;  %v369_v43 = vadd.f32 %v354_v37, %v353_v40 }
  0xab   :  { %489 = vst [vmem:[%s681_s3] sm:$0xff] %v488_v27  }
  0xac   :  { %526 = vst [vmem:[%s681_s3 + $0x10] sm:$0xff] %v498_v28  }
  0xad   :  { %v211_v31 = vpop.f32.mrf.mxu2  ;;  %v645_v32 = vpop.f32.mrf.mxu3 }
  0xae   :  { %v194_v33 = vpop.f32.mrf.mxu0  ;;  %v204_v34 = vpop.f32.mrf.mxu1  ;;  %v293_v35 = vadd.f32 %v556_v18, %v211_v31  ;;  %v297_v36 = vadd.f32 %v556_v18, %v645_v32 }
  0xaf   :  { %v355_v41 = vmul.f32 %v194_v33, %v194_v33  ;;  %v333_v44 = vadd.f32 %v332_v42, %v194_v33  ;;  %v290_v45 = vadd.f32 %v556_v18, %v204_v34  ;;  %v286_v48 = vadd.f32 %v556_v18, %v194_v33 }
  0xb0   :  { %v508_v38 = vpack.c.bf16 %v293_v35, %v292_v29  ;;  %v518_v39 = vpack.c.bf16 %v297_v36, %v296_v30  ;;  %v359_v2 = vmul.f32 %v204_v34, %v204_v34  ;;  %v366_v30 = vmul.f32 %v645_v32, %v645_v32 }
  0xb1   :  { %v370_v49 = vadd.f32 %v369_v43, %v355_v41 }
  0xb2   :  { %528 = vst [vmem:[%s681_s3 + $0x20] sm:$0xff] %v508_v38  }
  0xb3   :  { %530 = vst [vmem:[%s681_s3 + $0x30] sm:$0xff] %v518_v39  }
  0xb5   :  { %v214_v46 = vpop.f32.mrf.mxu2  ;;  %v224_v47 = vpop.f32.mrf.mxu3 }
  0xb6   :  { %v196_v50 = vpop.f32.mrf.mxu0  ;;  %v206_v51 = vpop.f32.mrf.mxu1  ;;  %v294_v0 = vadd.f32 %v556_v18, %v214_v46  ;;  %v298_v1 = vadd.f32 %v556_v18, %v224_v47  ;;  %v367_v35 = vmul.f32 %v224_v47, %v224_v47 }
  0xb7   :  { %v287_v52 = vadd.f32 %v556_v18, %v196_v50  ;;  %v334_v53 = vadd.f32 %v333_v44, %v196_v50  ;;  %v356_v54 = vmul.f32 %v196_v50, %v196_v50  ;;  %v291_v55 = vadd.f32 %v556_v18, %v206_v51 }
  0xb8   :  { %v360_v10 = vmul.f32 %v206_v51, %v206_v51  ;;  %v390_v44 = vlaneseq }
  0xb9   :  { %v493_v57 = vpack.c.bf16 %v287_v52, %v286_v48  ;;  %v335_v58 = vadd.f32 %v334_v53, %v199_v17  ;;  %v371_v59 = vadd.f32 %v370_v49, %v356_v54  ;;  %v503_v60 = vpack.c.bf16 %v291_v55, %v290_v45 }
  0xba   :  { %v362_v17 = vmul.f32 %v211_v31, %v211_v31  ;;  %v391_v49 = vshrl.u32 %v390_v44, 7 }
  0xbb   :  { %525 = vst [vmem:[%s681_s3 + $0x8] sm:$0xff] %v493_v57   ;;  %v372_v62 = vadd.f32 %v371_v59, %v357_v56  ;;  %v336_v63 = vadd.f32 %v335_v58, %v201_v23  ;;  %v363_v23 = vmul.f32 %v214_v46, %v214_v46 }
  0xbc   :  { %527 = vst [vmem:[%s681_s3 + $0x18] sm:$0xff] %v503_v60   ;;  %vm393_vm0 = vcmp.eq.s32.totalorder %v391_v49, 1  ;;  %vm392_vm1 = vcmp.eq.s32.totalorder %v391_v49, 0 }
  0xbd   :  { %v337_v3 = vadd.f32 %v336_v63, %v204_v34  ;;  %v373_v4 = vadd.f32 %v372_v62, %v358_v61  ;;  %v216_v5 = vpop.f32.mrf.mxu2  ;;  %v226_v6 = vpop.f32.mrf.mxu3 }
  0xbe   :  { %v295_v7 = vadd.f32 %v556_v18, %v216_v5  ;;  %v299_v8 = vadd.f32 %v556_v18, %v226_v6  ;;  %v364_v27 = vmul.f32 %v216_v5, %v216_v5  ;;  %v368_v39 = vmul.f32 %v226_v6, %v226_v6 }
  0xbf   :  { %v338_v9 = vadd.f32 %v337_v3, %v206_v51  ;;  %v374_v11 = vadd.f32 %v373_v4, %v359_v2 }
  0xc0   :  { %v513_v12 = vpack.c.bf16 %v295_v7, %v294_v0  ;;  %v523_v13 = vpack.c.bf16 %v299_v8, %v298_v1 }
  0xc1   :  { %v339_v15 = vadd.f32 %v338_v9, %v633_v20  ;;  %v375_v16 = vadd.f32 %v374_v11, %v360_v10  ;;  %v365_v20 = vmul.f32 %v635_v21, %v635_v21 }
  0xc2   :  { %529 = vst [vmem:[%s681_s3 + $0x28] sm:$0xff] %v513_v12  }
  0xc3   :  { %v376_v19 = vadd.f32 %v375_v16, %v361_v14  ;;  %v340_v22 = vadd.f32 %v339_v15, %v211_v31  ;;  %531 = vst [vmem:[%s681_s3 + $0x38] sm:$0xff] %v523_v13  }
  0xc5   :  { %v341_v18 = vadd.f32 %v340_v22, %v214_v46  ;;  %v377_v24 = vadd.f32 %v376_v19, %v362_v17 }
  0xc7   :  { %v378_v25 = vadd.f32 %v377_v24, %v363_v23  ;;  %v342_v26 = vadd.f32 %v341_v18, %v216_v5 }
  0xc9   :  { %v343_v28 = vadd.f32 %v342_v26, %v635_v21  ;;  %v379_v29 = vadd.f32 %v378_v25, %v364_v27 }
  0xcb   :  { %v380_v31 = vadd.f32 %v379_v29, %v365_v20  ;;  %v344_v33 = vadd.f32 %v343_v28, %v645_v32 }
  0xcd   :  { %v345_v34 = vadd.f32 %v344_v33, %v224_v47  ;;  %v381_v36 = vadd.f32 %v380_v31, %v366_v30 }
  0xcf   :  { %v382_v37 = vadd.f32 %v381_v36, %v367_v35  ;;  %v346_v38 = vadd.f32 %v345_v34, %v226_v6 }
  0xd1   :  { %v347_v40 = vrot.slane %v346_v38, 4  ;;  %v383_v41 = vadd.f32 %v382_v37, %v368_v39 }
  0xd3   :  { %v348_v42 = vadd.f32 %v347_v40, %v346_v38  ;;  %v384_v43 = vrot.slane %v383_v41, 4 }
  0xd5   :  { %v349_v45 = vrot.slane %v348_v42, 2  ;;  %v385_v21 = vadd.f32 %v384_v43, %v383_v41 }
  0xd7   :  { %v350_v46 = vadd.f32 %v349_v45, %v348_v42  ;;  %v386_v48 = vrot.slane %v385_v21, 2 }
  0xd9   :  { %v387_v50 = vadd.f32 %v386_v48, %v385_v21  ;;  %v351_v51 = vrot.slane %v350_v46, 1 }
  0xdb   :  { %v388_v52 = vrot.slane %v387_v50, 1  ;;  %v352_v47 = vadd.f32 %v351_v51, %v350_v46 }
  0xdd   :  { %v389_v32 = vadd.f32 %v388_v52, %v387_v50 }
  0xdf   :  { %v394_v53 = vsel %vm393_vm0, %v389_v32, 0.0 }
  0xe0   :  { %v395_v54 = vsel %vm392_vm1, %v352_v47, %v394_v53 }
  0xe1   :  { %396 = vst [vmem:[%s682_s4] sm:$0xff] %v395_v54 }

// kernel: _lambda_.28
= control target key start
LH: loop header
LB: loop body
LE: loop exit
PB: predicated region body
PF: predicated region fallthrough
CT: control target
= control target key end

     0   :  { %s83_s0 = inlined_call_operand.vmem [shape: bf16[16,128], index: 0, kind: input, shape index: {}]   ;;  %s84_s1 = inlined_call_operand.vmem [shape: f32[1,128], index: 1, kind: input, shape index: {}]   ;;  %s85_s2 = inlined_call_operand.vmem [shape: f32[1,128], index: 2, kind: input, shape index: {}]   ;;  %s86_s3 = inlined_call_operand.vmem [shape: bf16[16,128], index: 3, kind: output, shape index: {}]  }
   0x1   :  { %v41_v0 = vld [vmem:[%s83_s0] sm:$0xff]  }
   0x2   :  { %v49_v1 = vld [vmem:[%s84_s1] ss:$0 sm:$0xff]  ;;  %v42_v2 = vunpack.c.l.bf16 %v41_v0  ;;  %v43_v3 = vunpack.c.h.bf16 %v41_v0 }
   0x3   :  { %v50_v4 = vld [vmem:[%s85_s2] ss:$0 sm:$0xff] }
   0x4   :  { %v22_v5 = vmul.f32 %v49_v1, %v42_v2  ;;  %v23_v6 = vmul.f32 %v49_v1, %v43_v3 }
   0x6   :  { %v28_v7 = vadd.f32 %v50_v4, %v22_v5  ;;  %v29_v8 = vadd.f32 %v50_v4, %v23_v6 }
   0x8   :  { %v30_v9 = vmax.f32 %v28_v7, 0.0  ;;  %v31_v10 = vmax.f32 %v29_v8, 0.0 }
   0xa   :  { %v47_v11 = vpack.c.bf16 %v31_v10, %v30_v9 }
   0xc   :  { %48 = vst [vmem:[%s86_s3] sm:$0xff] %v47_v11  }

// kernel: tile.113
= control target key start
LH: loop header
LB: loop body
LE: loop exit
PB: predicated region body
PF: predicated region fallthrough
CT: control target
= control target key end

     0   :  { %s22_s0 = inlined_call_operand.vmem [shape: f32[32], index: 0, kind: input, shape index: {}]   ;;  %s23_s1 = inlined_call_operand.vmem [shape: f32[4,32], index: 1, kind: output, shape index: {}]  }
   0x1   :  { %v4_v0 = vld [vmem:[%s22_s0] ss:$0 sm:$0xff] }
   0x2   :  { %5 = vst [vmem:[%s23_s1] sm:$0xf] %v4_v0 }

// kernel: tile.114
= control target key start
LH: loop header
LB: loop body
LE: loop exit
PB: predicated region body
PF: predicated region fallthrough
CT: control target
= control target key end

     0   :  { %s37_s8 = smov 32   ;;  %s38_s9 = smov 64   ;;  %vm7_vm0 = vcmask 261120   ;;  %vm13_vm1 = vcmask 1048320   ;;  %vm19_vm2 = vcmask 785920   ;;  %vm25_vm3 = vcmask 523520   ;;  %s55_s0 = inlined_call_operand.vmem [shape: f32[4,32], index: 0, kind: input, shape index: {}]   ;;  %s56_s1 = inlined_call_operand.vmem [shape: f32[1,128], index: 1, kind: output, shape index: {}]  }
   0x1   :  { %v4_v0 = vld [vmem:[%s55_s0] sm:$0xf]  ;;  %s36_s0 = smov 96  }
   0x2   :  { %5 = vst [vmem:[#allocation1] sm:$0xf] %v4_v0 }
   0x9   :  { %v10_v1 = vld [vmem:[#allocation1 + $0x3] sm:$0x1]   ;;  %v22_v2 = vld [vmem:[#allocation1 + $0x1] sm:$0x1]   ;;  %v16_v3 = vld [vmem:[#allocation1 + $0x2] sm:$0x1]  }
   0xa   :  { %11 = vrot.lane.b32.xlu0 %v10_v1, %s36_s0  ;;  %23 = vrot.lane.b32.xlu1 %v22_v2, %s37_s8  ;;  %v6_v4 = vld [vmem:[#allocation1] sm:$0x1]  }
   0xb   :  { %8 = vst.msk [vmem:[#allocation0] sm:$0x1] %vm7_vm0, %v6_v4  }
  0x12   :  { %17 = vrot.lane.b32.xlu0 %v16_v3, %s38_s9 }
  0x7c   :  { %v12_v5 = vpop.permute.xlu0 %11   ;;  %v24_v6 = vpop.permute.xlu1 %23  }
  0x7d   :  { %14 = vst.msk [vmem:[#allocation0] sm:$0x1] %vm13_vm1, %v12_v5  }
  0x84   :  { %v18_v7 = vpop.permute.xlu0 %17  }
  0x85   :  { %20 = vst.msk [vmem:[#allocation0] sm:$0x1] %vm19_vm2, %v18_v7  }
  0x86   :  { %26 = vst.msk [vmem:[#allocation0] sm:$0x1] %vm25_vm3, %v24_v6  }
  0x8d   :  { %v29_v8 = vld [vmem:[#allocation0] sm:$0x1] }
  0x8e   :  { %32 = vst [vmem:[%s56_s1] sm:$0x1] %v29_v8 }

// kernel: _lambda_.30
= control target key start
LH: loop header
LB: loop body
LE: loop exit
PB: predicated region body
PF: predicated region fallthrough
CT: control target
= control target key end

     0   :  { %s67_s0 = inlined_call_operand.vmem [shape: bf16[8,128], index: 0, kind: input, shape index: {}]   ;;  %s68_s1 = inlined_call_operand.vmem [shape: f32[1,128], index: 1, kind: input, shape index: {}]   ;;  %s69_s2 = inlined_call_operand.vmem [shape: f32[1,128], index: 2, kind: input, shape index: {}]   ;;  %s70_s3 = inlined_call_operand.vmem [shape: bf16[8,128], index: 3, kind: output, shape index: {}]  }
   0x1   :  { %v14_v0 = vld [vmem:[%s67_s0] sm:$0xf] }
   0x2   :  { %v33_v1 = vld [vmem:[%s68_s1] ss:$0 sm:$0xff]  ;;  %v15_v2 = vunpack.c.l.bf16 %v14_v0 }
   0x3   :  { %v34_v3 = vld [vmem:[%s69_s2] ss:$0 sm:$0xff] }
   0x4   :  { %v20_v4 = vmul.f32 %v33_v1, %v15_v2 }
   0x6   :  { %v25_v5 = vadd.f32 %v34_v3, %v20_v4 }
   0x8   :  { %v26_v6 = vmax.f32 %v25_v5, 0.0 }
   0xa   :  { %v27_v7 = vpack.c.bf16 %v26_v6, %v26_v6 }
   0xc   :  { %28 = vst [vmem:[%s70_s3] sm:$0xf] %v27_v7 }

// kernel: _lambda_.29
= control target key start
LH: loop header
LB: loop body
LE: loop exit
PB: predicated region body
PF: predicated region fallthrough
CT: control target
= control target key end

     0   :  { %v271_v60 = vlaneseq  ;;  %s523_s1 = inlined_call_operand.vmem [shape: bf16[256,128], index: 1, kind: input, shape index: {}]   ;;  %s524_s0 = inlined_call_operand.vmem [shape: bf16[32,256], index: 0, kind: input, shape index: {}]   ;;  %s525_s2 = inlined_call_operand.vmem [shape: f32[1,128], index: 2, kind: input, shape index: {}]   ;;  %s526_s3 = inlined_call_operand.vmem [shape: bf16[32,128], index: 3, kind: output, shape index: {0}]   ;;  %s527_s4 = inlined_call_operand.vmem [shape: f32[8,128], index: 4, kind: output, shape index: {1}]  }
   0x1   :  { %v377_v0 = vld [vmem:[%s523_s1 + $0x38] sm:$0xff]  ;;  %v376_v2 = vld [vmem:[%s523_s1 + $0x30] sm:$0xff]  ;;  %v375_v4 = vld [vmem:[%s523_s1 + $0x28] sm:$0xff] }
   0x2   :  { %v385_v1 = vld [vmem:[%s523_s1 + $0x78] sm:$0xff]  ;;  %180 = vmatpush.bf16.msra.mxu0 %v377_v0  ;;  %397 = vmatpush.bf16.msra.mxu2 %v377_v0  ;;  %v384_v3 = vld [vmem:[%s523_s1 + $0x70] sm:$0xff]  ;;  %v383_v5 = vld [vmem:[%s523_s1 + $0x68] sm:$0xff] }
   0x3   :  { %199 = vmatpush.bf16.msra.mxu1 %v385_v1  ;;  %405 = vmatpush.bf16.msra.mxu3 %v385_v1  ;;  %v374_v6 = vld [vmem:[%s523_s1 + $0x20] sm:$0xff]  ;;  %v373_v8 = vld [vmem:[%s523_s1 + $0x18] sm:$0xff]  ;;  %v372_v10 = vld [vmem:[%s523_s1 + $0x10] sm:$0xff]  ;;  %v272_v1 = vshrl.u32 %v271_v60, 7 }
   0x4   :  { %v382_v7 = vld [vmem:[%s523_s1 + $0x60] sm:$0xff]  ;;  %v381_v9 = vld [vmem:[%s523_s1 + $0x58] sm:$0xff]  ;;  %v380_v11 = vld [vmem:[%s523_s1 + $0x50] sm:$0xff] }
   0x5   :  { %v371_v12 = vld [vmem:[%s523_s1 + $0x8] sm:$0xff]  ;;  %v370_v14 = vld [vmem:[%s523_s1] sm:$0xff]  ;;  %v296_v18 = vld [vmem:[%s524_s0 + $0x10] sm:$0xf]  ;;  %vm274_vm0 = vcmp.eq.s32.totalorder %v272_v1, 1  ;;  %vm273_vm1 = vcmp.eq.s32.totalorder %v272_v1, 0 }
   0x6   :  { %181 = vmatpush.bf16.msra.mxu0 %v376_v2  ;;  %398 = vmatpush.bf16.msra.mxu2 %v376_v2  ;;  %v379_v13 = vld [vmem:[%s523_s1 + $0x48] sm:$0xff]  ;;  %v378_v15 = vld [vmem:[%s523_s1 + $0x40] sm:$0xff]  ;;  %v369_v19 = vld [vmem:[%s524_s0 + $0x14] sm:$0xf0] }
   0x7   :  { %200 = vmatpush.bf16.msra.mxu1 %v384_v3  ;;  %406 = vmatpush.bf16.msra.mxu3 %v384_v3  ;;  %v288_v16 = vld [vmem:[%s524_s0] sm:$0xf]  ;;  %v367_v17 = vld [vmem:[%s524_s0 + $0x4] sm:$0xf0]  ;;  %v366_v20 = vld [vmem:[%s524_s0 + $0x4] sm:$0xf]  ;;  %v297_v25 = vor.u32 %v369_v19, %v296_v18 }
   0x8   :  { %v290_v21 = vld [vmem:[%s524_s0 + $0x8] sm:$0xf0]  ;;  %v368_v22 = vld [vmem:[%s524_s0 + $0x14] sm:$0xf]  ;;  %v298_v23 = vld [vmem:[%s524_s0 + $0x18] sm:$0xf0]  ;;  %v289_v24 = vor.u32 %v367_v17, %v288_v16 }
   0x9   :  { %v293_v26 = vor.u32 %v366_v20, %v290_v21  ;;  %v301_v27 = vor.u32 %v368_v22, %v298_v23  ;;  %v413_v32 = vld [vmem:[%s525_s2] ss:$0 sm:$0xff] }
   0xa   :  { %182 = vmatpush.bf16.msra.mxu0 %v375_v4  ;;  %399 = vmatpush.bf16.msra.mxu2 %v375_v4 }
   0xb   :  { %201 = vmatpush.bf16.msra.mxu1 %v383_v5  ;;  %407 = vmatpush.bf16.msra.mxu3 %v383_v5 }
   0xe   :  { %183 = vmatpush.bf16.msra.mxu0 %v374_v6  ;;  %400 = vmatpush.bf16.msra.mxu2 %v374_v6 }
   0xf   :  { %202 = vmatpush.bf16.msra.mxu1 %v382_v7  ;;  %408 = vmatpush.bf16.msra.mxu3 %v382_v7 }
  0x12   :  { %184 = vmatpush.bf16.msra.mxu0 %v373_v8  ;;  %401 = vmatpush.bf16.msra.mxu2 %v373_v8 }
  0x13   :  { %203 = vmatpush.bf16.msra.mxu1 %v381_v9  ;;  %409 = vmatpush.bf16.msra.mxu3 %v381_v9 }
  0x16   :  { %185 = vmatpush.bf16.msra.mxu0 %v372_v10  ;;  %402 = vmatpush.bf16.msra.mxu2 %v372_v10 }
  0x17   :  { %204 = vmatpush.bf16.msra.mxu1 %v380_v11  ;;  %410 = vmatpush.bf16.msra.mxu3 %v380_v11 }
  0x1a   :  { %186 = vmatpush.bf16.msra.mxu0 %v371_v12  ;;  %403 = vmatpush.bf16.msra.mxu2 %v371_v12 }
  0x1b   :  { %205 = vmatpush.bf16.msra.mxu1 %v379_v13  ;;  %411 = vmatpush.bf16.msra.mxu3 %v379_v13 }
  0x1e   :  { %187 = vmatpush.bf16.msra.mxu0 %v370_v14  ;;  %404 = vmatpush.bf16.msra.mxu2 %v370_v14 }
  0x1f   :  { %206 = vmatpush.bf16.msra.mxu1 %v378_v15  ;;  %412 = vmatpush.bf16.msra.mxu3 %v378_v15 }
  0x21   :  { %188 = vmatmul.bf16.vlgmr.msra.gmra.mxu0 %v289_v24  ;;  %193 = vmatmul.bf16.vlgmr.msra.gmra.mxu2 %v297_v25 }
  0x22   :  { %207 = vmatmul.bf16.vlgmr.msra.gmra.mxu1 %v293_v26  ;;  %212 = vmatmul.bf16.vlgmr.msra.gmra.mxu3 %v301_v27 }
  0x9e   :  { %v189_v28 = vpop.f32.mrf.mxu0 }
  0x9f   :  { %v208_v29 = vpop.f32.mrf.mxu1 }
  0xa0   :  { %v209_v31 = vadd.f32 %v208_v29, %v189_v28 }
  0xa2   :  { %v237_v37 = vadd.f32 %v413_v32, %v209_v31  ;;  %v258_v38 = vmul.f32 %v209_v31, %v209_v31 }
  0xa4   :  { %v194_v30 = vpop.f32.mrf.mxu2 }
  0xa5   :  { %v213_v33 = vpop.f32.mrf.mxu3 }
  0xa6   :  { %v191_v34 = vpop.f32.mrf.mxu0  ;;  %v214_v39 = vadd.f32 %v213_v33, %v194_v30 }
  0xa7   :  { %v210_v35 = vpop.f32.mrf.mxu1 }
  0xa8   :  { %v211_v36 = vadd.f32 %v210_v35, %v191_v34  ;;  %v260_v47 = vmul.f32 %v214_v39, %v214_v39  ;;  %v239_v50 = vadd.f32 %v413_v32, %v214_v39 }
  0xaa   :  { %v238_v40 = vadd.f32 %v413_v32, %v211_v36  ;;  %v249_v41 = vadd.f32 %v211_v36, %v209_v31  ;;  %v259_v42 = vmul.f32 %v211_v36, %v211_v36 }
  0xac   :  { %v389_v43 = vpack.c.bf16 %v238_v40, %v237_v37  ;;  %v262_v44 = vadd.f32 %v259_v42, %v258_v38  ;;  %v196_v45 = vpop.f32.mrf.mxu2  ;;  %v250_v49 = vadd.f32 %v249_v41, %v214_v39 }
  0xad   :  { %v215_v46 = vpop.f32.mrf.mxu3 }
  0xae   :  { %390 = vst [vmem:[%s526_s3] sm:$0xff] %v389_v43   ;;  %v216_v48 = vadd.f32 %v215_v46, %v196_v45  ;;  %v263_v54 = vadd.f32 %v262_v44, %v260_v47 }
  0xb0   :  { %v240_v51 = vadd.f32 %v413_v32, %v216_v48  ;;  %v251_v52 = vadd.f32 %v250_v49, %v216_v48  ;;  %v261_v53 = vmul.f32 %v216_v48, %v216_v48 }
  0xb2   :  { %v394_v55 = vpack.c.bf16 %v240_v51, %v239_v50  ;;  %v252_v56 = vrot.slane %v251_v52, 4  ;;  %v264_v57 = vadd.f32 %v263_v54, %v261_v53 }
  0xb4   :  { %396 = vst [vmem:[%s526_s3 + $0x8] sm:$0xff] %v394_v55   ;;  %v253_v58 = vadd.f32 %v252_v56, %v251_v52  ;;  %v265_v59 = vrot.slane %v264_v57, 4 }
  0xb6   :  { %v254_v61 = vrot.slane %v253_v58, 2  ;;  %v266_v62 = vadd.f32 %v265_v59, %v264_v57 }
  0xb8   :  { %v255_v63 = vadd.f32 %v254_v61, %v253_v58  ;;  %v267_v0 = vrot.slane %v266_v62, 2 }
  0xba   :  { %v268_v2 = vadd.f32 %v267_v0, %v266_v62  ;;  %v256_v3 = vrot.slane %v255_v63, 1 }
  0xbc   :  { %v269_v4 = vrot.slane %v268_v2, 1  ;;  %v257_v6 = vadd.f32 %v256_v3, %v255_v63 }
  0xbe   :  { %v270_v5 = vadd.f32 %v269_v4, %v268_v2 }
  0xc0   :  { %v275_v7 = vsel %vm274_vm0, %v270_v5, 0.0 }
  0xc1   :  { %v276_v8 = vsel %vm273_vm1, %v257_v6, %v275_v7 }
  0xc2   :  { %277 = vst [vmem:[%s527_s4] sm:$0xff] %v276_v8 }

// kernel: _lambda_.34
= control target key start
LH: loop header
LB: loop body
LE: loop exit
PB: predicated region body
PF: predicated region fallthrough
CT: control target
= control target key end

     0   :  { %s80_s0 = inlined_call_operand.vmem [shape: bf16[8,128], index: 0, kind: input, shape index: {}]   ;;  %s81_s1 = inlined_call_operand.vmem [shape: f32[1,128], index: 1, kind: input, shape index: {}]   ;;  %s82_s2 = inlined_call_operand.vmem [shape: f32[1,128], index: 2, kind: input, shape index: {}]   ;;  %s83_s3 = inlined_call_operand.vmem [shape: bf16[8,128], index: 3, kind: input, shape index: {}]   ;;  %s84_s4 = inlined_call_operand.vmem [shape: bf16[8,128], index: 4, kind: output, shape index: {}]  }
   0x1   :  { %v17_v0 = vld [vmem:[%s80_s0] sm:$0xf] }
   0x2   :  { %v38_v1 = vld [vmem:[%s81_s1] ss:$0 sm:$0xff]  ;;  %v18_v2 = vunpack.c.l.bf16 %v17_v0 }
   0x3   :  { %v39_v3 = vld [vmem:[%s82_s2] ss:$0 sm:$0xff] }
   0x4   :  { %v29_v4 = vld [vmem:[%s83_s3] sm:$0xf]  ;;  %v23_v5 = vmul.f32 %v38_v1, %v18_v2 }
   0x5   :  { %v30_v6 = vunpack.c.l.bf16 %v29_v4 }
   0x6   :  { %v28_v7 = vadd.f32 %v39_v3, %v23_v5 }
   0x8   :  { %v31_v8 = vadd.f32 %v30_v6, %v28_v7 }
   0xa   :  { %v32_v9 = vpack.c.bf16 %v31_v8, %v31_v8 }
   0xc   :  { %33 = vst [vmem:[%s84_s4] sm:$0xf] %v32_v9 }

// kernel: _lambda_.31
= control target key start
LH: loop header
LB: loop body
LE: loop exit
PB: predicated region body
PF: predicated region fallthrough
CT: control target
= control target key end

     0   :  { %s700_s1 = inlined_call_operand.vmem [shape: bf16[384,128], index: 1, kind: input, shape index: {}]   ;;  %s701_s0 = inlined_call_operand.vmem [shape: bf16[32,384], index: 0, kind: input, shape index: {}]   ;;  %s702_s2 = inlined_call_operand.vmem [shape: f32[1,128], index: 2, kind: input, shape index: {}]   ;;  %s703_s3 = inlined_call_operand.vmem [shape: bf16[32,128], index: 3, kind: output, shape index: {0}]   ;;  %s704_s4 = inlined_call_operand.vmem [shape: f32[8,128], index: 4, kind: output, shape index: {1}]  }
   0x1   :  { %v518_v0 = vld [vmem:[%s700_s1 + $0x38] sm:$0xff]  ;;  %v517_v3 = vld [vmem:[%s700_s1 + $0x30] sm:$0xff]  ;;  %v516_v6 = vld [vmem:[%s700_s1 + $0x28] sm:$0xff] }
   0x2   :  { %v526_v1 = vld [vmem:[%s700_s1 + $0x78] sm:$0xff]  ;;  %260 = vmatpush.bf16.msra.mxu0 %v518_v0  ;;  %v525_v4 = vld [vmem:[%s700_s1 + $0x70] sm:$0xff]  ;;  %546 = vmatpush.bf16.msra.mxu3 %v518_v0  ;;  %v524_v7 = vld [vmem:[%s700_s1 + $0x68] sm:$0xff] }
   0x3   :  { %v534_v2 = vld [vmem:[%s700_s1 + $0xb8] sm:$0xff]  ;;  %279 = vmatpush.bf16.msra.mxu1 %v526_v1  ;;  %v533_v5 = vld [vmem:[%s700_s1 + $0xb0] sm:$0xff]  ;;  %v532_v8 = vld [vmem:[%s700_s1 + $0xa8] sm:$0xff] }
   0x4   :  { %298 = vmatpush.bf16.msra.mxu2 %v534_v2  ;;  %v515_v9 = vld [vmem:[%s700_s1 + $0x20] sm:$0xff]  ;;  %v514_v12 = vld [vmem:[%s700_s1 + $0x18] sm:$0xff]  ;;  %v513_v15 = vld [vmem:[%s700_s1 + $0x10] sm:$0xff] }
   0x5   :  { %v523_v10 = vld [vmem:[%s700_s1 + $0x60] sm:$0xff]  ;;  %v522_v13 = vld [vmem:[%s700_s1 + $0x58] sm:$0xff]  ;;  %v521_v16 = vld [vmem:[%s700_s1 + $0x50] sm:$0xff] }
   0x6   :  { %261 = vmatpush.bf16.msra.mxu0 %v517_v3  ;;  %547 = vmatpush.bf16.msra.mxu3 %v517_v3  ;;  %v531_v11 = vld [vmem:[%s700_s1 + $0xa0] sm:$0xff]  ;;  %v530_v14 = vld [vmem:[%s700_s1 + $0x98] sm:$0xff]  ;;  %v529_v17 = vld [vmem:[%s700_s1 + $0x90] sm:$0xff] }
   0x7   :  { %280 = vmatpush.bf16.msra.mxu1 %v525_v4  ;;  %v512_v18 = vld [vmem:[%s700_s1 + $0x8] sm:$0xff]  ;;  %v511_v21 = vld [vmem:[%s700_s1] sm:$0xff]  ;;  %v389_v27 = vld [vmem:[%s701_s0 + $0xc] sm:$0xf0] }
   0x8   :  { %299 = vmatpush.bf16.msra.mxu2 %v533_v5  ;;  %v520_v19 = vld [vmem:[%s700_s1 + $0x48] sm:$0xff]  ;;  %v519_v22 = vld [vmem:[%s700_s1 + $0x40] sm:$0xff]  ;;  %v507_v29 = vld [vmem:[%s701_s0 + $0x10] sm:$0xf0] }
   0x9   :  { %v528_v20 = vld [vmem:[%s700_s1 + $0x88] sm:$0xff]  ;;  %v527_v23 = vld [vmem:[%s700_s1 + $0x80] sm:$0xff]  ;;  %v399_v30 = vld [vmem:[%s701_s0 + $0x18] sm:$0xf] }
   0xa   :  { %262 = vmatpush.bf16.msra.mxu0 %v516_v6  ;;  %548 = vmatpush.bf16.msra.mxu3 %v516_v6  ;;  %v387_v24 = vld [vmem:[%s701_s0] sm:$0xf]  ;;  %v506_v25 = vld [vmem:[%s701_s0 + $0x8] sm:$0xf0]  ;;  %v505_v26 = vld [vmem:[%s701_s0 + $0x4] sm:$0xf] }
   0xb   :  { %281 = vmatpush.bf16.msra.mxu1 %v524_v7  ;;  %v395_v28 = vld [vmem:[%s701_s0 + $0x8] sm:$0xf]  ;;  %v509_v31 = vld [vmem:[%s701_s0 + $0x20] sm:$0xf0]  ;;  %v388_v32 = vor.u32 %v506_v25, %v387_v24  ;;  %v392_v33 = vor.u32 %v505_v26, %v389_v27  ;;  %v508_v36 = vld [vmem:[%s701_s0 + $0x1c] sm:$0xf] }
   0xc   :  { %300 = vmatpush.bf16.msra.mxu2 %v532_v8  ;;  %v396_v34 = vor.u32 %v507_v29, %v395_v28  ;;  %v400_v35 = vor.u32 %v509_v31, %v399_v30  ;;  %v401_v37 = vld [vmem:[%s701_s0 + $0x24] sm:$0xf0]  ;;  %v407_v38 = vld [vmem:[%s701_s0 + $0x20] sm:$0xf]  ;;  %v510_v39 = vld [vmem:[%s701_s0 + $0x28] sm:$0xf0] }
   0xd   :  { %v404_v40 = vor.u32 %v508_v36, %v401_v37  ;;  %v408_v41 = vor.u32 %v510_v39, %v407_v38  ;;  %v554_v49 = vld [vmem:[%s702_s2] ss:$0 sm:$0xff] }
   0xe   :  { %263 = vmatpush.bf16.msra.mxu0 %v515_v9  ;;  %549 = vmatpush.bf16.msra.mxu3 %v515_v9 }
   0xf   :  { %282 = vmatpush.bf16.msra.mxu1 %v523_v10 }
  0x10   :  { %301 = vmatpush.bf16.msra.mxu2 %v531_v11 }
  0x12   :  { %264 = vmatpush.bf16.msra.mxu0 %v514_v12  ;;  %550 = vmatpush.bf16.msra.mxu3 %v514_v12 }
  0x13   :  { %283 = vmatpush.bf16.msra.mxu1 %v522_v13 }
  0x14   :  { %302 = vmatpush.bf16.msra.mxu2 %v530_v14 }
  0x16   :  { %265 = vmatpush.bf16.msra.mxu0 %v513_v15  ;;  %551 = vmatpush.bf16.msra.mxu3 %v513_v15 }
  0x17   :  { %284 = vmatpush.bf16.msra.mxu1 %v521_v16 }
  0x18   :  { %303 = vmatpush.bf16.msra.mxu2 %v529_v17 }
  0x1a   :  { %266 = vmatpush.bf16.msra.mxu0 %v512_v18  ;;  %552 = vmatpush.bf16.msra.mxu3 %v512_v18  ;;  %v370_v18 = vlaneseq }
  0x1b   :  { %285 = vmatpush.bf16.msra.mxu1 %v520_v19 }
  0x1c   :  { %304 = vmatpush.bf16.msra.mxu2 %v528_v20 }
  0x1e   :  { %267 = vmatpush.bf16.msra.mxu0 %v511_v21  ;;  %553 = vmatpush.bf16.msra.mxu3 %v511_v21 }
  0x1f   :  { %286 = vmatpush.bf16.msra.mxu1 %v519_v22 }
  0x20   :  { %305 = vmatpush.bf16.msra.mxu2 %v527_v23  ;;  %v371_v23 = vshrl.u32 %v370_v18, 7 }
  0x21   :  { %268 = vmatmul.bf16.vlgmr.msra.gmra.mxu0 %v388_v32  ;;  %273 = vmatmul.bf16.vlgmr.msra.gmra.mxu3 %v400_v35 }
  0x22   :  { %287 = vmatmul.bf16.vlgmr.msra.gmra.mxu1 %v392_v33  ;;  %vm373_vm0 = vcmp.eq.s32.totalorder %v371_v23, 1  ;;  %vm372_vm1 = vcmp.eq.s32.totalorder %v371_v23, 0 }
  0x23   :  { %306 = vmatmul.bf16.vlgmr.msra.gmra.mxu2 %v396_v34 }
  0x32   :  { %292 = vmatmul.bf16.gmra.mxu1 %v404_v40 }
  0x33   :  { %311 = vmatmul.bf16.gmra.mxu2 %v408_v41 }
  0x9e   :  { %v269_v43 = vpop.f32.mrf.mxu0 }
  0x9f   :  { %v288_v42 = vpop.f32.mrf.mxu1 }
  0xa0   :  { %v289_v46 = vadd.f32 %v288_v42, %v269_v43 }
  0xa4   :  { %v274_v56 = vpop.f32.mrf.mxu3 }
  0xa6   :  { %v307_v44 = vpop.f32.mrf.mxu2  ;;  %v271_v47 = vpop.f32.mrf.mxu0 }
  0xa7   :  { %v290_v45 = vpop.f32.mrf.mxu1  ;;  %v308_v48 = vadd.f32 %v307_v44, %v289_v46 }
  0xa8   :  { %v291_v50 = vadd.f32 %v290_v45, %v271_v47 }
  0xa9   :  { %v336_v54 = vadd.f32 %v554_v49, %v308_v48  ;;  %v357_v0 = vmul.f32 %v308_v48, %v308_v48 }
  0xac   :  { %v276_v63 = vpop.f32.mrf.mxu3 }
  0xae   :  { %v309_v51 = vpop.f32.mrf.mxu2 }
  0xaf   :  { %v310_v52 = vadd.f32 %v309_v51, %v291_v50  ;;  %v293_v53 = vpop.f32.mrf.mxu1 }
  0xb0   :  { %v294_v58 = vadd.f32 %v293_v53, %v274_v56 }
  0xb1   :  { %v337_v55 = vadd.f32 %v554_v49, %v310_v52  ;;  %v358_v62 = vmul.f32 %v310_v52, %v310_v52  ;;  %v348_v1 = vadd.f32 %v310_v52, %v308_v48 }
  0xb3   :  { %v538_v57 = vpack.c.bf16 %v337_v55, %v336_v54  ;;  %v361_v5 = vadd.f32 %v358_v62, %v357_v0 }
  0xb5   :  { %539 = vst [vmem:[%s703_s3] sm:$0xff] %v538_v57  }
  0xb6   :  { %v312_v59 = vpop.f32.mrf.mxu2 }
  0xb7   :  { %v313_v60 = vadd.f32 %v312_v59, %v294_v58  ;;  %v295_v61 = vpop.f32.mrf.mxu1 }
  0xb8   :  { %v296_v3 = vadd.f32 %v295_v61, %v276_v63 }
  0xb9   :  { %v359_v2 = vmul.f32 %v313_v60, %v313_v60  ;;  %v349_v6 = vadd.f32 %v348_v1, %v313_v60  ;;  %v338_v8 = vadd.f32 %v554_v49, %v313_v60 }
  0xbb   :  { %v362_v9 = vadd.f32 %v361_v5, %v359_v2 }
  0xbe   :  { %v314_v4 = vpop.f32.mrf.mxu2 }
  0xbf   :  { %v315_v7 = vadd.f32 %v314_v4, %v296_v3 }
  0xc1   :  { %v339_v10 = vadd.f32 %v554_v49, %v315_v7  ;;  %v350_v11 = vadd.f32 %v349_v6, %v315_v7  ;;  %v360_v12 = vmul.f32 %v315_v7, %v315_v7 }
  0xc3   :  { %v543_v13 = vpack.c.bf16 %v339_v10, %v338_v8  ;;  %v351_v14 = vrot.slane %v350_v11, 4  ;;  %v363_v15 = vadd.f32 %v362_v9, %v360_v12 }
  0xc5   :  { %545 = vst [vmem:[%s703_s3 + $0x8] sm:$0xff] %v543_v13   ;;  %v352_v16 = vadd.f32 %v351_v14, %v350_v11  ;;  %v364_v17 = vrot.slane %v363_v15, 4 }
  0xc7   :  { %v353_v19 = vrot.slane %v352_v16, 2  ;;  %v365_v20 = vadd.f32 %v364_v17, %v363_v15 }
  0xc9   :  { %v354_v21 = vadd.f32 %v353_v19, %v352_v16  ;;  %v366_v22 = vrot.slane %v365_v20, 2 }
  0xcb   :  { %v367_v24 = vadd.f32 %v366_v22, %v365_v20  ;;  %v355_v25 = vrot.slane %v354_v21, 1 }
  0xcd   :  { %v368_v26 = vrot.slane %v367_v24, 1  ;;  %v356_v28 = vadd.f32 %v355_v25, %v354_v21 }
  0xcf   :  { %v369_v27 = vadd.f32 %v368_v26, %v367_v24 }
  0xd1   :  { %v374_v29 = vsel %vm373_vm0, %v369_v27, 0.0 }
  0xd2   :  { %v375_v30 = vsel %vm372_vm1, %v356_v28, %v374_v29 }
  0xd3   :  { %376 = vst [vmem:[%s704_s4] sm:$0xff] %v375_v30 }

// kernel: _lambda_.40
= control target key start
LH: loop header
LB: loop body
LE: loop exit
PB: predicated region body
PF: predicated region fallthrough
CT: control target
= control target key end

     0   :  { %v180_v34 = vlaneseq  ;;  %s332_s1 = inlined_call_operand.vmem [shape: bf16[128,128], index: 1, kind: input, shape index: {}]   ;;  %s333_s2 = inlined_call_operand.vmem [shape: f32[1,128], index: 2, kind: input, shape index: {}]   ;;  %s334_s0 = inlined_call_operand.vmem [shape: bf16[32,128], index: 0, kind: input, shape index: {}]   ;;  %s335_s3 = inlined_call_operand.vmem [shape: bf16[32,128], index: 3, kind: output, shape index: {0}]   ;;  %s336_s4 = inlined_call_operand.vmem [shape: f32[8,128], index: 4, kind: output, shape index: {1}]  }
   0x1   :  { %v244_v0 = vld [vmem:[%s332_s1 + $0x38] sm:$0xff]  ;;  %v243_v1 = vld [vmem:[%s332_s1 + $0x30] sm:$0xff]  ;;  %v242_v2 = vld [vmem:[%s332_s1 + $0x28] sm:$0xff] }
   0x2   :  { %108 = vmatpush.bf16.msra.mxu0 %v244_v0  ;;  %256 = vmatpush.bf16.msra.mxu1 %v244_v0  ;;  %v241_v3 = vld [vmem:[%s332_s1 + $0x20] sm:$0xff]  ;;  %v240_v4 = vld [vmem:[%s332_s1 + $0x18] sm:$0xff]  ;;  %v239_v5 = vld [vmem:[%s332_s1 + $0x10] sm:$0xff]  ;;  %v181_v39 = vshrl.u32 %v180_v34, 7 }
   0x3   :  { %v238_v6 = vld [vmem:[%s332_s1 + $0x8] sm:$0xff]  ;;  %v237_v7 = vld [vmem:[%s332_s1] sm:$0xff] }
   0x4   :  { %v235_v8 = vld [vmem:[%s334_s0] sm:$0xff]  ;;  %v236_v9 = vld [vmem:[%s334_s0 + $0x8] sm:$0xff]  ;;  %vm183_vm0 = vcmp.eq.s32.totalorder %v181_v39, 1  ;;  %vm182_vm1 = vcmp.eq.s32.totalorder %v181_v39, 0 }
   0x5   :  { %v264_v12 = vld [vmem:[%s333_s2] ss:$0 sm:$0xff] }
   0x6   :  { %109 = vmatpush.bf16.msra.mxu0 %v243_v1  ;;  %257 = vmatpush.bf16.msra.mxu1 %v243_v1 }
   0xa   :  { %110 = vmatpush.bf16.msra.mxu0 %v242_v2  ;;  %258 = vmatpush.bf16.msra.mxu1 %v242_v2 }
   0xe   :  { %111 = vmatpush.bf16.msra.mxu0 %v241_v3  ;;  %259 = vmatpush.bf16.msra.mxu1 %v241_v3 }
  0x12   :  { %112 = vmatpush.bf16.msra.mxu0 %v240_v4  ;;  %260 = vmatpush.bf16.msra.mxu1 %v240_v4 }
  0x16   :  { %113 = vmatpush.bf16.msra.mxu0 %v239_v5  ;;  %261 = vmatpush.bf16.msra.mxu1 %v239_v5 }
  0x1a   :  { %114 = vmatpush.bf16.msra.mxu0 %v238_v6  ;;  %262 = vmatpush.bf16.msra.mxu1 %v238_v6 }
  0x1e   :  { %115 = vmatpush.bf16.msra.mxu0 %v237_v7  ;;  %263 = vmatpush.bf16.msra.mxu1 %v237_v7 }
  0x21   :  { %116 = vmatmul.bf16.vlgmr.msra.gmra.mxu0 %v235_v8  ;;  %121 = vmatmul.bf16.vlgmr.msra.gmra.mxu1 %v236_v9 }
  0x9e   :  { %v117_v10 = vpop.f32.mrf.mxu0  ;;  %v122_v11 = vpop.f32.mrf.mxu1 }
  0x9f   :  { %v146_v13 = vadd.f32 %v264_v12, %v117_v10  ;;  %v167_v14 = vmul.f32 %v117_v10, %v117_v10  ;;  %v148_v15 = vadd.f32 %v264_v12, %v122_v11  ;;  %v169_v22 = vmul.f32 %v122_v11, %v122_v11 }
  0xa6   :  { %v119_v16 = vpop.f32.mrf.mxu0  ;;  %v124_v17 = vpop.f32.mrf.mxu1 }
  0xa7   :  { %v147_v18 = vadd.f32 %v264_v12, %v119_v16  ;;  %v158_v19 = vadd.f32 %v119_v16, %v117_v10  ;;  %v168_v20 = vmul.f32 %v119_v16, %v119_v16  ;;  %v149_v21 = vadd.f32 %v264_v12, %v124_v17 }
  0xa8   :  { %v170_v28 = vmul.f32 %v124_v17, %v124_v17 }
  0xa9   :  { %v248_v23 = vpack.c.bf16 %v147_v18, %v146_v13  ;;  %v171_v24 = vadd.f32 %v168_v20, %v167_v14  ;;  %v253_v25 = vpack.c.bf16 %v149_v21, %v148_v15  ;;  %v159_v26 = vadd.f32 %v158_v19, %v122_v11 }
  0xab   :  { %249 = vst [vmem:[%s335_s3] sm:$0xff] %v248_v23   ;;  %v160_v27 = vadd.f32 %v159_v26, %v124_v17  ;;  %v172_v29 = vadd.f32 %v171_v24, %v169_v22 }
  0xac   :  { %255 = vst [vmem:[%s335_s3 + $0x8] sm:$0xff] %v253_v25  }
  0xad   :  { %v161_v30 = vrot.slane %v160_v27, 4  ;;  %v173_v31 = vadd.f32 %v172_v29, %v170_v28 }
  0xaf   :  { %v162_v32 = vadd.f32 %v161_v30, %v160_v27  ;;  %v174_v33 = vrot.slane %v173_v31, 4 }
  0xb1   :  { %v163_v35 = vrot.slane %v162_v32, 2  ;;  %v175_v36 = vadd.f32 %v174_v33, %v173_v31 }
  0xb3   :  { %v164_v37 = vadd.f32 %v163_v35, %v162_v32  ;;  %v176_v38 = vrot.slane %v175_v36, 2 }
  0xb5   :  { %v177_v40 = vadd.f32 %v176_v38, %v175_v36  ;;  %v165_v41 = vrot.slane %v164_v37, 1 }
  0xb7   :  { %v178_v42 = vrot.slane %v177_v40, 1  ;;  %v166_v44 = vadd.f32 %v165_v41, %v164_v37 }
  0xb9   :  { %v179_v43 = vadd.f32 %v178_v42, %v177_v40 }
  0xbb   :  { %v184_v45 = vsel %vm183_vm0, %v179_v43, 0.0 }
  0xbc   :  { %v185_v46 = vsel %vm182_vm1, %v166_v44, %v184_v45 }
  0xbd   :  { %186 = vst [vmem:[%s336_s4] sm:$0xff] %v185_v46 }

// kernel: _lambda_.49
= control target key start
LH: loop header
LB: loop body
LE: loop exit
PB: predicated region body
PF: predicated region fallthrough
CT: control target
= control target key end

     0   :  { %s4480_s1 = inlined_call_operand.vmem [shape: bf16[512,128], index: 1, kind: input, shape index: {}]   ;;  %s4481_s0 = inlined_call_operand.vmem [shape: bf16[512,512], index: 0, kind: input, shape index: {}]   ;;  %s4482_s2 = inlined_call_operand.vmem [shape: f32[1,128], index: 2, kind: input, shape index: {}]   ;;  %s4483_s3 = inlined_call_operand.vmem [shape: bf16[512,128], index: 3, kind: output, shape index: {}]  }
   0x1   :  { %v3080_v0 = vld [vmem:[%s4480_s1 + $0x38] sm:$0xff]  ;;  %v3079_v4 = vld [vmem:[%s4480_s1 + $0x30] sm:$0xff]  ;;  %v3078_v8 = vld [vmem:[%s4480_s1 + $0x28] sm:$0xff] }
   0x2   :  { %v3088_v1 = vld [vmem:[%s4480_s1 + $0x78] sm:$0xff]  ;;  %1170 = vmatpush.bf16.msra.mxu0 %v3080_v0  ;;  %v3087_v5 = vld [vmem:[%s4480_s1 + $0x70] sm:$0xff]  ;;  %v3086_v9 = vld [vmem:[%s4480_s1 + $0x68] sm:$0xff] }
   0x3   :  { %v3096_v2 = vld [vmem:[%s4480_s1 + $0xb8] sm:$0xff]  ;;  %1339 = vmatpush.bf16.msra.mxu1 %v3088_v1  ;;  %v3095_v6 = vld [vmem:[%s4480_s1 + $0xb0] sm:$0xff]  ;;  %v3094_v10 = vld [vmem:[%s4480_s1 + $0xa8] sm:$0xff] }
   0x4   :  { %v3104_v3 = vld [vmem:[%s4480_s1 + $0xf8] sm:$0xff]  ;;  %1508 = vmatpush.bf16.msra.mxu2 %v3096_v2  ;;  %v3103_v7 = vld [vmem:[%s4480_s1 + $0xf0] sm:$0xff]  ;;  %v3102_v11 = vld [vmem:[%s4480_s1 + $0xe8] sm:$0xff] }
   0x5   :  { %1677 = vmatpush.bf16.msra.mxu3 %v3104_v3  ;;  %v3077_v12 = vld [vmem:[%s4480_s1 + $0x20] sm:$0xff]  ;;  %v3076_v16 = vld [vmem:[%s4480_s1 + $0x18] sm:$0xff]  ;;  %v3075_v20 = vld [vmem:[%s4480_s1 + $0x10] sm:$0xff] }
   0x6   :  { %1171 = vmatpush.bf16.msra.mxu0 %v3079_v4  ;;  %v3085_v13 = vld [vmem:[%s4480_s1 + $0x60] sm:$0xff]  ;;  %v3084_v17 = vld [vmem:[%s4480_s1 + $0x58] sm:$0xff]  ;;  %v3083_v21 = vld [vmem:[%s4480_s1 + $0x50] sm:$0xff] }
   0x7   :  { %1340 = vmatpush.bf16.msra.mxu1 %v3087_v5  ;;  %v3093_v14 = vld [vmem:[%s4480_s1 + $0xa0] sm:$0xff]  ;;  %v3092_v18 = vld [vmem:[%s4480_s1 + $0x98] sm:$0xff]  ;;  %v3091_v22 = vld [vmem:[%s4480_s1 + $0x90] sm:$0xff] }
   0x8   :  { %1509 = vmatpush.bf16.msra.mxu2 %v3095_v6  ;;  %v3101_v15 = vld [vmem:[%s4480_s1 + $0xe0] sm:$0xff]  ;;  %v3100_v19 = vld [vmem:[%s4480_s1 + $0xd8] sm:$0xff]  ;;  %v3099_v23 = vld [vmem:[%s4480_s1 + $0xd0] sm:$0xff] }
   0x9   :  { %1678 = vmatpush.bf16.msra.mxu3 %v3103_v7  ;;  %v3074_v24 = vld [vmem:[%s4480_s1 + $0x8] sm:$0xff]  ;;  %v3073_v28 = vld [vmem:[%s4480_s1] sm:$0xff]  ;;  %v2947_v33 = vld [vmem:[%s4481_s0 + $0xc] sm:$0xf0] }
   0xa   :  { %1172 = vmatpush.bf16.msra.mxu0 %v3078_v8  ;;  %v3082_v25 = vld [vmem:[%s4480_s1 + $0x48] sm:$0xff]  ;;  %v3081_v29 = vld [vmem:[%s4480_s1 + $0x40] sm:$0xff]  ;;  %v2309_v35 = vld [vmem:[%s4481_s0 + $0x10] sm:$0xf0] }
   0xb   :  { %1341 = vmatpush.bf16.msra.mxu1 %v3086_v9  ;;  %v3090_v26 = vld [vmem:[%s4480_s1 + $0x88] sm:$0xff]  ;;  %v3089_v30 = vld [vmem:[%s4480_s1 + $0x80] sm:$0xff]  ;;  %v2948_v37 = vld [vmem:[%s4481_s0 + $0x14] sm:$0xf0] }
   0xc   :  { %1510 = vmatpush.bf16.msra.mxu2 %v3094_v10  ;;  %v3098_v27 = vld [vmem:[%s4480_s1 + $0xc8] sm:$0xff]  ;;  %v3097_v31 = vld [vmem:[%s4480_s1 + $0xc0] sm:$0xff]  ;;  %v2317_v39 = vld [vmem:[%s4481_s0 + $0x18] sm:$0xf0] }
   0xd   :  { %1679 = vmatpush.bf16.msra.mxu3 %v3102_v11  ;;  %v2307_v32 = vld [vmem:[%s4481_s0] sm:$0xf]  ;;  %v2945_v34 = vld [vmem:[%s4481_s0 + $0x4] sm:$0xf]  ;;  %v2315_v36 = vld [vmem:[%s4481_s0 + $0x8] sm:$0xf] }
   0xe   :  { %1173 = vmatpush.bf16.msra.mxu0 %v3077_v12  ;;  %v2946_v38 = vld [vmem:[%s4481_s0 + $0xc] sm:$0xf]  ;;  %v2308_v40 = vor.u32 %v2947_v33, %v2307_v32  ;;  %v2312_v41 = vor.u32 %v2945_v34, %v2309_v35  ;;  %v2316_v42 = vor.u32 %v2948_v37, %v2315_v36  ;;  %v2323_v44 = vld [vmem:[%s4481_s0 + $0x20] sm:$0xf]  ;;  %v2951_v45 = vld [vmem:[%s4481_s0 + $0x2c] sm:$0xf0] }
   0xf   :  { %1342 = vmatpush.bf16.msra.mxu1 %v3085_v13  ;;  %v2320_v43 = vor.u32 %v2946_v38, %v2317_v39  ;;  %v2949_v46 = vld [vmem:[%s4481_s0 + $0x24] sm:$0xf]  ;;  %v2325_v47 = vld [vmem:[%s4481_s0 + $0x30] sm:$0xf0]  ;;  %v2331_v48 = vld [vmem:[%s4481_s0 + $0x28] sm:$0xf]  ;;  %v2324_v52 = vor.u32 %v2951_v45, %v2323_v44 }
  0x10   :  { %1511 = vmatpush.bf16.msra.mxu2 %v3093_v14  ;;  %v2952_v49 = vld [vmem:[%s4481_s0 + $0x34] sm:$0xf0]  ;;  %v2950_v50 = vld [vmem:[%s4481_s0 + $0x2c] sm:$0xf]  ;;  %v2333_v51 = vld [vmem:[%s4481_s0 + $0x38] sm:$0xf0]  ;;  %v2328_v53 = vor.u32 %v2949_v46, %v2325_v47 }
  0x11   :  { %1680 = vmatpush.bf16.msra.mxu3 %v3101_v15  ;;  %v2332_v54 = vor.u32 %v2952_v49, %v2331_v48  ;;  %v2336_v55 = vor.u32 %v2950_v50, %v2333_v51  ;;  %v2339_v56 = vld [vmem:[%s4481_s0 + $0x40] sm:$0xf]  ;;  %v2955_v57 = vld [vmem:[%s4481_s0 + $0x4c] sm:$0xf0]  ;;  %v2953_v58 = vld [vmem:[%s4481_s0 + $0x44] sm:$0xf] }
  0x12   :  { %1174 = vmatpush.bf16.msra.mxu0 %v3076_v16  ;;  %v2341_v59 = vld [vmem:[%s4481_s0 + $0x50] sm:$0xf0]  ;;  %v2347_v60 = vld [vmem:[%s4481_s0 + $0x48] sm:$0xf]  ;;  %v2956_v61 = vld [vmem:[%s4481_s0 + $0x54] sm:$0xf0]  ;;  %v2340_v0 = vor.u32 %v2955_v57, %v2339_v56 }
  0x13   :  { %1343 = vmatpush.bf16.msra.mxu1 %v3084_v17  ;;  %v2954_v62 = vld [vmem:[%s4481_s0 + $0x4c] sm:$0xf]  ;;  %v2349_v63 = vld [vmem:[%s4481_s0 + $0x58] sm:$0xf0]  ;;  %v2344_v1 = vor.u32 %v2953_v58, %v2341_v59  ;;  %v2348_v2 = vor.u32 %v2956_v61, %v2347_v60  ;;  %v2355_v4 = vld [vmem:[%s4481_s0 + $0x60] sm:$0xf] }
  0x14   :  { %1512 = vmatpush.bf16.msra.mxu2 %v3092_v18  ;;  %v2352_v3 = vor.u32 %v2954_v62, %v2349_v63  ;;  %v2959_v5 = vld [vmem:[%s4481_s0 + $0x6c] sm:$0xf0]  ;;  %v2957_v6 = vld [vmem:[%s4481_s0 + $0x64] sm:$0xf]  ;;  %v2357_v7 = vld [vmem:[%s4481_s0 + $0x70] sm:$0xf0] }
  0x15   :  { %1681 = vmatpush.bf16.msra.mxu3 %v3100_v19  ;;  %v2363_v8 = vld [vmem:[%s4481_s0 + $0x68] sm:$0xf]  ;;  %v2960_v9 = vld [vmem:[%s4481_s0 + $0x74] sm:$0xf0]  ;;  %v2958_v10 = vld [vmem:[%s4481_s0 + $0x6c] sm:$0xf]  ;;  %v2356_v12 = vor.u32 %v2959_v5, %v2355_v4  ;;  %v2360_v13 = vor.u32 %v2957_v6, %v2357_v7 }
  0x16   :  { %1175 = vmatpush.bf16.msra.mxu0 %v3075_v20  ;;  %v2365_v11 = vld [vmem:[%s4481_s0 + $0x78] sm:$0xf0]  ;;  %v2364_v14 = vor.u32 %v2960_v9, %v2363_v8  ;;  %v2371_v16 = vld [vmem:[%s4481_s0 + $0x80] sm:$0xf]  ;;  %v2963_v17 = vld [vmem:[%s4481_s0 + $0x8c] sm:$0xf0] }
  0x17   :  { %1344 = vmatpush.bf16.msra.mxu1 %v3083_v21  ;;  %v2368_v15 = vor.u32 %v2958_v10, %v2365_v11  ;;  %v2961_v18 = vld [vmem:[%s4481_s0 + $0x84] sm:$0xf]  ;;  %v2373_v19 = vld [vmem:[%s4481_s0 + $0x90] sm:$0xf0]  ;;  %v2379_v20 = vld [vmem:[%s4481_s0 + $0x88] sm:$0xf] }
  0x18   :  { %1513 = vmatpush.bf16.msra.mxu2 %v3091_v22  ;;  %v2964_v21 = vld [vmem:[%s4481_s0 + $0x94] sm:$0xf0]  ;;  %v2962_v22 = vld [vmem:[%s4481_s0 + $0x8c] sm:$0xf]  ;;  %v2395_v32 = vld [vmem:[%s4481_s0 + $0xa8] sm:$0xf] }
  0x19   :  { %1682 = vmatpush.bf16.msra.mxu3 %v3099_v23  ;;  %v2381_v23 = vld [vmem:[%s4481_s0 + $0x98] sm:$0xf0]  ;;  %v2968_v33 = vld [vmem:[%s4481_s0 + $0xb4] sm:$0xf0]  ;;  %v2966_v34 = vld [vmem:[%s4481_s0 + $0xac] sm:$0xf] }
  0x1a   :  { %1176 = vmatpush.bf16.msra.mxu0 %v3074_v24  ;;  %v2372_v24 = vor.u32 %v2963_v17, %v2371_v16  ;;  %v2397_v35 = vld [vmem:[%s4481_s0 + $0xb8] sm:$0xf0]  ;;  %v2396_v38 = vor.u32 %v2968_v33, %v2395_v32  ;;  %v2411_v44 = vld [vmem:[%s4481_s0 + $0xc8] sm:$0xf]  ;;  %v2972_v45 = vld [vmem:[%s4481_s0 + $0xd4] sm:$0xf0] }
  0x1b   :  { %1345 = vmatpush.bf16.msra.mxu1 %v3082_v25  ;;  %v2376_v25 = vor.u32 %v2961_v18, %v2373_v19  ;;  %v2400_v39 = vor.u32 %v2966_v34, %v2397_v35  ;;  %v2970_v46 = vld [vmem:[%s4481_s0 + $0xcc] sm:$0xf]  ;;  %v2413_v47 = vld [vmem:[%s4481_s0 + $0xd8] sm:$0xf0]  ;;  %v2412_v50 = vor.u32 %v2972_v45, %v2411_v44  ;;  %v2427_v56 = vld [vmem:[%s4481_s0 + $0xe8] sm:$0xf] }
  0x1c   :  { %1514 = vmatpush.bf16.msra.mxu2 %v3090_v26  ;;  %v2380_v26 = vor.u32 %v2964_v21, %v2379_v20  ;;  %v2416_v51 = vor.u32 %v2970_v46, %v2413_v47  ;;  %v2976_v57 = vld [vmem:[%s4481_s0 + $0xf4] sm:$0xf0]  ;;  %v2974_v58 = vld [vmem:[%s4481_s0 + $0xec] sm:$0xf]  ;;  %v2429_v59 = vld [vmem:[%s4481_s0 + $0xf8] sm:$0xf0] }
  0x1d   :  { %1683 = vmatpush.bf16.msra.mxu3 %v3098_v27  ;;  %v2384_v27 = vor.u32 %v2962_v22, %v2381_v23  ;;  %v2428_v62 = vor.u32 %v2976_v57, %v2427_v56  ;;  %v2432_v63 = vor.u32 %v2974_v58, %v2429_v59  ;;  %v2443_v4 = vld [vmem:[%s4481_s0 + $0x108] sm:$0xf]  ;;  %v2980_v5 = vld [vmem:[%s4481_s0 + $0x114] sm:$0xf0]  ;;  %v2978_v6 = vld [vmem:[%s4481_s0 + $0x10c] sm:$0xf] }
  0x1e   :  { %1177 = vmatpush.bf16.msra.mxu0 %v3073_v28  ;;  %v2387_v28 = vld [vmem:[%s4481_s0 + $0xa0] sm:$0xf]  ;;  %v2445_v7 = vld [vmem:[%s4481_s0 + $0x118] sm:$0xf0]  ;;  %v2983_v22 = vld [vmem:[%s4481_s0 + $0x12c] sm:$0xf0] }
  0x1f   :  { %1346 = vmatpush.bf16.msra.mxu1 %v3081_v29  ;;  %v2967_v29 = vld [vmem:[%s4481_s0 + $0xac] sm:$0xf0]  ;;  %v3762_v20 = vld [vmem:[%s4482_s2] ss:$0 sm:$0xff]  ;;  %v2981_v23 = vld [vmem:[%s4481_s0 + $0x124] sm:$0xf] }
  0x20   :  { %1515 = vmatpush.bf16.msra.mxu2 %v3089_v30  ;;  %v2965_v30 = vld [vmem:[%s4481_s0 + $0xa4] sm:$0xf]  ;;  %v2388_v36 = vor.u32 %v2967_v29, %v2387_v28  ;;  %v2451_v21 = vld [vmem:[%s4481_s0 + $0x120] sm:$0xf]  ;;  %v2982_v28 = vld [vmem:[%s4481_s0 + $0x12c] sm:$0xf] }
  0x21   :  { %1684 = vmatpush.bf16.msra.mxu3 %v3097_v31  ;;  %1178 = vmatmul.bf16.vlgmr.msra.gmra.mxu0 %v2308_v40  ;;  %v2389_v31 = vld [vmem:[%s4481_s0 + $0xb0] sm:$0xf0]  ;;  %v2403_v40 = vld [vmem:[%s4481_s0 + $0xc0] sm:$0xf]  ;;  %v2461_v29 = vld [vmem:[%s4481_s0 + $0x138] sm:$0xf0]  ;;  %v2452_v33 = vor.u32 %v2983_v22, %v2451_v21 }
  0x22   :  { %1347 = vmatmul.bf16.vlgmr.msra.gmra.mxu1 %v2312_v41  ;;  %v2392_v37 = vor.u32 %v2965_v30, %v2389_v31  ;;  %v2971_v41 = vld [vmem:[%s4481_s0 + $0xcc] sm:$0xf0]  ;;  %v2988_v58 = vld [vmem:[%s4481_s0 + $0x154] sm:$0xf0]  ;;  %v2986_v59 = vld [vmem:[%s4481_s0 + $0x14c] sm:$0xf] }
  0x23   :  { %1516 = vmatmul.bf16.vlgmr.msra.gmra.mxu2 %v2316_v42  ;;  %v2969_v42 = vld [vmem:[%s4481_s0 + $0xc4] sm:$0xf]  ;;  %v2404_v48 = vor.u32 %v2971_v41, %v2403_v40  ;;  %v2485_v22 = vld [vmem:[%s4481_s0 + $0x170] sm:$0xf0] }
  0x24   :  { %1685 = vmatmul.bf16.vlgmr.msra.gmra.mxu3 %v2320_v43  ;;  %v2405_v43 = vld [vmem:[%s4481_s0 + $0xd0] sm:$0xf0]  ;;  %v2989_v21 = vld [vmem:[%s4481_s0 + $0x164] sm:$0xf] }
  0x25   :  { %v2408_v49 = vor.u32 %v2969_v42, %v2405_v43 }
  0x31   :  { %1183 = vmatmul.bf16.gmra.mxu0 %v2324_v52  ;;  %v2419_v52 = vld [vmem:[%s4481_s0 + $0xe0] sm:$0xf] }
  0x32   :  { %1352 = vmatmul.bf16.gmra.mxu1 %v2328_v53  ;;  %v2975_v53 = vld [vmem:[%s4481_s0 + $0xec] sm:$0xf0] }
  0x33   :  { %1521 = vmatmul.bf16.gmra.mxu2 %v2332_v54  ;;  %v2973_v54 = vld [vmem:[%s4481_s0 + $0xe4] sm:$0xf]  ;;  %v2420_v60 = vor.u32 %v2975_v53, %v2419_v52 }
  0x34   :  { %1690 = vmatmul.bf16.gmra.mxu3 %v2336_v55  ;;  %v2421_v55 = vld [vmem:[%s4481_s0 + $0xf0] sm:$0xf0]  ;;  %v2985_v53 = vld [vmem:[%s4481_s0 + $0x144] sm:$0xf] }
  0x35   :  { %v2424_v61 = vor.u32 %v2973_v54, %v2421_v55  ;;  %v2469_v54 = vld [vmem:[%s4481_s0 + $0x150] sm:$0xf0]  ;;  %v2475_v55 = vld [vmem:[%s4481_s0 + $0x148] sm:$0xf] }
  0x41   :  { %1188 = vmatmul.bf16.gmra.mxu0 %v2340_v0  ;;  %v2435_v0 = vld [vmem:[%s4481_s0 + $0x100] sm:$0xf] }
  0x42   :  { %1357 = vmatmul.bf16.gmra.mxu1 %v2344_v1  ;;  %v2979_v1 = vld [vmem:[%s4481_s0 + $0x10c] sm:$0xf0] }
  0x43   :  { %1526 = vmatmul.bf16.gmra.mxu2 %v2348_v2  ;;  %v2977_v2 = vld [vmem:[%s4481_s0 + $0x104] sm:$0xf]  ;;  %v2436_v8 = vor.u32 %v2979_v1, %v2435_v0  ;;  %v2472_v1 = vor.u32 %v2985_v53, %v2469_v54  ;;  %v2501_v53 = vld [vmem:[%s4481_s0 + $0x190] sm:$0xf0]  ;;  %v2507_v54 = vld [vmem:[%s4481_s0 + $0x188] sm:$0xf] }
  0x44   :  { %1695 = vmatmul.bf16.gmra.mxu3 %v2352_v3  ;;  %v2437_v3 = vld [vmem:[%s4481_s0 + $0x110] sm:$0xf0] }
  0x45   :  { %v2440_v9 = vor.u32 %v2977_v2, %v2437_v3 }
  0x51   :  { %1193 = vmatmul.bf16.gmra.mxu0 %v2356_v12  ;;  %v2444_v12 = vor.u32 %v2980_v5, %v2443_v4  ;;  %v2476_v5 = vor.u32 %v2988_v58, %v2475_v55  ;;  %v2994_v58 = vld [vmem:[%s4481_s0 + $0x18c] sm:$0xf] }
  0x52   :  { %1362 = vmatmul.bf16.gmra.mxu1 %v2360_v13  ;;  %v2448_v13 = vor.u32 %v2978_v6, %v2445_v7 }
  0x53   :  { %1531 = vmatmul.bf16.gmra.mxu2 %v2364_v14 }
  0x54   :  { %1700 = vmatmul.bf16.gmra.mxu3 %v2368_v15 }
  0x61   :  { %1198 = vmatmul.bf16.gmra.mxu0 %v2372_v24  ;;  %v2453_v24 = vld [vmem:[%s4481_s0 + $0x130] sm:$0xf0] }
  0x62   :  { %1367 = vmatmul.bf16.gmra.mxu1 %v2376_v25  ;;  %v2459_v25 = vld [vmem:[%s4481_s0 + $0x128] sm:$0xf]  ;;  %v2456_v34 = vor.u32 %v2981_v23, %v2453_v24 }
  0x63   :  { %1536 = vmatmul.bf16.gmra.mxu2 %v2380_v26  ;;  %v2491_v23 = vld [vmem:[%s4481_s0 + $0x168] sm:$0xf] }
  0x64   :  { %1705 = vmatmul.bf16.gmra.mxu3 %v2384_v27  ;;  %v2984_v27 = vld [vmem:[%s4481_s0 + $0x134] sm:$0xf0] }
  0x71   :  { %1203 = vmatmul.bf16.gmra.mxu0 %v2388_v36 }
  0x72   :  { %1372 = vmatmul.bf16.gmra.mxu1 %v2392_v37 }
  0x73   :  { %1541 = vmatmul.bf16.gmra.mxu2 %v2396_v38  ;;  %v2460_v38 = vor.u32 %v2984_v27, %v2459_v25  ;;  %v2990_v27 = vld [vmem:[%s4481_s0 + $0x16c] sm:$0xf] }
  0x74   :  { %1710 = vmatmul.bf16.gmra.mxu3 %v2400_v39  ;;  %v2464_v39 = vor.u32 %v2982_v28, %v2461_v29  ;;  %v2493_v28 = vld [vmem:[%s4481_s0 + $0x178] sm:$0xf0] }
  0x81   :  { %1208 = vmatmul.bf16.gmra.mxu0 %v2404_v48 }
  0x82   :  { %1377 = vmatmul.bf16.gmra.mxu1 %v2408_v49 }
  0x83   :  { %1546 = vmatmul.bf16.gmra.mxu2 %v2412_v50  ;;  %v2467_v50 = vld [vmem:[%s4481_s0 + $0x140] sm:$0xf] }
  0x84   :  { %1715 = vmatmul.bf16.gmra.mxu3 %v2416_v51  ;;  %v2987_v51 = vld [vmem:[%s4481_s0 + $0x14c] sm:$0xf0] }
  0x85   :  { %v2468_v0 = vor.u32 %v2987_v51, %v2467_v50  ;;  %v2995_v50 = vld [vmem:[%s4481_s0 + $0x18c] sm:$0xf0] }
  0x91   :  { %1213 = vmatmul.bf16.gmra.mxu0 %v2420_v60  ;;  %v2477_v60 = vld [vmem:[%s4481_s0 + $0x158] sm:$0xf0] }
  0x92   :  { %1382 = vmatmul.bf16.gmra.mxu1 %v2424_v61  ;;  %v2480_v6 = vor.u32 %v2986_v59, %v2477_v60  ;;  %v2509_v59 = vld [vmem:[%s4481_s0 + $0x198] sm:$0xf0] }
  0x93   :  { %1551 = vmatmul.bf16.gmra.mxu2 %v2428_v62 }
  0x94   :  { %1720 = vmatmul.bf16.gmra.mxu3 %v2432_v63 }
  0x9e   :  { %v1179_v10 = vpop.f32.mrf.mxu0 }
  0x9f   :  { %v1348_v11 = vpop.f32.mrf.mxu1 }
  0xa0   :  { %v1349_v14 = vadd.f32 %v1348_v11, %v1179_v10 }
  0xa1   :  { %1218 = vmatmul.bf16.gmra.mxu0 %v2436_v8 }
  0xa2   :  { %1387 = vmatmul.bf16.gmra.mxu1 %v2440_v9 }
  0xa3   :  { %1556 = vmatmul.bf16.gmra.mxu2 %v2444_v12 }
  0xa4   :  { %1725 = vmatmul.bf16.gmra.mxu3 %v2448_v13 }
  0xa6   :  { %v1517_v15 = vpop.f32.mrf.mxu2  ;;  %v1181_v17 = vpop.f32.mrf.mxu0 }
  0xa7   :  { %v1686_v16 = vpop.f32.mrf.mxu3  ;;  %v1350_v18 = vpop.f32.mrf.mxu1  ;;  %v1518_v19 = vadd.f32 %v1517_v15, %v1349_v14 }
  0xa8   :  { %v1351_v30 = vadd.f32 %v1350_v18, %v1181_v17  ;;  %v2483_v17 = vld [vmem:[%s4481_s0 + $0x160] sm:$0xf]  ;;  %v2991_v18 = vld [vmem:[%s4481_s0 + $0x16c] sm:$0xf0] }
  0xa9   :  { %v1687_v26 = vadd.f32 %v1686_v16, %v1518_v19 }
  0xab   :  { %v2045_v40 = vadd.f32 %v3762_v20, %v1687_v26  ;;  %v2992_v26 = vld [vmem:[%s4481_s0 + $0x174] sm:$0xf0] }
  0xad   :  { %3297 = vtanh.f32 %v2045_v40 }
  0xae   :  { %v1519_v31 = vpop.f32.mrf.mxu2  ;;  %v1184_v36 = vpop.f32.mrf.mxu0 }
  0xaf   :  { %v1688_v32 = vpop.f32.mrf.mxu3  ;;  %v1520_v35 = vadd.f32 %v1519_v31, %v1351_v30  ;;  %v1353_v37 = vpop.f32.mrf.mxu1 }
  0xb0   :  { %v1354_v43 = vadd.f32 %v1353_v37, %v1184_v36  ;;  %v2492_v37 = vor.u32 %v2992_v26, %v2491_v23  ;;  %v2998_v26 = vld [vmem:[%s4481_s0 + $0x1ac] sm:$0xf] }
  0xb1   :  { %v1689_v41 = vadd.f32 %v1688_v32, %v1520_v35  ;;  %1223 = vmatmul.bf16.gmra.mxu0 %v2452_v33  ;;  %v2484_v32 = vor.u32 %v2991_v18, %v2483_v17  ;;  %v2488_v33 = vor.u32 %v2989_v21, %v2485_v22  ;;  %v2999_v17 = vld [vmem:[%s4481_s0 + $0x1ac] sm:$0xf0]  ;;  %v2517_v21 = vld [vmem:[%s4481_s0 + $0x1b0] sm:$0xf0]  ;;  %v2523_v22 = vld [vmem:[%s4481_s0 + $0x1a8] sm:$0xf] }
  0xb2   :  { %1392 = vmatmul.bf16.gmra.mxu1 %v2456_v34 }
  0xb3   :  { %v2046_v42 = vadd.f32 %v3762_v20, %v1689_v41  ;;  %1561 = vmatmul.bf16.gmra.mxu2 %v2460_v38  ;;  %v3298_v49 = vpop.eup %3297  ;;  %v2496_v38 = vor.u32 %v2990_v27, %v2493_v28  ;;  %v2525_v27 = vld [vmem:[%s4481_s0 + $0x1b8] sm:$0xf0] }
  0xb4   :  { %1730 = vmatmul.bf16.gmra.mxu3 %v2464_v39 }
  0xb5   :  { %3299 = vtanh.f32 %v2046_v42 }
  0xb6   :  { %v1522_v44 = vpop.f32.mrf.mxu2  ;;  %v1186_v46 = vpop.f32.mrf.mxu0 }
  0xb7   :  { %v1691_v45 = vpop.f32.mrf.mxu3  ;;  %v1355_v47 = vpop.f32.mrf.mxu1  ;;  %v1523_v48 = vadd.f32 %v1522_v44, %v1354_v43 }
  0xb8   :  { %v1356_v61 = vadd.f32 %v1355_v47, %v1186_v46 }
  0xb9   :  { %v1692_v57 = vadd.f32 %v1691_v45, %v1523_v48 }
  0xbb   :  { %v3300_v52 = vpop.eup %3299  ;;  %v2047_v7 = vadd.f32 %v3762_v20, %v1692_v57  ;;  %v2996_v57 = vld [vmem:[%s4481_s0 + $0x194] sm:$0xf0] }
  0xbc   :  { %v3108_v56 = vpack.c.bf16 %v3300_v52, %v3298_v49  ;;  %v2499_v49 = vld [vmem:[%s4481_s0 + $0x180] sm:$0xf]  ;;  %v2993_v52 = vld [vmem:[%s4481_s0 + $0x184] sm:$0xf] }
  0xbd   :  { %3301 = vtanh.f32 %v2047_v7 }
  0xbe   :  { %3109 = vst [vmem:[%s4483_s3] sm:$0xff] %v3108_v56   ;;  %v1524_v62 = vpop.f32.mrf.mxu2  ;;  %v1189_v3 = vpop.f32.mrf.mxu0 }
  0xbf   :  { %v1693_v63 = vpop.f32.mrf.mxu3  ;;  %v1525_v2 = vadd.f32 %v1524_v62, %v1356_v61  ;;  %v1358_v4 = vpop.f32.mrf.mxu1 }
  0xc0   :  { %v1359_v10 = vadd.f32 %v1358_v4, %v1189_v3  ;;  %v2508_v4 = vor.u32 %v2996_v57, %v2507_v54  ;;  %v3002_v57 = vld [vmem:[%s4481_s0 + $0x1cc] sm:$0xf] }
  0xc1   :  { %v1694_v8 = vadd.f32 %v1693_v63, %v1525_v2  ;;  %1228 = vmatmul.bf16.gmra.mxu0 %v2468_v0  ;;  %v2500_v63 = vor.u32 %v2995_v50, %v2499_v49  ;;  %v2504_v0 = vor.u32 %v2993_v52, %v2501_v53  ;;  %v3003_v49 = vld [vmem:[%s4481_s0 + $0x1cc] sm:$0xf0]  ;;  %v2533_v52 = vld [vmem:[%s4481_s0 + $0x1d0] sm:$0xf0]  ;;  %v2539_v53 = vld [vmem:[%s4481_s0 + $0x1c8] sm:$0xf] }
  0xc2   :  { %1397 = vmatmul.bf16.gmra.mxu1 %v2472_v1 }
  0xc3   :  { %v2048_v9 = vadd.f32 %v3762_v20, %v1694_v8  ;;  %1566 = vmatmul.bf16.gmra.mxu2 %v2476_v5  ;;  %v3302_v16 = vpop.eup %3301  ;;  %v2512_v5 = vor.u32 %v2994_v58, %v2509_v59  ;;  %v2541_v58 = vld [vmem:[%s4481_s0 + $0x1d8] sm:$0xf0] }
  0xc4   :  { %1735 = vmatmul.bf16.gmra.mxu3 %v2480_v6 }
  0xc5   :  { %3303 = vtanh.f32 %v2048_v9 }
  0xc6   :  { %v1527_v11 = vpop.f32.mrf.mxu2  ;;  %v1191_v13 = vpop.f32.mrf.mxu0 }
  0xc7   :  { %v1696_v12 = vpop.f32.mrf.mxu3  ;;  %v1360_v14 = vpop.f32.mrf.mxu1  ;;  %v1528_v15 = vadd.f32 %v1527_v11, %v1359_v10 }
  0xc8   :  { %v1361_v29 = vadd.f32 %v1360_v14, %v1191_v13 }
  0xc9   :  { %v1697_v25 = vadd.f32 %v1696_v12, %v1528_v15 }
  0xcb   :  { %v3304_v19 = vpop.eup %3303  ;;  %v2049_v39 = vadd.f32 %v3762_v20, %v1697_v25  ;;  %v3000_v25 = vld [vmem:[%s4481_s0 + $0x1b4] sm:$0xf0] }
  0xcc   :  { %v3113_v24 = vpack.c.bf16 %v3304_v19, %v3302_v16  ;;  %v2515_v16 = vld [vmem:[%s4481_s0 + $0x1a0] sm:$0xf]  ;;  %v2997_v19 = vld [vmem:[%s4481_s0 + $0x1a4] sm:$0xf] }
  0xcd   :  { %3305 = vtanh.f32 %v2049_v39 }
  0xce   :  { %3265 = vst [vmem:[%s4483_s3 + $0x8] sm:$0xff] %v3113_v24   ;;  %v1529_v30 = vpop.f32.mrf.mxu2  ;;  %v1194_v35 = vpop.f32.mrf.mxu0 }
  0xcf   :  { %v1698_v31 = vpop.f32.mrf.mxu3  ;;  %v1530_v34 = vadd.f32 %v1529_v30, %v1361_v29  ;;  %v1363_v36 = vpop.f32.mrf.mxu1 }
  0xd0   :  { %v1364_v42 = vadd.f32 %v1363_v36, %v1194_v35  ;;  %v2524_v36 = vor.u32 %v3000_v25, %v2523_v22  ;;  %v3006_v25 = vld [vmem:[%s4481_s0 + $0x1ec] sm:$0xf] }
  0xd1   :  { %v1699_v40 = vadd.f32 %v1698_v31, %v1530_v34  ;;  %1233 = vmatmul.bf16.gmra.mxu0 %v2484_v32  ;;  %v2516_v31 = vor.u32 %v2999_v17, %v2515_v16  ;;  %v2520_v32 = vor.u32 %v2997_v19, %v2517_v21  ;;  %v3007_v16 = vld [vmem:[%s4481_s0 + $0x1ec] sm:$0xf0]  ;;  %v2549_v19 = vld [vmem:[%s4481_s0 + $0x1f0] sm:$0xf0]  ;;  %v2555_v21 = vld [vmem:[%s4481_s0 + $0x1e8] sm:$0xf] }
  0xd2   :  { %1402 = vmatmul.bf16.gmra.mxu1 %v2488_v33 }
  0xd3   :  { %v2050_v41 = vadd.f32 %v3762_v20, %v1699_v40  ;;  %1571 = vmatmul.bf16.gmra.mxu2 %v2492_v37  ;;  %v3306_v48 = vpop.eup %3305  ;;  %v2528_v37 = vor.u32 %v2998_v26, %v2525_v27  ;;  %v2557_v26 = vld [vmem:[%s4481_s0 + $0x1f8] sm:$0xf0] }
  0xd4   :  { %1740 = vmatmul.bf16.gmra.mxu3 %v2496_v38 }
  0xd5   :  { %3307 = vtanh.f32 %v2050_v41 }
  0xd6   :  { %v1532_v43 = vpop.f32.mrf.mxu2  ;;  %v1196_v45 = vpop.f32.mrf.mxu0 }
  0xd7   :  { %v1701_v44 = vpop.f32.mrf.mxu3  ;;  %v1365_v46 = vpop.f32.mrf.mxu1  ;;  %v1533_v47 = vadd.f32 %v1532_v43, %v1364_v42 }
  0xd8   :  { %v1366_v60 = vadd.f32 %v1365_v46, %v1196_v45 }
  0xd9   :  { %v1702_v56 = vadd.f32 %v1701_v44, %v1533_v47 }
  0xdb   :  { %v3308_v51 = vpop.eup %3307  ;;  %v2051_v6 = vadd.f32 %v3762_v20, %v1702_v56  ;;  %v3004_v56 = vld [vmem:[%s4481_s0 + $0x1d4] sm:$0xf0] }
  0xdc   :  { %v3118_v55 = vpack.c.bf16 %v3308_v51, %v3306_v48  ;;  %v2531_v48 = vld [vmem:[%s4481_s0 + $0x1c0] sm:$0xf]  ;;  %v3001_v51 = vld [vmem:[%s4481_s0 + $0x1c4] sm:$0xf] }
  0xdd   :  { %3309 = vtanh.f32 %v2051_v6 }
  0xde   :  { %3266 = vst [vmem:[%s4483_s3 + $0x10] sm:$0xff] %v3118_v55   ;;  %v1534_v61 = vpop.f32.mrf.mxu2  ;;  %v1199_v2 = vpop.f32.mrf.mxu0 }
  0xdf   :  { %v1703_v62 = vpop.f32.mrf.mxu3  ;;  %v1535_v1 = vadd.f32 %v1534_v61, %v1366_v60  ;;  %v1368_v3 = vpop.f32.mrf.mxu1 }
  0xe0   :  { %v1369_v9 = vadd.f32 %v1368_v3, %v1199_v2  ;;  %v2540_v3 = vor.u32 %v3004_v56, %v2539_v53  ;;  %v3010_v56 = vld [vmem:[%s4481_s0 + $0x20c] sm:$0xf] }
  0xe1   :  { %v1704_v7 = vadd.f32 %v1703_v62, %v1535_v1  ;;  %1238 = vmatmul.bf16.gmra.mxu0 %v2500_v63  ;;  %v2532_v62 = vor.u32 %v3003_v49, %v2531_v48  ;;  %v2536_v63 = vor.u32 %v3001_v51, %v2533_v52  ;;  %v3011_v48 = vld [vmem:[%s4481_s0 + $0x20c] sm:$0xf0]  ;;  %v2565_v51 = vld [vmem:[%s4481_s0 + $0x210] sm:$0xf0]  ;;  %v2571_v52 = vld [vmem:[%s4481_s0 + $0x208] sm:$0xf] }
  0xe2   :  { %1407 = vmatmul.bf16.gmra.mxu1 %v2504_v0 }
  0xe3   :  { %v2052_v8 = vadd.f32 %v3762_v20, %v1704_v7  ;;  %1576 = vmatmul.bf16.gmra.mxu2 %v2508_v4  ;;  %v3310_v15 = vpop.eup %3309  ;;  %v2544_v4 = vor.u32 %v3002_v57, %v2541_v58  ;;  %v2573_v57 = vld [vmem:[%s4481_s0 + $0x218] sm:$0xf0] }
  0xe4   :  { %1745 = vmatmul.bf16.gmra.mxu3 %v2512_v5 }
  0xe5   :  { %3311 = vtanh.f32 %v2052_v8 }
  0xe6   :  { %v1537_v10 = vpop.f32.mrf.mxu2  ;;  %v1201_v12 = vpop.f32.mrf.mxu0 }
  0xe7   :  { %v1706_v11 = vpop.f32.mrf.mxu3  ;;  %v1370_v13 = vpop.f32.mrf.mxu1  ;;  %v1538_v14 = vadd.f32 %v1537_v10, %v1369_v9 }
  0xe8   :  { %v1371_v28 = vadd.f32 %v1370_v13, %v1201_v12 }
  0xe9   :  { %v1707_v24 = vadd.f32 %v1706_v11, %v1538_v14 }
  0xeb   :  { %v3312_v18 = vpop.eup %3311  ;;  %v2053_v38 = vadd.f32 %v3762_v20, %v1707_v24  ;;  %v3008_v24 = vld [vmem:[%s4481_s0 + $0x1f4] sm:$0xf0] }
  0xec   :  { %v3123_v23 = vpack.c.bf16 %v3312_v18, %v3310_v15  ;;  %v2547_v15 = vld [vmem:[%s4481_s0 + $0x1e0] sm:$0xf]  ;;  %v3005_v18 = vld [vmem:[%s4481_s0 + $0x1e4] sm:$0xf] }
  0xed   :  { %3313 = vtanh.f32 %v2053_v38 }
  0xee   :  { %3267 = vst [vmem:[%s4483_s3 + $0x18] sm:$0xff] %v3123_v23   ;;  %v1539_v29 = vpop.f32.mrf.mxu2  ;;  %v1204_v34 = vpop.f32.mrf.mxu0 }
  0xef   :  { %v1708_v30 = vpop.f32.mrf.mxu3  ;;  %v1540_v33 = vadd.f32 %v1539_v29, %v1371_v28  ;;  %v1373_v35 = vpop.f32.mrf.mxu1 }
  0xf0   :  { %v1374_v41 = vadd.f32 %v1373_v35, %v1204_v34  ;;  %v2556_v35 = vor.u32 %v3008_v24, %v2555_v21  ;;  %v3014_v24 = vld [vmem:[%s4481_s0 + $0x22c] sm:$0xf] }
  0xf1   :  { %v1709_v39 = vadd.f32 %v1708_v30, %v1540_v33  ;;  %1243 = vmatmul.bf16.gmra.mxu0 %v2516_v31  ;;  %v2548_v30 = vor.u32 %v3007_v16, %v2547_v15  ;;  %v2552_v31 = vor.u32 %v3005_v18, %v2549_v19  ;;  %v3015_v15 = vld [vmem:[%s4481_s0 + $0x22c] sm:$0xf0]  ;;  %v2581_v18 = vld [vmem:[%s4481_s0 + $0x230] sm:$0xf0]  ;;  %v2587_v19 = vld [vmem:[%s4481_s0 + $0x228] sm:$0xf] }
  0xf2   :  { %1412 = vmatmul.bf16.gmra.mxu1 %v2520_v32 }
  0xf3   :  { %v2054_v40 = vadd.f32 %v3762_v20, %v1709_v39  ;;  %1581 = vmatmul.bf16.gmra.mxu2 %v2524_v36  ;;  %v3314_v47 = vpop.eup %3313  ;;  %v2560_v36 = vor.u32 %v3006_v25, %v2557_v26  ;;  %v2589_v25 = vld [vmem:[%s4481_s0 + $0x238] sm:$0xf0] }
  0xf4   :  { %1750 = vmatmul.bf16.gmra.mxu3 %v2528_v37 }
  0xf5   :  { %3315 = vtanh.f32 %v2054_v40 }
  0xf6   :  { %v1542_v42 = vpop.f32.mrf.mxu2  ;;  %v1206_v44 = vpop.f32.mrf.mxu0 }
  0xf7   :  { %v1711_v43 = vpop.f32.mrf.mxu3  ;;  %v1375_v45 = vpop.f32.mrf.mxu1  ;;  %v1543_v46 = vadd.f32 %v1542_v42, %v1374_v41 }
  0xf8   :  { %v1376_v59 = vadd.f32 %v1375_v45, %v1206_v44 }
  0xf9   :  { %v1712_v55 = vadd.f32 %v1711_v43, %v1543_v46 }
  0xfb   :  { %v3316_v50 = vpop.eup %3315  ;;  %v2055_v5 = vadd.f32 %v3762_v20, %v1712_v55  ;;  %v3012_v55 = vld [vmem:[%s4481_s0 + $0x214] sm:$0xf0] }
  0xfc   :  { %v3128_v54 = vpack.c.bf16 %v3316_v50, %v3314_v47  ;;  %v2563_v47 = vld [vmem:[%s4481_s0 + $0x200] sm:$0xf]  ;;  %v3009_v50 = vld [vmem:[%s4481_s0 + $0x204] sm:$0xf] }
  0xfd   :  { %3317 = vtanh.f32 %v2055_v5 }
  0xfe   :  { %3268 = vst [vmem:[%s4483_s3 + $0x20] sm:$0xff] %v3128_v54   ;;  %v1544_v60 = vpop.f32.mrf.mxu2  ;;  %v1209_v1 = vpop.f32.mrf.mxu0 }
  0xff   :  { %v1713_v61 = vpop.f32.mrf.mxu3  ;;  %v1545_v0 = vadd.f32 %v1544_v60, %v1376_v59  ;;  %v1378_v2 = vpop.f32.mrf.mxu1 }
 0x100   :  { %v1379_v8 = vadd.f32 %v1378_v2, %v1209_v1  ;;  %v2572_v2 = vor.u32 %v3012_v55, %v2571_v52  ;;  %v3018_v55 = vld [vmem:[%s4481_s0 + $0x24c] sm:$0xf] }
 0x101   :  { %v1714_v6 = vadd.f32 %v1713_v61, %v1545_v0  ;;  %1248 = vmatmul.bf16.gmra.mxu0 %v2532_v62  ;;  %v2564_v61 = vor.u32 %v3011_v48, %v2563_v47  ;;  %v2568_v62 = vor.u32 %v3009_v50, %v2565_v51  ;;  %v3019_v47 = vld [vmem:[%s4481_s0 + $0x24c] sm:$0xf0]  ;;  %v2597_v50 = vld [vmem:[%s4481_s0 + $0x250] sm:$0xf0]  ;;  %v2603_v51 = vld [vmem:[%s4481_s0 + $0x248] sm:$0xf] }
 0x102   :  { %1417 = vmatmul.bf16.gmra.mxu1 %v2536_v63 }
 0x103   :  { %v2056_v7 = vadd.f32 %v3762_v20, %v1714_v6  ;;  %1586 = vmatmul.bf16.gmra.mxu2 %v2540_v3  ;;  %v3318_v14 = vpop.eup %3317  ;;  %v2576_v3 = vor.u32 %v3010_v56, %v2573_v57  ;;  %v2605_v56 = vld [vmem:[%s4481_s0 + $0x258] sm:$0xf0] }
 0x104   :  { %1755 = vmatmul.bf16.gmra.mxu3 %v2544_v4 }
 0x105   :  { %3319 = vtanh.f32 %v2056_v7 }
 0x106   :  { %v1547_v9 = vpop.f32.mrf.mxu2  ;;  %v1211_v11 = vpop.f32.mrf.mxu0 }
 0x107   :  { %v1716_v10 = vpop.f32.mrf.mxu3  ;;  %v1380_v12 = vpop.f32.mrf.mxu1  ;;  %v1548_v13 = vadd.f32 %v1547_v9, %v1379_v8 }
 0x108   :  { %v1381_v27 = vadd.f32 %v1380_v12, %v1211_v11 }
 0x109   :  { %v1717_v23 = vadd.f32 %v1716_v10, %v1548_v13 }
 0x10b   :  { %v3320_v17 = vpop.eup %3319  ;;  %v2057_v37 = vadd.f32 %v3762_v20, %v1717_v23  ;;  %v3016_v23 = vld [vmem:[%s4481_s0 + $0x234] sm:$0xf0] }
 0x10c   :  { %v3133_v22 = vpack.c.bf16 %v3320_v17, %v3318_v14  ;;  %v2579_v14 = vld [vmem:[%s4481_s0 + $0x220] sm:$0xf]  ;;  %v3013_v17 = vld [vmem:[%s4481_s0 + $0x224] sm:$0xf] }
 0x10d   :  { %3321 = vtanh.f32 %v2057_v37 }
 0x10e   :  { %3269 = vst [vmem:[%s4483_s3 + $0x28] sm:$0xff] %v3133_v22   ;;  %v1549_v28 = vpop.f32.mrf.mxu2  ;;  %v1214_v33 = vpop.f32.mrf.mxu0 }
 0x10f   :  { %v1718_v29 = vpop.f32.mrf.mxu3  ;;  %v1550_v32 = vadd.f32 %v1549_v28, %v1381_v27  ;;  %v1383_v34 = vpop.f32.mrf.mxu1 }
 0x110   :  { %v1384_v40 = vadd.f32 %v1383_v34, %v1214_v33  ;;  %v2588_v34 = vor.u32 %v3016_v23, %v2587_v19  ;;  %v3022_v23 = vld [vmem:[%s4481_s0 + $0x26c] sm:$0xf] }
 0x111   :  { %v1719_v38 = vadd.f32 %v1718_v29, %v1550_v32  ;;  %1253 = vmatmul.bf16.gmra.mxu0 %v2548_v30  ;;  %v2580_v29 = vor.u32 %v3015_v15, %v2579_v14  ;;  %v2584_v30 = vor.u32 %v3013_v17, %v2581_v18  ;;  %v3023_v14 = vld [vmem:[%s4481_s0 + $0x26c] sm:$0xf0]  ;;  %v2613_v17 = vld [vmem:[%s4481_s0 + $0x270] sm:$0xf0]  ;;  %v2619_v18 = vld [vmem:[%s4481_s0 + $0x268] sm:$0xf] }
 0x112   :  { %1422 = vmatmul.bf16.gmra.mxu1 %v2552_v31 }
 0x113   :  { %v2058_v39 = vadd.f32 %v3762_v20, %v1719_v38  ;;  %1591 = vmatmul.bf16.gmra.mxu2 %v2556_v35  ;;  %v3322_v46 = vpop.eup %3321  ;;  %v2592_v35 = vor.u32 %v3014_v24, %v2589_v25  ;;  %v2621_v24 = vld [vmem:[%s4481_s0 + $0x278] sm:$0xf0] }
 0x114   :  { %1760 = vmatmul.bf16.gmra.mxu3 %v2560_v36 }
 0x115   :  { %3323 = vtanh.f32 %v2058_v39 }
 0x116   :  { %v1552_v41 = vpop.f32.mrf.mxu2  ;;  %v1216_v43 = vpop.f32.mrf.mxu0 }
 0x117   :  { %v1721_v42 = vpop.f32.mrf.mxu3  ;;  %v1385_v44 = vpop.f32.mrf.mxu1  ;;  %v1553_v45 = vadd.f32 %v1552_v41, %v1384_v40 }
 0x118   :  { %v1386_v58 = vadd.f32 %v1385_v44, %v1216_v43 }
 0x119   :  { %v1722_v54 = vadd.f32 %v1721_v42, %v1553_v45 }
 0x11b   :  { %v3324_v49 = vpop.eup %3323  ;;  %v2059_v4 = vadd.f32 %v3762_v20, %v1722_v54  ;;  %v3020_v54 = vld [vmem:[%s4481_s0 + $0x254] sm:$0xf0] }
 0x11c   :  { %v3138_v53 = vpack.c.bf16 %v3324_v49, %v3322_v46  ;;  %v2595_v46 = vld [vmem:[%s4481_s0 + $0x240] sm:$0xf]  ;;  %v3017_v49 = vld [vmem:[%s4481_s0 + $0x244] sm:$0xf] }
 0x11d   :  { %3325 = vtanh.f32 %v2059_v4 }
 0x11e   :  { %3270 = vst [vmem:[%s4483_s3 + $0x30] sm:$0xff] %v3138_v53   ;;  %v1554_v59 = vpop.f32.mrf.mxu2  ;;  %v1219_v0 = vpop.f32.mrf.mxu0 }
 0x11f   :  { %v1723_v60 = vpop.f32.mrf.mxu3  ;;  %v1555_v63 = vadd.f32 %v1554_v59, %v1386_v58  ;;  %v1388_v1 = vpop.f32.mrf.mxu1 }
 0x120   :  { %v1389_v7 = vadd.f32 %v1388_v1, %v1219_v0  ;;  %v2604_v1 = vor.u32 %v3020_v54, %v2603_v51  ;;  %v3026_v54 = vld [vmem:[%s4481_s0 + $0x28c] sm:$0xf] }
 0x121   :  { %v1724_v5 = vadd.f32 %v1723_v60, %v1555_v63  ;;  %1258 = vmatmul.bf16.gmra.mxu0 %v2564_v61  ;;  %v2596_v60 = vor.u32 %v3019_v47, %v2595_v46  ;;  %v2600_v61 = vor.u32 %v3017_v49, %v2597_v50  ;;  %v3027_v46 = vld [vmem:[%s4481_s0 + $0x28c] sm:$0xf0]  ;;  %v2629_v49 = vld [vmem:[%s4481_s0 + $0x290] sm:$0xf0]  ;;  %v2635_v50 = vld [vmem:[%s4481_s0 + $0x288] sm:$0xf] }
 0x122   :  { %1427 = vmatmul.bf16.gmra.mxu1 %v2568_v62 }
 0x123   :  { %v2060_v6 = vadd.f32 %v3762_v20, %v1724_v5  ;;  %1596 = vmatmul.bf16.gmra.mxu2 %v2572_v2  ;;  %v3326_v13 = vpop.eup %3325  ;;  %v2608_v2 = vor.u32 %v3018_v55, %v2605_v56  ;;  %v2637_v55 = vld [vmem:[%s4481_s0 + $0x298] sm:$0xf0] }
 0x124   :  { %1765 = vmatmul.bf16.gmra.mxu3 %v2576_v3 }
 0x125   :  { %3327 = vtanh.f32 %v2060_v6 }
 0x126   :  { %v1557_v8 = vpop.f32.mrf.mxu2  ;;  %v1221_v10 = vpop.f32.mrf.mxu0 }
 0x127   :  { %v1726_v9 = vpop.f32.mrf.mxu3  ;;  %v1390_v11 = vpop.f32.mrf.mxu1  ;;  %v1558_v12 = vadd.f32 %v1557_v8, %v1389_v7 }
 0x128   :  { %v1391_v26 = vadd.f32 %v1390_v11, %v1221_v10 }
 0x129   :  { %v1727_v22 = vadd.f32 %v1726_v9, %v1558_v12 }
 0x12b   :  { %v3328_v16 = vpop.eup %3327  ;;  %v2061_v36 = vadd.f32 %v3762_v20, %v1727_v22  ;;  %v3024_v22 = vld [vmem:[%s4481_s0 + $0x274] sm:$0xf0] }
 0x12c   :  { %v3143_v21 = vpack.c.bf16 %v3328_v16, %v3326_v13  ;;  %v2611_v13 = vld [vmem:[%s4481_s0 + $0x260] sm:$0xf]  ;;  %v3021_v16 = vld [vmem:[%s4481_s0 + $0x264] sm:$0xf] }
 0x12d   :  { %3329 = vtanh.f32 %v2061_v36 }
 0x12e   :  { %3271 = vst [vmem:[%s4483_s3 + $0x38] sm:$0xff] %v3143_v21   ;;  %v1559_v27 = vpop.f32.mrf.mxu2  ;;  %v1224_v32 = vpop.f32.mrf.mxu0 }
 0x12f   :  { %v1728_v28 = vpop.f32.mrf.mxu3  ;;  %v1560_v31 = vadd.f32 %v1559_v27, %v1391_v26  ;;  %v1393_v33 = vpop.f32.mrf.mxu1 }
 0x130   :  { %v1394_v39 = vadd.f32 %v1393_v33, %v1224_v32  ;;  %v2620_v33 = vor.u32 %v3024_v22, %v2619_v18  ;;  %v3030_v22 = vld [vmem:[%s4481_s0 + $0x2ac] sm:$0xf] }
 0x131   :  { %v1729_v37 = vadd.f32 %v1728_v28, %v1560_v31  ;;  %1263 = vmatmul.bf16.gmra.mxu0 %v2580_v29  ;;  %v2612_v28 = vor.u32 %v3023_v14, %v2611_v13  ;;  %v2616_v29 = vor.u32 %v3021_v16, %v2613_v17  ;;  %v3031_v13 = vld [vmem:[%s4481_s0 + $0x2ac] sm:$0xf0]  ;;  %v2645_v16 = vld [vmem:[%s4481_s0 + $0x2b0] sm:$0xf0]  ;;  %v2651_v17 = vld [vmem:[%s4481_s0 + $0x2a8] sm:$0xf] }
 0x132   :  { %1432 = vmatmul.bf16.gmra.mxu1 %v2584_v30 }
 0x133   :  { %v2062_v38 = vadd.f32 %v3762_v20, %v1729_v37  ;;  %1601 = vmatmul.bf16.gmra.mxu2 %v2588_v34  ;;  %v3330_v45 = vpop.eup %3329  ;;  %v2624_v34 = vor.u32 %v3022_v23, %v2621_v24  ;;  %v2653_v23 = vld [vmem:[%s4481_s0 + $0x2b8] sm:$0xf0] }
 0x134   :  { %1770 = vmatmul.bf16.gmra.mxu3 %v2592_v35 }
 0x135   :  { %3331 = vtanh.f32 %v2062_v38 }
 0x136   :  { %v1562_v40 = vpop.f32.mrf.mxu2  ;;  %v1226_v42 = vpop.f32.mrf.mxu0 }
 0x137   :  { %v1731_v41 = vpop.f32.mrf.mxu3  ;;  %v1395_v43 = vpop.f32.mrf.mxu1  ;;  %v1563_v44 = vadd.f32 %v1562_v40, %v1394_v39 }
 0x138   :  { %v1396_v57 = vadd.f32 %v1395_v43, %v1226_v42 }
 0x139   :  { %v1732_v53 = vadd.f32 %v1731_v41, %v1563_v44 }
 0x13b   :  { %v3332_v48 = vpop.eup %3331  ;;  %v2063_v3 = vadd.f32 %v3762_v20, %v1732_v53  ;;  %v3028_v53 = vld [vmem:[%s4481_s0 + $0x294] sm:$0xf0] }
 0x13c   :  { %v3148_v52 = vpack.c.bf16 %v3332_v48, %v3330_v45  ;;  %v2627_v45 = vld [vmem:[%s4481_s0 + $0x280] sm:$0xf]  ;;  %v3025_v48 = vld [vmem:[%s4481_s0 + $0x284] sm:$0xf] }
 0x13d   :  { %3333 = vtanh.f32 %v2063_v3 }
 0x13e   :  { %3272 = vst [vmem:[%s4483_s3 + $0x40] sm:$0xff] %v3148_v52   ;;  %v1564_v58 = vpop.f32.mrf.mxu2  ;;  %v1229_v63 = vpop.f32.mrf.mxu0 }
 0x13f   :  { %v1733_v59 = vpop.f32.mrf.mxu3  ;;  %v1565_v62 = vadd.f32 %v1564_v58, %v1396_v57  ;;  %v1398_v0 = vpop.f32.mrf.mxu1 }
 0x140   :  { %v1399_v6 = vadd.f32 %v1398_v0, %v1229_v63  ;;  %v2636_v0 = vor.u32 %v3028_v53, %v2635_v50  ;;  %v2669_v53 = vld [vmem:[%s4481_s0 + $0x2d8] sm:$0xf0] }
 0x141   :  { %v1734_v4 = vadd.f32 %v1733_v59, %v1565_v62  ;;  %1268 = vmatmul.bf16.gmra.mxu0 %v2596_v60  ;;  %v2628_v59 = vor.u32 %v3027_v46, %v2627_v45  ;;  %v2632_v60 = vor.u32 %v3025_v48, %v2629_v49  ;;  %v3035_v45 = vld [vmem:[%s4481_s0 + $0x2cc] sm:$0xf0]  ;;  %v3033_v46 = vld [vmem:[%s4481_s0 + $0x2c4] sm:$0xf]  ;;  %v2667_v48 = vld [vmem:[%s4481_s0 + $0x2c8] sm:$0xf] }
 0x142   :  { %1437 = vmatmul.bf16.gmra.mxu1 %v2600_v61 }
 0x143   :  { %v2064_v5 = vadd.f32 %v3762_v20, %v1734_v4  ;;  %1606 = vmatmul.bf16.gmra.mxu2 %v2604_v1  ;;  %v3334_v12 = vpop.eup %3333  ;;  %v2640_v1 = vor.u32 %v3026_v54, %v2637_v55 }
 0x144   :  { %1775 = vmatmul.bf16.gmra.mxu3 %v2608_v2 }
 0x145   :  { %3335 = vtanh.f32 %v2064_v5 }
 0x146   :  { %v1567_v7 = vpop.f32.mrf.mxu2  ;;  %v1231_v9 = vpop.f32.mrf.mxu0 }
 0x147   :  { %v1736_v8 = vpop.f32.mrf.mxu3  ;;  %v1400_v10 = vpop.f32.mrf.mxu1  ;;  %v1568_v11 = vadd.f32 %v1567_v7, %v1399_v6 }
 0x148   :  { %v1401_v25 = vadd.f32 %v1400_v10, %v1231_v9 }
 0x149   :  { %v1737_v21 = vadd.f32 %v1736_v8, %v1568_v11 }
 0x14b   :  { %v3336_v15 = vpop.eup %3335  ;;  %v2065_v35 = vadd.f32 %v3762_v20, %v1737_v21  ;;  %v3032_v21 = vld [vmem:[%s4481_s0 + $0x2b4] sm:$0xf0] }
 0x14c   :  { %v3153_v19 = vpack.c.bf16 %v3336_v15, %v3334_v12  ;;  %v2643_v12 = vld [vmem:[%s4481_s0 + $0x2a0] sm:$0xf]  ;;  %v3029_v15 = vld [vmem:[%s4481_s0 + $0x2a4] sm:$0xf] }
 0x14d   :  { %3337 = vtanh.f32 %v2065_v35 }
 0x14e   :  { %3273 = vst [vmem:[%s4483_s3 + $0x48] sm:$0xff] %v3153_v19   ;;  %v1569_v26 = vpop.f32.mrf.mxu2  ;;  %v1234_v31 = vpop.f32.mrf.mxu0 }
 0x14f   :  { %v1738_v27 = vpop.f32.mrf.mxu3  ;;  %v1570_v30 = vadd.f32 %v1569_v26, %v1401_v25  ;;  %v1403_v32 = vpop.f32.mrf.mxu1 }
 0x150   :  { %v1404_v38 = vadd.f32 %v1403_v32, %v1234_v31  ;;  %v2652_v32 = vor.u32 %v3032_v21, %v2651_v17  ;;  %v3038_v21 = vld [vmem:[%s4481_s0 + $0x2ec] sm:$0xf] }
 0x151   :  { %v1739_v36 = vadd.f32 %v1738_v27, %v1570_v30  ;;  %1273 = vmatmul.bf16.gmra.mxu0 %v2612_v28  ;;  %v2644_v27 = vor.u32 %v3031_v13, %v2643_v12  ;;  %v2648_v28 = vor.u32 %v3029_v15, %v2645_v16  ;;  %v3039_v12 = vld [vmem:[%s4481_s0 + $0x2ec] sm:$0xf0]  ;;  %v2677_v15 = vld [vmem:[%s4481_s0 + $0x2f0] sm:$0xf0]  ;;  %v2683_v16 = vld [vmem:[%s4481_s0 + $0x2e8] sm:$0xf] }
 0x152   :  { %1442 = vmatmul.bf16.gmra.mxu1 %v2616_v29 }
 0x153   :  { %v2066_v37 = vadd.f32 %v3762_v20, %v1739_v36  ;;  %1611 = vmatmul.bf16.gmra.mxu2 %v2620_v33  ;;  %v3338_v44 = vpop.eup %3337  ;;  %v2656_v33 = vor.u32 %v3030_v22, %v2653_v23  ;;  %v2685_v22 = vld [vmem:[%s4481_s0 + $0x2f8] sm:$0xf0] }
 0x154   :  { %1780 = vmatmul.bf16.gmra.mxu3 %v2624_v34 }
 0x155   :  { %3339 = vtanh.f32 %v2066_v37 }
 0x156   :  { %v1572_v39 = vpop.f32.mrf.mxu2  ;;  %v1236_v41 = vpop.f32.mrf.mxu0 }
 0x157   :  { %v1741_v40 = vpop.f32.mrf.mxu3  ;;  %v1405_v42 = vpop.f32.mrf.mxu1  ;;  %v1573_v43 = vadd.f32 %v1572_v39, %v1404_v38 }
 0x158   :  { %v1406_v56 = vadd.f32 %v1405_v42, %v1236_v41 }
 0x159   :  { %v1742_v52 = vadd.f32 %v1741_v40, %v1573_v43 }
 0x15b   :  { %v3340_v47 = vpop.eup %3339  ;;  %v2067_v2 = vadd.f32 %v3762_v20, %v1742_v52  ;;  %v3034_v52 = vld [vmem:[%s4481_s0 + $0x2cc] sm:$0xf] }
 0x15c   :  { %v3158_v51 = vpack.c.bf16 %v3340_v47, %v3338_v44  ;;  %v2659_v44 = vld [vmem:[%s4481_s0 + $0x2c0] sm:$0xf]  ;;  %v2661_v47 = vld [vmem:[%s4481_s0 + $0x2d0] sm:$0xf0] }
 0x15d   :  { %3341 = vtanh.f32 %v2067_v2 }
 0x15e   :  { %3274 = vst [vmem:[%s4483_s3 + $0x50] sm:$0xff] %v3158_v51   ;;  %v1574_v57 = vpop.f32.mrf.mxu2  ;;  %v1239_v62 = vpop.f32.mrf.mxu0  ;;  %v3036_v51 = vld [vmem:[%s4481_s0 + $0x2d4] sm:$0xf0] }
 0x15f   :  { %v1743_v58 = vpop.f32.mrf.mxu3  ;;  %v1575_v61 = vadd.f32 %v1574_v57, %v1406_v56  ;;  %v1408_v63 = vpop.f32.mrf.mxu1  ;;  %v2660_v57 = vor.u32 %v3035_v45, %v2659_v44  ;;  %v3043_v44 = vld [vmem:[%s4481_s0 + $0x30c] sm:$0xf0] }
 0x160   :  { %v1409_v5 = vadd.f32 %v1408_v63, %v1239_v62  ;;  %v2668_v62 = vor.u32 %v3036_v51, %v2667_v48  ;;  %v2672_v63 = vor.u32 %v3034_v52, %v2669_v53  ;;  %v3042_v51 = vld [vmem:[%s4481_s0 + $0x30c] sm:$0xf]  ;;  %v2701_v52 = vld [vmem:[%s4481_s0 + $0x318] sm:$0xf0] }
 0x161   :  { %v1744_v3 = vadd.f32 %v1743_v58, %v1575_v61  ;;  %1278 = vmatmul.bf16.gmra.mxu0 %v2628_v59  ;;  %v2664_v58 = vor.u32 %v3033_v46, %v2661_v47  ;;  %v2693_v46 = vld [vmem:[%s4481_s0 + $0x310] sm:$0xf0]  ;;  %v2699_v47 = vld [vmem:[%s4481_s0 + $0x308] sm:$0xf] }
 0x162   :  { %1447 = vmatmul.bf16.gmra.mxu1 %v2632_v60 }
 0x163   :  { %v2068_v4 = vadd.f32 %v3762_v20, %v1744_v3  ;;  %1616 = vmatmul.bf16.gmra.mxu2 %v2636_v0  ;;  %v3342_v11 = vpop.eup %3341  ;;  %v4168_v0 = vld [vmem:[%s4482_s2] ss:$0 sm:$0xff] }
 0x164   :  { %1785 = vmatmul.bf16.gmra.mxu3 %v2640_v1 }
 0x165   :  { %3343 = vtanh.f32 %v2068_v4 }
 0x166   :  { %v1577_v6 = vpop.f32.mrf.mxu2  ;;  %v1241_v8 = vpop.f32.mrf.mxu0 }
 0x167   :  { %v1746_v7 = vpop.f32.mrf.mxu3  ;;  %v1410_v9 = vpop.f32.mrf.mxu1  ;;  %v1578_v10 = vadd.f32 %v1577_v6, %v1409_v5 }
 0x168   :  { %v1411_v24 = vadd.f32 %v1410_v9, %v1241_v8 }
 0x169   :  { %v1747_v19 = vadd.f32 %v1746_v7, %v1578_v10 }
 0x16b   :  { %v3344_v14 = vpop.eup %3343  ;;  %v2069_v34 = vadd.f32 %v3762_v20, %v1747_v19  ;;  %v3040_v19 = vld [vmem:[%s4481_s0 + $0x2f4] sm:$0xf0] }
 0x16c   :  { %v3163_v18 = vpack.c.bf16 %v3344_v14, %v3342_v11  ;;  %v2675_v11 = vld [vmem:[%s4481_s0 + $0x2e0] sm:$0xf]  ;;  %v3037_v14 = vld [vmem:[%s4481_s0 + $0x2e4] sm:$0xf] }
 0x16d   :  { %3345 = vtanh.f32 %v2069_v34 }
 0x16e   :  { %3275 = vst [vmem:[%s4483_s3 + $0x58] sm:$0xff] %v3163_v18   ;;  %v1579_v25 = vpop.f32.mrf.mxu2  ;;  %v1244_v30 = vpop.f32.mrf.mxu0 }
 0x16f   :  { %v1748_v26 = vpop.f32.mrf.mxu3  ;;  %v1580_v29 = vadd.f32 %v1579_v25, %v1411_v24  ;;  %v1413_v31 = vpop.f32.mrf.mxu1 }
 0x170   :  { %v1414_v37 = vadd.f32 %v1413_v31, %v1244_v30  ;;  %v2684_v31 = vor.u32 %v3040_v19, %v2683_v16  ;;  %v3046_v19 = vld [vmem:[%s4481_s0 + $0x32c] sm:$0xf] }
 0x171   :  { %v1749_v35 = vadd.f32 %v1748_v26, %v1580_v29  ;;  %1283 = vmatmul.bf16.gmra.mxu0 %v2644_v27  ;;  %v2676_v26 = vor.u32 %v3039_v12, %v2675_v11  ;;  %v2680_v27 = vor.u32 %v3037_v14, %v2677_v15  ;;  %v3047_v11 = vld [vmem:[%s4481_s0 + $0x32c] sm:$0xf0]  ;;  %v2709_v14 = vld [vmem:[%s4481_s0 + $0x330] sm:$0xf0]  ;;  %v2715_v15 = vld [vmem:[%s4481_s0 + $0x328] sm:$0xf] }
 0x172   :  { %1452 = vmatmul.bf16.gmra.mxu1 %v2648_v28 }
 0x173   :  { %v2070_v36 = vadd.f32 %v3762_v20, %v1749_v35  ;;  %1621 = vmatmul.bf16.gmra.mxu2 %v2652_v32  ;;  %v3346_v43 = vpop.eup %3345  ;;  %v2688_v32 = vor.u32 %v3038_v21, %v2685_v22  ;;  %v2717_v21 = vld [vmem:[%s4481_s0 + $0x338] sm:$0xf0] }
 0x174   :  { %1790 = vmatmul.bf16.gmra.mxu3 %v2656_v33 }
 0x175   :  { %3347 = vtanh.f32 %v2070_v36 }
 0x176   :  { %v1582_v38 = vpop.f32.mrf.mxu2  ;;  %v1246_v40 = vpop.f32.mrf.mxu0 }
 0x177   :  { %v1751_v39 = vpop.f32.mrf.mxu3  ;;  %v1415_v41 = vpop.f32.mrf.mxu1  ;;  %v1583_v42 = vadd.f32 %v1582_v38, %v1414_v37 }
 0x178   :  { %v1416_v54 = vadd.f32 %v1415_v41, %v1246_v40 }
 0x179   :  { %v1752_v50 = vadd.f32 %v1751_v39, %v1583_v42 }
 0x17b   :  { %v3348_v20 = vpop.eup %3347  ;;  %v2071_v1 = vadd.f32 %v4168_v0, %v1752_v50  ;;  %v3044_v50 = vld [vmem:[%s4481_s0 + $0x314] sm:$0xf0] }
 0x17c   :  { %v3168_v49 = vpack.c.bf16 %v3348_v20, %v3346_v43  ;;  %v2691_v43 = vld [vmem:[%s4481_s0 + $0x300] sm:$0xf]  ;;  %v3041_v20 = vld [vmem:[%s4481_s0 + $0x304] sm:$0xf] }
 0x17d   :  { %3349 = vtanh.f32 %v2071_v1 }
 0x17e   :  { %3276 = vst [vmem:[%s4483_s3 + $0x60] sm:$0xff] %v3168_v49   ;;  %v1584_v55 = vpop.f32.mrf.mxu2  ;;  %v1249_v60 = vpop.f32.mrf.mxu0 }
 0x17f   :  { %v1753_v56 = vpop.f32.mrf.mxu3  ;;  %v1585_v59 = vadd.f32 %v1584_v55, %v1416_v54  ;;  %v1418_v61 = vpop.f32.mrf.mxu1 }
 0x180   :  { %v1419_v4 = vadd.f32 %v1418_v61, %v1249_v60  ;;  %v2700_v61 = vor.u32 %v3044_v50, %v2699_v47  ;;  %v3050_v50 = vld [vmem:[%s4481_s0 + $0x34c] sm:$0xf] }
 0x181   :  { %v1754_v2 = vadd.f32 %v1753_v56, %v1585_v59  ;;  %1288 = vmatmul.bf16.gmra.mxu0 %v2660_v57  ;;  %v2692_v56 = vor.u32 %v3043_v44, %v2691_v43  ;;  %v2696_v57 = vor.u32 %v3041_v20, %v2693_v46  ;;  %v3051_v43 = vld [vmem:[%s4481_s0 + $0x34c] sm:$0xf0]  ;;  %v2725_v20 = vld [vmem:[%s4481_s0 + $0x350] sm:$0xf0]  ;;  %v2731_v46 = vld [vmem:[%s4481_s0 + $0x348] sm:$0xf] }
 0x182   :  { %1457 = vmatmul.bf16.gmra.mxu1 %v2664_v58 }
 0x183   :  { %v2072_v3 = vadd.f32 %v4168_v0, %v1754_v2  ;;  %1626 = vmatmul.bf16.gmra.mxu2 %v2668_v62  ;;  %v3350_v10 = vpop.eup %3349  ;;  %v2704_v62 = vor.u32 %v3042_v51, %v2701_v52  ;;  %v2733_v51 = vld [vmem:[%s4481_s0 + $0x358] sm:$0xf0] }
 0x184   :  { %1795 = vmatmul.bf16.gmra.mxu3 %v2672_v63 }
 0x185   :  { %3351 = vtanh.f32 %v2072_v3 }
 0x186   :  { %v1587_v5 = vpop.f32.mrf.mxu2  ;;  %v1251_v7 = vpop.f32.mrf.mxu0 }
 0x187   :  { %v1756_v6 = vpop.f32.mrf.mxu3  ;;  %v1420_v8 = vpop.f32.mrf.mxu1  ;;  %v1588_v9 = vadd.f32 %v1587_v5, %v1419_v4 }
 0x188   :  { %v1421_v23 = vadd.f32 %v1420_v8, %v1251_v7 }
 0x189   :  { %v1757_v18 = vadd.f32 %v1756_v6, %v1588_v9 }
 0x18b   :  { %v3352_v13 = vpop.eup %3351  ;;  %v2073_v33 = vadd.f32 %v4168_v0, %v1757_v18  ;;  %v3048_v18 = vld [vmem:[%s4481_s0 + $0x334] sm:$0xf0] }
 0x18c   :  { %v3173_v17 = vpack.c.bf16 %v3352_v13, %v3350_v10  ;;  %v2707_v10 = vld [vmem:[%s4481_s0 + $0x320] sm:$0xf]  ;;  %v3045_v13 = vld [vmem:[%s4481_s0 + $0x324] sm:$0xf] }
 0x18d   :  { %3353 = vtanh.f32 %v2073_v33 }
 0x18e   :  { %3277 = vst [vmem:[%s4483_s3 + $0x68] sm:$0xff] %v3173_v17   ;;  %v1589_v24 = vpop.f32.mrf.mxu2  ;;  %v1254_v29 = vpop.f32.mrf.mxu0 }
 0x18f   :  { %v1758_v25 = vpop.f32.mrf.mxu3  ;;  %v1590_v28 = vadd.f32 %v1589_v24, %v1421_v23  ;;  %v1423_v30 = vpop.f32.mrf.mxu1 }
 0x190   :  { %v1424_v36 = vadd.f32 %v1423_v30, %v1254_v29  ;;  %v2716_v30 = vor.u32 %v3048_v18, %v2715_v15  ;;  %v3054_v18 = vld [vmem:[%s4481_s0 + $0x36c] sm:$0xf] }
 0x191   :  { %v1759_v34 = vadd.f32 %v1758_v25, %v1590_v28  ;;  %1293 = vmatmul.bf16.gmra.mxu0 %v2676_v26  ;;  %v2708_v25 = vor.u32 %v3047_v11, %v2707_v10  ;;  %v2712_v26 = vor.u32 %v3045_v13, %v2709_v14  ;;  %v3055_v10 = vld [vmem:[%s4481_s0 + $0x36c] sm:$0xf0]  ;;  %v2741_v13 = vld [vmem:[%s4481_s0 + $0x370] sm:$0xf0]  ;;  %v2747_v14 = vld [vmem:[%s4481_s0 + $0x368] sm:$0xf] }
 0x192   :  { %1462 = vmatmul.bf16.gmra.mxu1 %v2680_v27 }
 0x193   :  { %v2074_v35 = vadd.f32 %v4168_v0, %v1759_v34  ;;  %1631 = vmatmul.bf16.gmra.mxu2 %v2684_v31  ;;  %v3354_v42 = vpop.eup %3353  ;;  %v2720_v31 = vor.u32 %v3046_v19, %v2717_v21  ;;  %v2749_v19 = vld [vmem:[%s4481_s0 + $0x378] sm:$0xf0] }
 0x194   :  { %1800 = vmatmul.bf16.gmra.mxu3 %v2688_v32 }
 0x195   :  { %3355 = vtanh.f32 %v2074_v35 }
 0x196   :  { %v1592_v37 = vpop.f32.mrf.mxu2  ;;  %v1256_v39 = vpop.f32.mrf.mxu0 }
 0x197   :  { %v1761_v38 = vpop.f32.mrf.mxu3  ;;  %v1425_v40 = vpop.f32.mrf.mxu1  ;;  %v1593_v41 = vadd.f32 %v1592_v37, %v1424_v36 }
 0x198   :  { %v1426_v53 = vadd.f32 %v1425_v40, %v1256_v39 }
 0x199   :  { %v1762_v49 = vadd.f32 %v1761_v38, %v1593_v41 }
 0x19b   :  { %v3356_v45 = vpop.eup %3355  ;;  %v2075_v63 = vadd.f32 %v4168_v0, %v1762_v49  ;;  %v3052_v49 = vld [vmem:[%s4481_s0 + $0x354] sm:$0xf0] }
 0x19c   :  { %v3178_v48 = vpack.c.bf16 %v3356_v45, %v3354_v42  ;;  %v2723_v42 = vld [vmem:[%s4481_s0 + $0x340] sm:$0xf]  ;;  %v3049_v45 = vld [vmem:[%s4481_s0 + $0x344] sm:$0xf] }
 0x19d   :  { %3357 = vtanh.f32 %v2075_v63 }
 0x19e   :  { %3278 = vst [vmem:[%s4483_s3 + $0x70] sm:$0xff] %v3178_v48   ;;  %v1594_v54 = vpop.f32.mrf.mxu2  ;;  %v1259_v59 = vpop.f32.mrf.mxu0 }
 0x19f   :  { %v1763_v55 = vpop.f32.mrf.mxu3  ;;  %v1595_v58 = vadd.f32 %v1594_v54, %v1426_v53  ;;  %v1428_v60 = vpop.f32.mrf.mxu1 }
 0x1a0   :  { %v1429_v3 = vadd.f32 %v1428_v60, %v1259_v59  ;;  %v2732_v60 = vor.u32 %v3052_v49, %v2731_v46  ;;  %v3058_v49 = vld [vmem:[%s4481_s0 + $0x38c] sm:$0xf] }
 0x1a1   :  { %v1764_v1 = vadd.f32 %v1763_v55, %v1595_v58  ;;  %1298 = vmatmul.bf16.gmra.mxu0 %v2692_v56  ;;  %v2724_v55 = vor.u32 %v3051_v43, %v2723_v42  ;;  %v2728_v56 = vor.u32 %v3049_v45, %v2725_v20  ;;  %v3059_v42 = vld [vmem:[%s4481_s0 + $0x38c] sm:$0xf0]  ;;  %v2757_v45 = vld [vmem:[%s4481_s0 + $0x390] sm:$0xf0]  ;;  %v2763_v20 = vld [vmem:[%s4481_s0 + $0x388] sm:$0xf] }
 0x1a2   :  { %1467 = vmatmul.bf16.gmra.mxu1 %v2696_v57 }
 0x1a3   :  { %v2076_v2 = vadd.f32 %v4168_v0, %v1764_v1  ;;  %1636 = vmatmul.bf16.gmra.mxu2 %v2700_v61  ;;  %v3358_v9 = vpop.eup %3357  ;;  %v2736_v61 = vor.u32 %v3050_v50, %v2733_v51  ;;  %v2765_v50 = vld [vmem:[%s4481_s0 + $0x398] sm:$0xf0] }
 0x1a4   :  { %1805 = vmatmul.bf16.gmra.mxu3 %v2704_v62 }
 0x1a5   :  { %3359 = vtanh.f32 %v2076_v2 }
 0x1a6   :  { %v1597_v4 = vpop.f32.mrf.mxu2  ;;  %v1261_v6 = vpop.f32.mrf.mxu0 }
 0x1a7   :  { %v1766_v5 = vpop.f32.mrf.mxu3  ;;  %v1430_v7 = vpop.f32.mrf.mxu1  ;;  %v1598_v8 = vadd.f32 %v1597_v4, %v1429_v3 }
 0x1a8   :  { %v1431_v22 = vadd.f32 %v1430_v7, %v1261_v6 }
 0x1a9   :  { %v1767_v17 = vadd.f32 %v1766_v5, %v1598_v8 }
 0x1ab   :  { %v3360_v12 = vpop.eup %3359  ;;  %v2077_v32 = vadd.f32 %v4168_v0, %v1767_v17  ;;  %v3056_v17 = vld [vmem:[%s4481_s0 + $0x374] sm:$0xf0] }
 0x1ac   :  { %v3183_v16 = vpack.c.bf16 %v3360_v12, %v3358_v9  ;;  %v2739_v9 = vld [vmem:[%s4481_s0 + $0x360] sm:$0xf]  ;;  %v3053_v12 = vld [vmem:[%s4481_s0 + $0x364] sm:$0xf] }
 0x1ad   :  { %3361 = vtanh.f32 %v2077_v32 }
 0x1ae   :  { %3279 = vst [vmem:[%s4483_s3 + $0x78] sm:$0xff] %v3183_v16   ;;  %v1599_v23 = vpop.f32.mrf.mxu2  ;;  %v1264_v28 = vpop.f32.mrf.mxu0 }
 0x1af   :  { %v1768_v24 = vpop.f32.mrf.mxu3  ;;  %v1600_v27 = vadd.f32 %v1599_v23, %v1431_v22  ;;  %v1433_v29 = vpop.f32.mrf.mxu1 }
 0x1b0   :  { %v1434_v35 = vadd.f32 %v1433_v29, %v1264_v28  ;;  %v2748_v29 = vor.u32 %v3056_v17, %v2747_v14  ;;  %v3062_v17 = vld [vmem:[%s4481_s0 + $0x3ac] sm:$0xf] }
 0x1b1   :  { %v1769_v33 = vadd.f32 %v1768_v24, %v1600_v27  ;;  %1303 = vmatmul.bf16.gmra.mxu0 %v2708_v25  ;;  %v2740_v24 = vor.u32 %v3055_v10, %v2739_v9  ;;  %v2744_v25 = vor.u32 %v3053_v12, %v2741_v13  ;;  %v3063_v9 = vld [vmem:[%s4481_s0 + $0x3ac] sm:$0xf0]  ;;  %v2773_v12 = vld [vmem:[%s4481_s0 + $0x3b0] sm:$0xf0]  ;;  %v2779_v13 = vld [vmem:[%s4481_s0 + $0x3a8] sm:$0xf] }
 0x1b2   :  { %1472 = vmatmul.bf16.gmra.mxu1 %v2712_v26 }
 0x1b3   :  { %v2078_v34 = vadd.f32 %v4168_v0, %v1769_v33  ;;  %1641 = vmatmul.bf16.gmra.mxu2 %v2716_v30  ;;  %v3362_v41 = vpop.eup %3361  ;;  %v2752_v30 = vor.u32 %v3054_v18, %v2749_v19  ;;  %v2781_v18 = vld [vmem:[%s4481_s0 + $0x3b8] sm:$0xf0] }
 0x1b4   :  { %1810 = vmatmul.bf16.gmra.mxu3 %v2720_v31 }
 0x1b5   :  { %3363 = vtanh.f32 %v2078_v34 }
 0x1b6   :  { %v1602_v36 = vpop.f32.mrf.mxu2  ;;  %v1266_v38 = vpop.f32.mrf.mxu0 }
 0x1b7   :  { %v1771_v37 = vpop.f32.mrf.mxu3  ;;  %v1435_v39 = vpop.f32.mrf.mxu1  ;;  %v1603_v40 = vadd.f32 %v1602_v36, %v1434_v35 }
 0x1b8   :  { %v1436_v52 = vadd.f32 %v1435_v39, %v1266_v38 }
 0x1b9   :  { %v1772_v48 = vadd.f32 %v1771_v37, %v1603_v40 }
 0x1bb   :  { %v3364_v44 = vpop.eup %3363  ;;  %v2079_v62 = vadd.f32 %v4168_v0, %v1772_v48  ;;  %v3060_v48 = vld [vmem:[%s4481_s0 + $0x394] sm:$0xf0] }
 0x1bc   :  { %v3188_v47 = vpack.c.bf16 %v3364_v44, %v3362_v41  ;;  %v2755_v41 = vld [vmem:[%s4481_s0 + $0x380] sm:$0xf]  ;;  %v3057_v44 = vld [vmem:[%s4481_s0 + $0x384] sm:$0xf] }
 0x1bd   :  { %3365 = vtanh.f32 %v2079_v62 }
 0x1be   :  { %3280 = vst [vmem:[%s4483_s3 + $0x80] sm:$0xff] %v3188_v47   ;;  %v1604_v53 = vpop.f32.mrf.mxu2  ;;  %v1269_v58 = vpop.f32.mrf.mxu0 }
 0x1bf   :  { %v1773_v54 = vpop.f32.mrf.mxu3  ;;  %v1605_v57 = vadd.f32 %v1604_v53, %v1436_v52  ;;  %v1438_v59 = vpop.f32.mrf.mxu1 }
 0x1c0   :  { %v1439_v2 = vadd.f32 %v1438_v59, %v1269_v58  ;;  %v2764_v59 = vor.u32 %v3060_v48, %v2763_v20  ;;  %v3066_v48 = vld [vmem:[%s4481_s0 + $0x3cc] sm:$0xf] }
 0x1c1   :  { %v1774_v63 = vadd.f32 %v1773_v54, %v1605_v57  ;;  %1308 = vmatmul.bf16.gmra.mxu0 %v2724_v55  ;;  %v2756_v54 = vor.u32 %v3059_v42, %v2755_v41  ;;  %v2760_v55 = vor.u32 %v3057_v44, %v2757_v45  ;;  %v3067_v41 = vld [vmem:[%s4481_s0 + $0x3cc] sm:$0xf0]  ;;  %v2789_v44 = vld [vmem:[%s4481_s0 + $0x3d0] sm:$0xf0]  ;;  %v2795_v45 = vld [vmem:[%s4481_s0 + $0x3c8] sm:$0xf] }
 0x1c2   :  { %1477 = vmatmul.bf16.gmra.mxu1 %v2728_v56 }
 0x1c3   :  { %v2080_v1 = vadd.f32 %v4168_v0, %v1774_v63  ;;  %1646 = vmatmul.bf16.gmra.mxu2 %v2732_v60  ;;  %v3366_v8 = vpop.eup %3365  ;;  %v2768_v60 = vor.u32 %v3058_v49, %v2765_v50  ;;  %v2797_v49 = vld [vmem:[%s4481_s0 + $0x3d8] sm:$0xf0] }
 0x1c4   :  { %1815 = vmatmul.bf16.gmra.mxu3 %v2736_v61 }
 0x1c5   :  { %3367 = vtanh.f32 %v2080_v1 }
 0x1c6   :  { %v1607_v3 = vpop.f32.mrf.mxu2  ;;  %v1271_v5 = vpop.f32.mrf.mxu0 }
 0x1c7   :  { %v1776_v4 = vpop.f32.mrf.mxu3  ;;  %v1440_v6 = vpop.f32.mrf.mxu1  ;;  %v1608_v7 = vadd.f32 %v1607_v3, %v1439_v2 }
 0x1c8   :  { %v1441_v21 = vadd.f32 %v1440_v6, %v1271_v5 }
 0x1c9   :  { %v1777_v16 = vadd.f32 %v1776_v4, %v1608_v7 }
 0x1cb   :  { %v3368_v11 = vpop.eup %3367  ;;  %v2081_v31 = vadd.f32 %v4168_v0, %v1777_v16  ;;  %v3064_v16 = vld [vmem:[%s4481_s0 + $0x3b4] sm:$0xf0] }
 0x1cc   :  { %v3193_v15 = vpack.c.bf16 %v3368_v11, %v3366_v8  ;;  %v2771_v8 = vld [vmem:[%s4481_s0 + $0x3a0] sm:$0xf]  ;;  %v3061_v11 = vld [vmem:[%s4481_s0 + $0x3a4] sm:$0xf] }
 0x1cd   :  { %3369 = vtanh.f32 %v2081_v31 }
 0x1ce   :  { %3281 = vst [vmem:[%s4483_s3 + $0x88] sm:$0xff] %v3193_v15   ;;  %v1609_v22 = vpop.f32.mrf.mxu2  ;;  %v1274_v27 = vpop.f32.mrf.mxu0 }
 0x1cf   :  { %v1778_v23 = vpop.f32.mrf.mxu3  ;;  %v1610_v26 = vadd.f32 %v1609_v22, %v1441_v21  ;;  %v1443_v28 = vpop.f32.mrf.mxu1 }
 0x1d0   :  { %v1444_v34 = vadd.f32 %v1443_v28, %v1274_v27  ;;  %v2780_v28 = vor.u32 %v3064_v16, %v2779_v13  ;;  %v3070_v16 = vld [vmem:[%s4481_s0 + $0x3ec] sm:$0xf] }
 0x1d1   :  { %v1779_v32 = vadd.f32 %v1778_v23, %v1610_v26  ;;  %1313 = vmatmul.bf16.gmra.mxu0 %v2740_v24  ;;  %v2772_v23 = vor.u32 %v3063_v9, %v2771_v8  ;;  %v2776_v24 = vor.u32 %v3061_v11, %v2773_v12  ;;  %v3071_v8 = vld [vmem:[%s4481_s0 + $0x3ec] sm:$0xf0]  ;;  %v2805_v11 = vld [vmem:[%s4481_s0 + $0x3f0] sm:$0xf0]  ;;  %v2811_v12 = vld [vmem:[%s4481_s0 + $0x3e8] sm:$0xf] }
 0x1d2   :  { %1482 = vmatmul.bf16.gmra.mxu1 %v2744_v25 }
 0x1d3   :  { %v2082_v33 = vadd.f32 %v4168_v0, %v1779_v32  ;;  %1651 = vmatmul.bf16.gmra.mxu2 %v2748_v29  ;;  %v3370_v40 = vpop.eup %3369  ;;  %v2784_v29 = vor.u32 %v3062_v17, %v2781_v18  ;;  %v2813_v17 = vld [vmem:[%s4481_s0 + $0x3f8] sm:$0xf0] }
 0x1d4   :  { %1820 = vmatmul.bf16.gmra.mxu3 %v2752_v30 }
 0x1d5   :  { %3371 = vtanh.f32 %v2082_v33 }
 0x1d6   :  { %v1612_v35 = vpop.f32.mrf.mxu2  ;;  %v1276_v37 = vpop.f32.mrf.mxu0 }
 0x1d7   :  { %v1781_v36 = vpop.f32.mrf.mxu3  ;;  %v1445_v38 = vpop.f32.mrf.mxu1  ;;  %v1613_v39 = vadd.f32 %v1612_v35, %v1444_v34 }
 0x1d8   :  { %v1446_v51 = vadd.f32 %v1445_v38, %v1276_v37 }
 0x1d9   :  { %v1782_v47 = vadd.f32 %v1781_v36, %v1613_v39 }
 0x1db   :  { %v3372_v43 = vpop.eup %3371  ;;  %v2083_v61 = vadd.f32 %v4168_v0, %v1782_v47  ;;  %v3068_v47 = vld [vmem:[%s4481_s0 + $0x3d4] sm:$0xf0] }
 0x1dc   :  { %v3198_v46 = vpack.c.bf16 %v3372_v43, %v3370_v40  ;;  %v2787_v40 = vld [vmem:[%s4481_s0 + $0x3c0] sm:$0xf]  ;;  %v3065_v43 = vld [vmem:[%s4481_s0 + $0x3c4] sm:$0xf] }
 0x1dd   :  { %3373 = vtanh.f32 %v2083_v61 }
 0x1de   :  { %3282 = vst [vmem:[%s4483_s3 + $0x90] sm:$0xff] %v3198_v46   ;;  %v1614_v52 = vpop.f32.mrf.mxu2  ;;  %v1279_v57 = vpop.f32.mrf.mxu0 }
 0x1df   :  { %v1783_v53 = vpop.f32.mrf.mxu3  ;;  %v1615_v56 = vadd.f32 %v1614_v52, %v1446_v51  ;;  %v1448_v58 = vpop.f32.mrf.mxu1 }
 0x1e0   :  { %v1449_v1 = vadd.f32 %v1448_v58, %v1279_v57  ;;  %v2796_v58 = vor.u32 %v3068_v47, %v2795_v45 }
 0x1e1   :  { %v1784_v62 = vadd.f32 %v1783_v53, %v1615_v56  ;;  %1318 = vmatmul.bf16.gmra.mxu0 %v2756_v54  ;;  %v2788_v53 = vor.u32 %v3067_v41, %v2787_v40  ;;  %v2792_v54 = vor.u32 %v3065_v43, %v2789_v44 }
 0x1e2   :  { %1487 = vmatmul.bf16.gmra.mxu1 %v2760_v55 }
 0x1e3   :  { %v2084_v63 = vadd.f32 %v4168_v0, %v1784_v62  ;;  %1656 = vmatmul.bf16.gmra.mxu2 %v2764_v59  ;;  %v3374_v7 = vpop.eup %3373  ;;  %v2800_v59 = vor.u32 %v3066_v48, %v2797_v49 }
 0x1e4   :  { %1825 = vmatmul.bf16.gmra.mxu3 %v2768_v60 }
 0x1e5   :  { %3375 = vtanh.f32 %v2084_v63 }
 0x1e6   :  { %v1617_v2 = vpop.f32.mrf.mxu2  ;;  %v1281_v4 = vpop.f32.mrf.mxu0 }
 0x1e7   :  { %v1786_v3 = vpop.f32.mrf.mxu3  ;;  %v1450_v5 = vpop.f32.mrf.mxu1  ;;  %v1618_v6 = vadd.f32 %v1617_v2, %v1449_v1 }
 0x1e8   :  { %v1451_v19 = vadd.f32 %v1450_v5, %v1281_v4 }
 0x1e9   :  { %v1787_v15 = vadd.f32 %v1786_v3, %v1618_v6 }
 0x1eb   :  { %v3376_v10 = vpop.eup %3375  ;;  %v2085_v30 = vadd.f32 %v4168_v0, %v1787_v15  ;;  %v3072_v15 = vld [vmem:[%s4481_s0 + $0x3f4] sm:$0xf0] }
 0x1ec   :  { %v3203_v14 = vpack.c.bf16 %v3376_v10, %v3374_v7  ;;  %v2803_v7 = vld [vmem:[%s4481_s0 + $0x3e0] sm:$0xf]  ;;  %v3069_v10 = vld [vmem:[%s4481_s0 + $0x3e4] sm:$0xf] }
 0x1ed   :  { %3377 = vtanh.f32 %v2085_v30 }
 0x1ee   :  { %3283 = vst [vmem:[%s4483_s3 + $0x98] sm:$0xff] %v3203_v14   ;;  %v1619_v21 = vpop.f32.mrf.mxu2  ;;  %v1284_v26 = vpop.f32.mrf.mxu0 }
 0x1ef   :  { %v1788_v22 = vpop.f32.mrf.mxu3  ;;  %v1620_v25 = vadd.f32 %v1619_v21, %v1451_v19  ;;  %v1453_v27 = vpop.f32.mrf.mxu1 }
 0x1f0   :  { %v1454_v33 = vadd.f32 %v1453_v27, %v1284_v26  ;;  %v2812_v27 = vor.u32 %v3072_v15, %v2811_v12 }
 0x1f1   :  { %v1789_v31 = vadd.f32 %v1788_v22, %v1620_v25  ;;  %1323 = vmatmul.bf16.gmra.mxu0 %v2772_v23  ;;  %v2804_v22 = vor.u32 %v3071_v8, %v2803_v7  ;;  %v2808_v23 = vor.u32 %v3069_v10, %v2805_v11 }
 0x1f2   :  { %1492 = vmatmul.bf16.gmra.mxu1 %v2776_v24 }
 0x1f3   :  { %v2086_v32 = vadd.f32 %v4168_v0, %v1789_v31  ;;  %1661 = vmatmul.bf16.gmra.mxu2 %v2780_v28  ;;  %v3378_v39 = vpop.eup %3377  ;;  %v2816_v28 = vor.u32 %v3070_v16, %v2813_v17 }
 0x1f4   :  { %1830 = vmatmul.bf16.gmra.mxu3 %v2784_v29 }
 0x1f5   :  { %3379 = vtanh.f32 %v2086_v32 }
 0x1f6   :  { %v1622_v34 = vpop.f32.mrf.mxu2  ;;  %v1286_v36 = vpop.f32.mrf.mxu0 }
 0x1f7   :  { %v1791_v35 = vpop.f32.mrf.mxu3  ;;  %v1455_v37 = vpop.f32.mrf.mxu1  ;;  %v1623_v38 = vadd.f32 %v1622_v34, %v1454_v33 }
 0x1f8   :  { %v1456_v50 = vadd.f32 %v1455_v37, %v1286_v36 }
 0x1f9   :  { %v1792_v46 = vadd.f32 %v1791_v35, %v1623_v38 }
 0x1fb   :  { %v3380_v42 = vpop.eup %3379  ;;  %v2087_v60 = vadd.f32 %v4168_v0, %v1792_v46 }
 0x1fc   :  { %v3208_v20 = vpack.c.bf16 %v3380_v42, %v3378_v39 }
 0x1fd   :  { %3381 = vtanh.f32 %v2087_v60 }
 0x1fe   :  { %3284 = vst [vmem:[%s4483_s3 + $0xa0] sm:$0xff] %v3208_v20   ;;  %v1624_v51 = vpop.f32.mrf.mxu2  ;;  %v1289_v56 = vpop.f32.mrf.mxu0 }
 0x1ff   :  { %v1793_v52 = vpop.f32.mrf.mxu3  ;;  %v1625_v55 = vadd.f32 %v1624_v51, %v1456_v50  ;;  %v1458_v57 = vpop.f32.mrf.mxu1 }
 0x200   :  { %v1459_v63 = vadd.f32 %v1458_v57, %v1289_v56 }
 0x201   :  { %v1794_v61 = vadd.f32 %v1793_v52, %v1625_v55  ;;  %1328 = vmatmul.bf16.gmra.mxu0 %v2788_v53 }
 0x202   :  { %1497 = vmatmul.bf16.gmra.mxu1 %v2792_v54 }
 0x203   :  { %v2088_v62 = vadd.f32 %v4168_v0, %v1794_v61  ;;  %1666 = vmatmul.bf16.gmra.mxu2 %v2796_v58  ;;  %v3382_v6 = vpop.eup %3381 }
 0x204   :  { %1835 = vmatmul.bf16.gmra.mxu3 %v2800_v59 }
 0x205   :  { %3383 = vtanh.f32 %v2088_v62 }
 0x206   :  { %v1627_v1 = vpop.f32.mrf.mxu2  ;;  %v1291_v3 = vpop.f32.mrf.mxu0 }
 0x207   :  { %v1796_v2 = vpop.f32.mrf.mxu3  ;;  %v1460_v4 = vpop.f32.mrf.mxu1  ;;  %v1628_v5 = vadd.f32 %v1627_v1, %v1459_v63 }
 0x208   :  { %v1461_v18 = vadd.f32 %v1460_v4, %v1291_v3 }
 0x209   :  { %v1797_v14 = vadd.f32 %v1796_v2, %v1628_v5 }
 0x20b   :  { %v3384_v9 = vpop.eup %3383  ;;  %v2089_v29 = vadd.f32 %v4168_v0, %v1797_v14 }
 0x20c   :  { %v3213_v13 = vpack.c.bf16 %v3384_v9, %v3382_v6 }
 0x20d   :  { %3385 = vtanh.f32 %v2089_v29 }
 0x20e   :  { %3285 = vst [vmem:[%s4483_s3 + $0xa8] sm:$0xff] %v3213_v13   ;;  %v1629_v19 = vpop.f32.mrf.mxu2  ;;  %v1294_v25 = vpop.f32.mrf.mxu0 }
 0x20f   :  { %v1798_v21 = vpop.f32.mrf.mxu3  ;;  %v1630_v24 = vadd.f32 %v1629_v19, %v1461_v18  ;;  %v1463_v26 = vpop.f32.mrf.mxu1 }
 0x210   :  { %v1464_v32 = vadd.f32 %v1463_v26, %v1294_v25 }
 0x211   :  { %v1799_v30 = vadd.f32 %v1798_v21, %v1630_v24  ;;  %1333 = vmatmul.bf16.gmra.mxu0 %v2804_v22 }
 0x212   :  { %1502 = vmatmul.bf16.gmra.mxu1 %v2808_v23 }
 0x213   :  { %v2090_v31 = vadd.f32 %v4168_v0, %v1799_v30  ;;  %1671 = vmatmul.bf16.gmra.mxu2 %v2812_v27  ;;  %v3386_v38 = vpop.eup %3385 }
 0x214   :  { %1840 = vmatmul.bf16.gmra.mxu3 %v2816_v28 }
 0x215   :  { %3387 = vtanh.f32 %v2090_v31 }
 0x216   :  { %v1632_v33 = vpop.f32.mrf.mxu2  ;;  %v1296_v35 = vpop.f32.mrf.mxu0 }
 0x217   :  { %v1801_v34 = vpop.f32.mrf.mxu3  ;;  %v1465_v36 = vpop.f32.mrf.mxu1  ;;  %v1633_v37 = vadd.f32 %v1632_v33, %v1464_v32 }
 0x218   :  { %v1466_v42 = vadd.f32 %v1465_v36, %v1296_v35 }
 0x219   :  { %v1802_v41 = vadd.f32 %v1801_v34, %v1633_v37 }
 0x21b   :  { %v3388_v39 = vpop.eup %3387  ;;  %v2091_v47 = vadd.f32 %v4168_v0, %v1802_v41 }
 0x21c   :  { %v3218_v40 = vpack.c.bf16 %v3388_v39, %v3386_v38 }
 0x21d   :  { %3389 = vtanh.f32 %v2091_v47 }
 0x21e   :  { %3286 = vst [vmem:[%s4483_s3 + $0xb0] sm:$0xff] %v3218_v40   ;;  %v1634_v43 = vpop.f32.mrf.mxu2  ;;  %v1299_v20 = vpop.f32.mrf.mxu0 }
 0x21f   :  { %v1803_v44 = vpop.f32.mrf.mxu3  ;;  %v1635_v45 = vadd.f32 %v1634_v43, %v1466_v42  ;;  %v1468_v46 = vpop.f32.mrf.mxu1 }
 0x220   :  { %v1469_v50 = vadd.f32 %v1468_v46, %v1299_v20 }
 0x221   :  { %v1804_v48 = vadd.f32 %v1803_v44, %v1635_v45 }
 0x223   :  { %v2092_v49 = vadd.f32 %v4168_v0, %v1804_v48  ;;  %v3390_v56 = vpop.eup %3389 }
 0x225   :  { %3391 = vtanh.f32 %v2092_v49 }
 0x226   :  { %v1637_v51 = vpop.f32.mrf.mxu2  ;;  %v1301_v53 = vpop.f32.mrf.mxu0 }
 0x227   :  { %v1806_v52 = vpop.f32.mrf.mxu3  ;;  %v1470_v54 = vpop.f32.mrf.mxu1  ;;  %v1638_v55 = vadd.f32 %v1637_v51, %v1469_v50 }
 0x228   :  { %v1471_v60 = vadd.f32 %v1470_v54, %v1301_v53 }
 0x229   :  { %v1807_v59 = vadd.f32 %v1806_v52, %v1638_v55 }
 0x22b   :  { %v3392_v57 = vpop.eup %3391  ;;  %v2093_v3 = vadd.f32 %v4168_v0, %v1807_v59 }
 0x22c   :  { %v3223_v58 = vpack.c.bf16 %v3392_v57, %v3390_v56 }
 0x22d   :  { %3393 = vtanh.f32 %v2093_v3 }
 0x22e   :  { %3287 = vst [vmem:[%s4483_s3 + $0xb8] sm:$0xff] %v3223_v58   ;;  %v1639_v61 = vpop.f32.mrf.mxu2  ;;  %v1304_v1 = vpop.f32.mrf.mxu0 }
 0x22f   :  { %v1808_v62 = vpop.f32.mrf.mxu3  ;;  %v1640_v63 = vadd.f32 %v1639_v61, %v1471_v60  ;;  %v1473_v2 = vpop.f32.mrf.mxu1 }
 0x230   :  { %v1474_v6 = vadd.f32 %v1473_v2, %v1304_v1 }
 0x231   :  { %v1809_v4 = vadd.f32 %v1808_v62, %v1640_v63 }
 0x233   :  { %v2094_v5 = vadd.f32 %v4168_v0, %v1809_v4  ;;  %v3394_v12 = vpop.eup %3393 }
 0x235   :  { %3395 = vtanh.f32 %v2094_v5 }
 0x236   :  { %v1642_v7 = vpop.f32.mrf.mxu2  ;;  %v1306_v9 = vpop.f32.mrf.mxu0 }
 0x237   :  { %v1811_v8 = vpop.f32.mrf.mxu3  ;;  %v1475_v10 = vpop.f32.mrf.mxu1  ;;  %v1643_v11 = vadd.f32 %v1642_v7, %v1474_v6 }
 0x238   :  { %v1476_v16 = vadd.f32 %v1475_v10, %v1306_v9 }
 0x239   :  { %v1812_v15 = vadd.f32 %v1811_v8, %v1643_v11 }
 0x23b   :  { %v3396_v13 = vpop.eup %3395  ;;  %v2095_v23 = vadd.f32 %v4168_v0, %v1812_v15 }
 0x23c   :  { %v3228_v14 = vpack.c.bf16 %v3396_v13, %v3394_v12 }
 0x23d   :  { %3397 = vtanh.f32 %v2095_v23 }
 0x23e   :  { %3288 = vst [vmem:[%s4483_s3 + $0xc0] sm:$0xff] %v3228_v14   ;;  %v1644_v17 = vpop.f32.mrf.mxu2  ;;  %v1309_v21 = vpop.f32.mrf.mxu0 }
 0x23f   :  { %v1813_v18 = vpop.f32.mrf.mxu3  ;;  %v1645_v19 = vadd.f32 %v1644_v17, %v1476_v16  ;;  %v1478_v22 = vpop.f32.mrf.mxu1 }
 0x240   :  { %v1479_v26 = vadd.f32 %v1478_v22, %v1309_v21 }
 0x241   :  { %v1814_v24 = vadd.f32 %v1813_v18, %v1645_v19 }
 0x243   :  { %v2096_v25 = vadd.f32 %v4168_v0, %v1814_v24  ;;  %v3398_v32 = vpop.eup %3397 }
 0x245   :  { %3399 = vtanh.f32 %v2096_v25 }
 0x246   :  { %v1647_v27 = vpop.f32.mrf.mxu2  ;;  %v1311_v29 = vpop.f32.mrf.mxu0 }
 0x247   :  { %v1816_v28 = vpop.f32.mrf.mxu3  ;;  %v1480_v30 = vpop.f32.mrf.mxu1  ;;  %v1648_v31 = vadd.f32 %v1647_v27, %v1479_v26 }
 0x248   :  { %v1481_v36 = vadd.f32 %v1480_v30, %v1311_v29 }
 0x249   :  { %v1817_v35 = vadd.f32 %v1816_v28, %v1648_v31 }
 0x24b   :  { %v3400_v33 = vpop.eup %3399  ;;  %v2097_v42 = vadd.f32 %v4168_v0, %v1817_v35 }
 0x24c   :  { %v3233_v34 = vpack.c.bf16 %v3400_v33, %v3398_v32 }
 0x24d   :  { %3401 = vtanh.f32 %v2097_v42 }
 0x24e   :  { %3289 = vst [vmem:[%s4483_s3 + $0xc8] sm:$0xff] %v3233_v34   ;;  %v1649_v37 = vpop.f32.mrf.mxu2  ;;  %v1314_v40 = vpop.f32.mrf.mxu0 }
 0x24f   :  { %v1818_v38 = vpop.f32.mrf.mxu3  ;;  %v1650_v39 = vadd.f32 %v1649_v37, %v1481_v36  ;;  %v1483_v41 = vpop.f32.mrf.mxu1 }
 0x250   :  { %v1484_v45 = vadd.f32 %v1483_v41, %v1314_v40 }
 0x251   :  { %v1819_v43 = vadd.f32 %v1818_v38, %v1650_v39 }
 0x253   :  { %v2098_v44 = vadd.f32 %v4168_v0, %v1819_v43  ;;  %v3402_v50 = vpop.eup %3401 }
 0x255   :  { %3403 = vtanh.f32 %v2098_v44 }
 0x256   :  { %v1652_v20 = vpop.f32.mrf.mxu2  ;;  %v1316_v47 = vpop.f32.mrf.mxu0 }
 0x257   :  { %v1821_v46 = vpop.f32.mrf.mxu3  ;;  %v1485_v48 = vpop.f32.mrf.mxu1  ;;  %v1653_v49 = vadd.f32 %v1652_v20, %v1484_v45 }
 0x258   :  { %v1486_v54 = vadd.f32 %v1485_v48, %v1316_v47 }
 0x259   :  { %v1822_v53 = vadd.f32 %v1821_v46, %v1653_v49 }
 0x25b   :  { %v3404_v51 = vpop.eup %3403  ;;  %v2099_v60 = vadd.f32 %v4168_v0, %v1822_v53 }
 0x25c   :  { %v3238_v52 = vpack.c.bf16 %v3404_v51, %v3402_v50  ;;  %v3426_v51 = vld [vmem:[%s4482_s2] ss:$0 sm:$0xff] }
 0x25d   :  { %3405 = vtanh.f32 %v2099_v60 }
 0x25e   :  { %3290 = vst [vmem:[%s4483_s3 + $0xd0] sm:$0xff] %v3238_v52   ;;  %v1654_v55 = vpop.f32.mrf.mxu2  ;;  %v1319_v58 = vpop.f32.mrf.mxu0 }
 0x25f   :  { %v1823_v56 = vpop.f32.mrf.mxu3  ;;  %v1655_v57 = vadd.f32 %v1654_v55, %v1486_v54  ;;  %v1488_v59 = vpop.f32.mrf.mxu1 }
 0x260   :  { %v1489_v63 = vadd.f32 %v1488_v59, %v1319_v58 }
 0x261   :  { %v1824_v61 = vadd.f32 %v1823_v56, %v1655_v57 }
 0x263   :  { %v2100_v62 = vadd.f32 %v4168_v0, %v1824_v61  ;;  %v3406_v6 = vpop.eup %3405 }
 0x265   :  { %3407 = vtanh.f32 %v2100_v62 }
 0x266   :  { %v1657_v1 = vpop.f32.mrf.mxu2  ;;  %v1321_v3 = vpop.f32.mrf.mxu0 }
 0x267   :  { %v1826_v2 = vpop.f32.mrf.mxu3  ;;  %v1490_v4 = vpop.f32.mrf.mxu1  ;;  %v1658_v5 = vadd.f32 %v1657_v1, %v1489_v63 }
 0x268   :  { %v1491_v10 = vadd.f32 %v1490_v4, %v1321_v3 }
 0x269   :  { %v1827_v9 = vadd.f32 %v1826_v2, %v1658_v5 }
 0x26b   :  { %v3408_v7 = vpop.eup %3407  ;;  %v2101_v16 = vadd.f32 %v4168_v0, %v1827_v9 }
 0x26c   :  { %v3243_v8 = vpack.c.bf16 %v3408_v7, %v3406_v6 }
 0x26d   :  { %3409 = vtanh.f32 %v2101_v16 }
 0x26e   :  { %3291 = vst [vmem:[%s4483_s3 + $0xd8] sm:$0xff] %v3243_v8   ;;  %v1659_v11 = vpop.f32.mrf.mxu2  ;;  %v1324_v14 = vpop.f32.mrf.mxu0 }
 0x26f   :  { %v1828_v12 = vpop.f32.mrf.mxu3  ;;  %v1660_v13 = vadd.f32 %v1659_v11, %v1491_v10  ;;  %v1493_v15 = vpop.f32.mrf.mxu1 }
 0x270   :  { %v1494_v19 = vadd.f32 %v1493_v15, %v1324_v14 }
 0x271   :  { %v1829_v17 = vadd.f32 %v1828_v12, %v1660_v13 }
 0x273   :  { %v2102_v18 = vadd.f32 %v4168_v0, %v1829_v17  ;;  %v3410_v26 = vpop.eup %3409 }
 0x275   :  { %3411 = vtanh.f32 %v2102_v18 }
 0x276   :  { %v1662_v21 = vpop.f32.mrf.mxu2  ;;  %v1326_v23 = vpop.f32.mrf.mxu0 }
 0x277   :  { %v1831_v22 = vpop.f32.mrf.mxu3  ;;  %v1495_v24 = vpop.f32.mrf.mxu1  ;;  %v1663_v25 = vadd.f32 %v1662_v21, %v1494_v19 }
 0x278   :  { %v1496_v30 = vadd.f32 %v1495_v24, %v1326_v23 }
 0x279   :  { %v1832_v29 = vadd.f32 %v1831_v22, %v1663_v25 }
 0x27b   :  { %v3412_v27 = vpop.eup %3411  ;;  %v2103_v36 = vadd.f32 %v4168_v0, %v1832_v29 }
 0x27c   :  { %v3248_v28 = vpack.c.bf16 %v3412_v27, %v3410_v26 }
 0x27d   :  { %3413 = vtanh.f32 %v2103_v36 }
 0x27e   :  { %3292 = vst [vmem:[%s4483_s3 + $0xe0] sm:$0xff] %v3248_v28   ;;  %v1664_v31 = vpop.f32.mrf.mxu2  ;;  %v1329_v34 = vpop.f32.mrf.mxu0 }
 0x27f   :  { %v1833_v32 = vpop.f32.mrf.mxu3  ;;  %v1665_v33 = vadd.f32 %v1664_v31, %v1496_v30  ;;  %v1498_v35 = vpop.f32.mrf.mxu1 }
 0x280   :  { %v1499_v39 = vadd.f32 %v1498_v35, %v1329_v34 }
 0x281   :  { %v1834_v37 = vadd.f32 %v1833_v32, %v1665_v33 }
 0x283   :  { %v2104_v38 = vadd.f32 %v4168_v0, %v1834_v37  ;;  %v3414_v45 = vpop.eup %3413 }
 0x285   :  { %3415 = vtanh.f32 %v2104_v38 }
 0x286   :  { %v1667_v40 = vpop.f32.mrf.mxu2  ;;  %v1331_v42 = vpop.f32.mrf.mxu0 }
 0x287   :  { %v1836_v41 = vpop.f32.mrf.mxu3  ;;  %v1500_v43 = vpop.f32.mrf.mxu1  ;;  %v1668_v44 = vadd.f32 %v1667_v40, %v1499_v39 }
 0x288   :  { %v1501_v48 = vadd.f32 %v1500_v43, %v1331_v42 }
 0x289   :  { %v1837_v47 = vadd.f32 %v1836_v41, %v1668_v44 }
 0x28b   :  { %v3416_v20 = vpop.eup %3415  ;;  %v2105_v52 = vadd.f32 %v3426_v51, %v1837_v47 }
 0x28c   :  { %v3253_v46 = vpack.c.bf16 %v3416_v20, %v3414_v45 }
 0x28d   :  { %3417 = vtanh.f32 %v2105_v52 }
 0x28e   :  { %3293 = vst [vmem:[%s4483_s3 + $0xe8] sm:$0xff] %v3253_v46   ;;  %v1669_v49 = vpop.f32.mrf.mxu2  ;;  %v1334_v53 = vpop.f32.mrf.mxu0 }
 0x28f   :  { %v1838_v50 = vpop.f32.mrf.mxu3  ;;  %v1670_v0 = vadd.f32 %v1669_v49, %v1501_v48  ;;  %v1503_v54 = vpop.f32.mrf.mxu1 }
 0x290   :  { %v1504_v57 = vadd.f32 %v1503_v54, %v1334_v53 }
 0x291   :  { %v1839_v55 = vadd.f32 %v1838_v50, %v1670_v0 }
 0x293   :  { %v2106_v56 = vadd.f32 %v3426_v51, %v1839_v55  ;;  %v3418_v61 = vpop.eup %3417 }
 0x295   :  { %3419 = vtanh.f32 %v2106_v56 }
 0x296   :  { %v1672_v58 = vpop.f32.mrf.mxu2  ;;  %v1336_v62 = vpop.f32.mrf.mxu0 }
 0x297   :  { %v1841_v59 = vpop.f32.mrf.mxu3  ;;  %v1673_v60 = vadd.f32 %v1672_v58, %v1504_v57  ;;  %v1505_v63 = vpop.f32.mrf.mxu1 }
 0x298   :  { %v1506_v4 = vadd.f32 %v1505_v63, %v1336_v62 }
 0x299   :  { %v1842_v3 = vadd.f32 %v1841_v59, %v1673_v60 }
 0x29b   :  { %v3420_v1 = vpop.eup %3419  ;;  %v2107_v7 = vadd.f32 %v3426_v51, %v1842_v3 }
 0x29c   :  { %v3258_v2 = vpack.c.bf16 %v3420_v1, %v3418_v61 }
 0x29d   :  { %3421 = vtanh.f32 %v2107_v7 }
 0x29e   :  { %3294 = vst [vmem:[%s4483_s3 + $0xf0] sm:$0xff] %v3258_v2   ;;  %v1674_v5 = vpop.f32.mrf.mxu2 }
 0x29f   :  { %v1675_v6 = vadd.f32 %v1674_v5, %v1506_v4  ;;  %v1843_v8 = vpop.f32.mrf.mxu3 }
 0x2a1   :  { %v1844_v9 = vadd.f32 %v1843_v8, %v1675_v6 }
 0x2a3   :  { %v2108_v10 = vadd.f32 %v3426_v51, %v1844_v9  ;;  %v3422_v11 = vpop.eup %3421 }
 0x2a5   :  { %3423 = vtanh.f32 %v2108_v10 }
 0x2ab   :  { %v3424_v12 = vpop.eup %3423 }
 0x2ac   :  { %v3263_v13 = vpack.c.bf16 %v3424_v12, %v3422_v11 }
 0x2ae   :  { %3295 = vst [vmem:[%s4483_s3 + $0xf8] sm:$0xff] %v3263_v13  }

</bundles_post_ra>
